<compile_context>
chip_gen: v5e
topology: v5e:2x2
jax: 0.10.0
libtpu: 0.0.40
codegen_flags: <defaults>
</compile_context>

<pallas_src>
import functools
import math

import jax
import jax.numpy as jnp
from jax import lax
from jax.experimental import pallas as pl
from jax.experimental.pallas import tpu as pltpu

MAX_LEN = 4097   # fixed by the PyTorch module (use_relative=True, max_len=4097)
LN_EPS = 1e-5    # torch.nn.LayerNorm default

# dot_general dimension numbers for 2-D operands.
DN_NT = (((1,), (1,)), ((), ()))   # A   @ B^T : contract last dims
DN_TN = (((0,), (0,)), ((), ()))   # A^T @ B   : contract first dims


# ------------------------------ skew variants -------------------------------

def _skew_reference(qr):
    """Plain-XLA port of AttentionHead.skew for a single (T, T) matrix."""
    T = qr.shape[-1]
    padded = jnp.pad(qr, ((0, 0), (1, 0)))
    return padded.reshape(T + 1, T)[1:, :]


def _skew_roll(qr, row, col):
    """Exact skew using XLU rolls (review-prescribed path).

    a[m, c] = qr[m, (c - m - 1) mod T]  (per-row right-roll by m+1, built from
    an unconditional roll-by-1 plus bit-conditional rolls), then
      S[m, c] = a[m, c]      for c <= m
              = 0            for c == m + 1
              = a[m + 1, c]  for c >  m + 1   (wrapped wedge; the circularly
                                               wrapped last row is never used)
    """
    T = qr.shape[-1]
    a = pltpu.roll(qr, shift=1, axis=1)
    k = 1
    while k < T:
        a = jnp.where((row & k) != 0, pltpu.roll(a, shift=k, axis=1), a)
        k <<= 1
    nxt = pltpu.roll(a, shift=T - 1, axis=0)       # nxt[m] = a[(m + 1) mod T]
    return jnp.where(col <= row, a, jnp.where(col == row + 1, 0.0, nxt))


def _skew_matmul(qr, row, col):
    """Fallback skew via 0/1 circulant-permutation matmuls (previous, proven
    implementation).  Only used if the roll path fails the feature probe."""
    T = qr.shape[-1]

    def roll_right_perm(s):
        tgt = row + s
        tgt = jnp.where(tgt >= T, tgt - T, tgt)
        return (tgt == col).astype(jnp.float32)

    a = jnp.dot(qr, roll_right_perm(1), preferred_element_type=jnp.float32)
    k = 1
    while k < T:
        a = jnp.where(
            (row & k) != 0,
            jnp.dot(a, roll_right_perm(k), preferred_element_type=jnp.float32),
            a)
        k <<= 1
    shift_up = (col == row + 1).astype(jnp.float32)
    nxt = jnp.dot(shift_up, a, preferred_element_type=jnp.float32)
    return jnp.where(col <= row, a, jnp.where(col == row + 1, 0.0, nxt))


@functools.lru_cache(maxsize=None)
def choose_skew_impl(seq_len):
    """Feature-probe (must be called OUTSIDE jit): does the pltpu.roll-based
    skew lower on this toolchain for (T, T) f32 tiles AND match the exact
    reference?  Otherwise fall back to the permutation-matmul skew so the
    model always compiles and runs."""
    T = seq_len

    def probe_kernel(x_ref, o_ref):
        row = lax.broadcasted_iota(jnp.int32, (T, T), 0)
        col = lax.broadcasted_iota(jnp.int32, (T, T), 1)
        o_ref[...] = _skew_roll(x_ref[...], row, col)

    try:
        x = jax.random.normal(jax.random.PRNGKey(1), (T, T), dtype=jnp.float32)
        got = pl.pallas_call(
            probe_kernel,
            out_shape=jax.ShapeDtypeStruct((T, T), jnp.float32),
        )(x)
        want = _skew_reference(x)
        if bool(jnp.allclose(got, want, atol=1e-5, rtol=1e-5)):
            return "roll"
    except Exception:
        pass
    return "matmul"


# --------------------------- patch-embed kernel ------------------------------

def _matmul_bias_kernel(x_ref, w_ref, b_ref, o_ref):
    o_ref[...] = (jnp.dot(x_ref[...], w_ref[...],
                          preferred_element_type=jnp.float32) + b_ref[...])


def matmul_bias(x, w, b):
    """x: (M, K) @ w: (K, N) + b -> (M, N).  Single block (tiny at these sizes).
    TODO(synk): tile over M in 128-aligned blocks for large B * num_patches."""
    M, N = x.shape[0], w.shape[1]
    return pl.pallas_call(
        _matmul_bias_kernel,
        out_shape=jax.ShapeDtypeStruct((M, N), jnp.float32),
    )(x, w, b.reshape(1, N))


# --------------------------- fused per-layer kernel --------------------------

def _make_layer_kernel(*, num_heads, attn_dim, scale, skew_impl, with_head):
    skew = _skew_roll if skew_impl == "roll" else _skew_matmul
    H, ad = num_heads, attn_dim
    inv_sqrt2 = 1.0 / math.sqrt(2.0)

    def compute(x_ref, wqkv_ref, bqkv_ref, erel_ref, wo_ref, bo_ref,
                g_ref, be_ref, w1_ref, b1_ref, w2_ref, b2_ref,
                o_ref, head_refs):
        x = x_ref[0]                               # (T, dim) f32
        T = x.shape[0]

        # Packed Q/K/V projection for every head in ONE MXU matmul, kept
        # feature-major (rows = output features) so per-head slicing is
        # sublane-aligned:  rows = [Q_h0..Q_h{H-1} | K_h0.. | V_h0..].
        qkv_t = (lax.dot_general(wqkv_ref[...], x, DN_NT,
                                 preferred_element_type=jnp.float32)
                 + bqkv_ref[...])                  # (3*H*ad, T)

        row = lax.broadcasted_iota(jnp.int32, (T, T), 0)
        col = lax.broadcasted_iota(jnp.int32, (T, T), 1)

        # Per-head attention; the concat + output projection is folded into a
        # running accumulation: cat(heads) @ Wo == sum_h head_h @ Wo[h*ad:(h+1)*ad].
        attn = bo_ref[...]                         # (1, dim), broadcasts over T
        for h in range(H):
            q_t = qkv_t[h * ad:(h + 1) * ad, :]                    # Q^T (ad, T)
            k_t = qkv_t[(H + h) * ad:(H + h + 1) * ad, :]          # K^T (ad, T)
            v_t = qkv_t[(2 * H + h) * ad:(2 * H + h + 1) * ad, :]  # V^T (ad, T)

            qk = lax.dot_general(q_t, k_t, DN_TN,
                                 preferred_element_type=jnp.float32)     # Q K^T
            qr = lax.dot_general(q_t, erel_ref[h], DN_TN,
                                 preferred_element_type=jnp.float32)     # Q E_rel
            logits = (qk + skew(qr, row, col)) * scale
            logits = logits - jnp.max(logits, axis=-1, keepdims=True)
            e = jnp.exp(logits)
            alpha = e / jnp.sum(e, axis=-1, keepdims=True)   # exact softmax
            head_out = lax.dot_general(alpha, v_t, DN_NT,
                                       preferred_element_type=jnp.float32)  # (T, ad)
            attn = attn + jnp.dot(head_out, wo_ref[h * ad:(h + 1) * ad, :],
                                  preferred_element_type=jnp.float32)

        x1 = x + attn                              # first residual

        # FFN: LayerNorm -> Linear -> GELU(erf; matches nn.GELU) -> Linear.
        mu = jnp.mean(x1, axis=-1, keepdims=True)
        var = jnp.mean(jnp.square(x1 - mu), axis=-1, keepdims=True)
        xn = (x1 - mu) * lax.rsqrt(var + LN_EPS) * g_ref[...] + be_ref[...]
        h1 = (jnp.dot(xn, w1_ref[...], preferred_element_type=jnp.float32)
              + b1_ref[...])
        h1 = 0.5 * h1 * (1.0 + lax.erf(h1 * inv_sqrt2))
        ffn = (jnp.dot(h1, w2_ref[...], preferred_element_type=jnp.float32)
               + b2_ref[...])
        x2 = x1 + ffn                              # second residual
        o_ref[0] = x2

        if head_refs is not None:
            # Classification head (LayerNorm -> Linear) fused into the last
            # layer, applied to the CLS row only (head(x)[:, 0] == head(x[:, 0])).
            hg_ref, hb_ref, hw_ref, hbb_ref, cls_ref = head_refs
            c = x2[0:1, :]
            cmu = jnp.mean(c, axis=-1, keepdims=True)
            cvar = jnp.mean(jnp.square(c - cmu), axis=-1, keepdims=True)
            cn = (c - cmu) * lax.rsqrt(cvar + LN_EPS) * hg_ref[...] + hb_ref[...]
            cls_ref[0] = (jnp.dot(cn, hw_ref[...],
                                  preferred_element_type=jnp.float32)
                          + hbb_ref[...])

    if with_head:
        def kernel(x_ref, wqkv_ref, bqkv_ref, erel_ref, wo_ref, bo_ref,
                   g_ref, be_ref, w1_ref, b1_ref, w2_ref, b2_ref,
                   hg_ref, hb_ref, hw_ref, hbb_ref, o_ref, cls_ref):
            compute(x_ref, wqkv_ref, bqkv_ref, erel_ref, wo_ref, bo_ref,
                    g_ref, be_ref, w1_ref, b1_ref, w2_ref, b2_ref,
                    o_ref, (hg_ref, hb_ref, hw_ref, hbb_ref, cls_ref))
    else:
        def kernel(x_ref, wqkv_ref, bqkv_ref, erel_ref, wo_ref, bo_ref,
                   g_ref, be_ref, w1_ref, b1_ref, w2_ref, b2_ref, o_ref):
            compute(x_ref, wqkv_ref, bqkv_ref, erel_ref, wo_ref, bo_ref,
                    g_ref, be_ref, w1_ref, b1_ref, w2_ref, b2_ref,
                    o_ref, None)
    return kernel


def _layer_vmem_limit_bytes(T, dim, mlp_dim, num_heads, attn_dim, nout):
    had = num_heads * attn_dim
    weights = (3 * had * dim + 3 * had          # packed QKV
               + num_heads * attn_dim * T       # E_rel^T
               + had * dim + dim                # out-proj
               + 2 * dim                        # FFN LayerNorm
               + dim * mlp_dim + mlp_dim + mlp_dim * dim + dim
               + 2 * dim + dim * nout + nout)   # fused CLS head
    blocks = 2 * T * dim                        # x in + x out block
    temps = (3 * had * T                        # qkv_t
             + 10 * T * T                       # qk / qr / skew / exp / alpha ...
             + 2 * T * mlp_dim + 6 * T * dim)   # FFN / residuals
    est = 4 * (2 * (weights + blocks) + temps)  # f32 bytes, 2x pipeline buffers
    # Floor at 32 MiB (>= every generation's default scoped limit), cap under
    # v7x's 64 MiB physical VMEM.
    return int(min(max(est, 32 * 1024 * 1024), 60 * 1024 * 1024))


def transformer_layer(x, layer, head_params, *, num_heads, attn_dim, scale,
                      skew_impl, nout, with_head):
    B, T, dim = x.shape
    mlp_dim = layer["w1"].shape[1]
    had = num_heads * attn_dim

    kernel = _make_layer_kernel(num_heads=num_heads, attn_dim=attn_dim,
                                scale=scale, skew_impl=skew_impl,
                                with_head=with_head)

    def inv(shape):
        # Grid-invariant full-array block (weights / biases).
        # TODO(synk): pipeline_mode=pl.Buffered(1) would single-buffer these.
        nd = len(shape)
        return pl.BlockSpec(shape, lambda b, _nd=nd: (0,) * _nd)

    in_specs = [
        pl.BlockSpec((1, T, dim), lambda b: (b, 0, 0)),   # x
        inv((3 * had, dim)),             # packed Wq|Wk|Wv (feature-major)
        inv((3 * had, 1)),               # packed biases
        inv((num_heads, attn_dim, T)),   # E_rel^T per head (prepped offline)
        inv((had, dim)),                 # Wo
        inv((1, dim)),                   # bo
        inv((1, dim)), inv((1, dim)),    # FFN LayerNorm gamma / beta
        inv((dim, mlp_dim)), inv((1, mlp_dim)),
        inv((mlp_dim, dim)), inv((1, dim)),
    ]
    inputs = [x, layer["wqkv_t"], layer["bqkv"], layer["e_rel_t"],
              layer["wo"], layer["bo"].reshape(1, dim),
              layer["ln_g"].reshape(1, dim), layer["ln_b"].reshape(1, dim),
              layer["w1"], layer["b1"].reshape(1, mlp_dim),
              layer["w2"], layer["b2"].reshape(1, dim)]

    if with_head:
        in_specs += [inv((1, dim)), inv((1, dim)), inv((dim, nout)),
                     inv((1, nout))]
        inputs += [head_params["ln_g"].reshape(1, dim),
                   head_params["ln_b"].reshape(1, dim),
                   head_params["w"], head_params["b"].reshape(1, nout)]
        out_specs = (pl.BlockSpec((1, T, dim), lambda b: (b, 0, 0)),
                     pl.BlockSpec((1, 1, nout), lambda b: (b, 0, 0)))
        out_shape = (jax.ShapeDtypeStruct((B, T, dim), jnp.float32),
                     jax.ShapeDtypeStruct((B, 1, nout), jnp.float32))
    else:
        out_specs = pl.BlockSpec((1, T, dim), lambda b: (b, 0, 0))
        out_shape = jax.ShapeDtypeStruct((B, T, dim), jnp.float32)

    return pl.pallas_call(
        kernel,
        grid=(B,),
        in_specs=in_specs,
        out_specs=out_specs,
        out_shape=out_shape,
        compiler_params=pltpu.CompilerParams(
            dimension_semantics=("parallel",),
            vmem_limit_bytes=_layer_vmem_limit_bytes(
                T, dim, mlp_dim, num_heads, attn_dim, nout),
        ),
    )(*inputs)


# ------------------------------ model wrapper --------------------------------

def vit_forward(img, params, cfg, skew_impl):
    """Forward pass of RelativeVisionTransformer (return_attn=False)."""
    p = cfg["patch_size"]
    dim, attn_dim = cfg["dim"], cfg["attn_dim"]
    num_heads, nout = cfg["num_heads"], cfg["nout"]
    B, C, H, W = img.shape
    hp, wp = H // p, W // p

    # Patch embedding (Conv2d k=p, stride=p) as one matmul over unfolded patches.
    patches = img.reshape(B, C, hp, p, wp, p)
    patches = patches.transpose(0, 2, 4, 1, 3, 5).reshape(B * hp * wp, C * p * p)
    emb = matmul_bias(patches, params["patch_w"], params["patch_b"])
    emb = emb.reshape(B, hp * wp, dim)

    cls = jnp.broadcast_to(params["cls"], (B, 1, dim))
    x = jnp.concatenate([cls, emb], axis=1)          # (B, T, dim)

    scale = 1.0 / math.sqrt(attn_dim)
    head_params = {"ln_g": params["head_ln_g"], "ln_b": params["head_ln_b"],
                   "w": params["head_w"], "b": params["head_b"]}

    layers = params["layers"]
    assert layers, "need at least one transformer layer"
    out_cls = None
    for li, layer in enumerate(layers):
        last = li == len(layers) - 1
        res = transformer_layer(
            x, layer, head_params if last else None,
            num_heads=num_heads, attn_dim=attn_dim, scale=scale,
            skew_impl=skew_impl, nout=nout, with_head=last)
        if last:
            x, out_cls = res
        else:
            x = res

    out = out_cls.reshape(B, nout)   # head(x)[:, 0] == head(x[:, 0])
    return out, None                 # return_attn=False -> alphas is None


# -------------------------------- parameters ---------------------------------

def init_params(key, *, n_channels, nout, patch_size, dim, attn_dim,
                mlp_dim, num_heads, num_layers):
    keys = iter(jax.random.split(key, 16 + 16 * num_layers))

    def nrm(shape, scale=0.02):
        return scale * jax.random.normal(next(keys), shape, dtype=jnp.float32)

    params = {
        "patch_w": nrm((n_channels * patch_size * patch_size, dim)),
        "patch_b": nrm((dim,)),
        "cls": nrm((1, 1, dim), scale=1.0),
        "layers": [],
        "head_ln_g": jnp.ones((dim,), jnp.float32),
        "head_ln_b": jnp.zeros((dim,), jnp.float32),
        "head_w": nrm((dim, nout)),
        "head_b": nrm((nout,)),
    }
    for _ in range(num_layers):
        params["layers"].append({
            # Per-head W_Q / W_K / W_V packed feature-major:
            #   rows = [Q_h0..Q_h{H-1} | K_h0.. | V_h0..], `attn_dim` rows each.
            "wqkv_t": nrm((3 * num_heads * attn_dim, dim)),
            "bqkv": nrm((3 * num_heads * attn_dim, 1)),
            # nn.Parameter(torch.randn(max_len, attn_dim)) per head.
            "rel": nrm((num_heads, MAX_LEN, attn_dim), scale=1.0),
            "wo": nrm((num_heads * attn_dim, dim)), "bo": nrm((dim,)),
            "ln_g": jnp.ones((dim,), jnp.float32),
            "ln_b": jnp.zeros((dim,), jnp.float32),
            "w1": nrm((dim, mlp_dim)), "b1": nrm((mlp_dim,)),
            "w2": nrm((mlp_dim, dim)), "b2": nrm((dim,)),
        })
    return params


def prepare_params(params, seq_len):
    """One-time (outside jit) kernel-ready prep: slice + transpose the relative
    embedding at the static sequence length (hoisted per the perf review) and
    drop the full-length table from what gets shipped to the kernels."""
    prepped = dict(params)
    layers = []
    for layer in params["layers"]:
        l = {k: v for k, v in layer.items() if k != "rel"}
        # E_rel = relative_emb[max_len - T:].T  -> (H, attn_dim, T)
        l["e_rel_t"] = jnp.transpose(
            layer["rel"][:, MAX_LEN - seq_len:, :], (0, 2, 1))
        layers.append(l)
    prepped["layers"] = layers
    return prepped


# ------------------------------------ main ------------------------------------

if __name__ == "__main__":
    cfg = dict(
        n_channels=4, nout=10, img_size=16, patch_size=4,
        dim=32, attn_dim=16, mlp_dim=64, num_heads=2, num_layers=2,
    )
    assert cfg["img_size"] % cfg["patch_size"] == 0
    seq_len = (cfg["img_size"] // cfg["patch_size"]) ** 2 + 1   # +1 CLS token

    key = jax.random.PRNGKey(0)
    pkey, ikey = jax.random.split(key)
    params = init_params(
        pkey,
        n_channels=cfg["n_channels"], nout=cfg["nout"],
        patch_size=cfg["patch_size"], dim=cfg["dim"],
        attn_dim=cfg["attn_dim"], mlp_dim=cfg["mlp_dim"],
        num_heads=cfg["num_heads"], num_layers=cfg["num_layers"],
    )
    params = prepare_params(params, seq_len)

    # Feature-probe (outside jit) which skew implementation lowers on this TPU
    # and matches the exact torch skew; this also serves as the skew unit test.
    skew_impl = choose_skew_impl(seq_len)

    B = 2
    img = jax.random.normal(
        ikey, (B, cfg["n_channels"], cfg["img_size"], cfg["img_size"]),
        dtype=jnp.float32)

    fwd = jax.jit(functools.partial(vit_forward, cfg=cfg, skew_impl=skew_impl))
    out, alphas = fwd(img, params)
    out = jax.block_until_ready(out)
    assert out.shape == (B, cfg["nout"])
    assert alphas is None
    print("KERNEL_OK")
</pallas_src>

<mosaic_0001>
module attributes {stable_mosaic.version = 11 : i64} {
  func.func @probe_kernel(%arg0: memref<17x17xf32, #tpu.memory_space<vmem>>, %arg1: memref<17x17xf32, #tpu.memory_space<vmem>>) attributes {dimension_semantics = [], scalar_prefetch = 0 : i64, scratch_operands = 0 : i64, tpu.core_type = #tpu.core_type<tc>} {
    %0 = tpu.iota {dimensions = array<i32: 0>} : vector<17x17xi32>
    %1 = tpu.iota {dimensions = array<i32: 1>} : vector<17x17xi32>
    %c0 = arith.constant 0 : index
    %c0_0 = arith.constant 0 : index
    %2 = vector.load %arg0[%c0, %c0_0] : memref<17x17xf32, #tpu.memory_space<vmem>>, vector<17x17xf32>
    %c1_i32 = arith.constant 1 : i32
    %3 = tpu.dynamic_rotate %2 by %c1_i32 dim 1 : vector<17x17xf32>, i32 -> vector<17x17xf32>
    %c1_i32_1 = arith.constant 1 : i32
    %4 = vector.broadcast %c1_i32_1 : i32 to vector<17x17xi32>
    %5 = arith.andi %0, %4 : vector<17x17xi32>
    %c0_i32 = arith.constant 0 : i32
    %6 = vector.broadcast %c0_i32 : i32 to vector<17x17xi32>
    %7 = arith.cmpi ne, %5, %6 : vector<17x17xi32>
    %c1_i32_2 = arith.constant 1 : i32
    %8 = tpu.dynamic_rotate %3 by %c1_i32_2 dim 1 : vector<17x17xf32>, i32 -> vector<17x17xf32>
    %9 = arith.select %7, %8, %3 : vector<17x17xi1>, vector<17x17xf32>
    %c2_i32 = arith.constant 2 : i32
    %10 = vector.broadcast %c2_i32 : i32 to vector<17x17xi32>
    %11 = arith.andi %0, %10 : vector<17x17xi32>
    %c0_i32_3 = arith.constant 0 : i32
    %12 = vector.broadcast %c0_i32_3 : i32 to vector<17x17xi32>
    %13 = arith.cmpi ne, %11, %12 : vector<17x17xi32>
    %c2_i32_4 = arith.constant 2 : i32
    %14 = tpu.dynamic_rotate %9 by %c2_i32_4 dim 1 : vector<17x17xf32>, i32 -> vector<17x17xf32>
    %15 = arith.select %13, %14, %9 : vector<17x17xi1>, vector<17x17xf32>
    %c4_i32 = arith.constant 4 : i32
    %16 = vector.broadcast %c4_i32 : i32 to vector<17x17xi32>
    %17 = arith.andi %0, %16 : vector<17x17xi32>
    %c0_i32_5 = arith.constant 0 : i32
    %18 = vector.broadcast %c0_i32_5 : i32 to vector<17x17xi32>
    %19 = arith.cmpi ne, %17, %18 : vector<17x17xi32>
    %c4_i32_6 = arith.constant 4 : i32
    %20 = tpu.dynamic_rotate %15 by %c4_i32_6 dim 1 : vector<17x17xf32>, i32 -> vector<17x17xf32>
    %21 = arith.select %19, %20, %15 : vector<17x17xi1>, vector<17x17xf32>
    %c8_i32 = arith.constant 8 : i32
    %22 = vector.broadcast %c8_i32 : i32 to vector<17x17xi32>
    %23 = arith.andi %0, %22 : vector<17x17xi32>
    %c0_i32_7 = arith.constant 0 : i32
    %24 = vector.broadcast %c0_i32_7 : i32 to vector<17x17xi32>
    %25 = arith.cmpi ne, %23, %24 : vector<17x17xi32>
    %c8_i32_8 = arith.constant 8 : i32
    %26 = tpu.dynamic_rotate %21 by %c8_i32_8 dim 1 : vector<17x17xf32>, i32 -> vector<17x17xf32>
    %27 = arith.select %25, %26, %21 : vector<17x17xi1>, vector<17x17xf32>
    %c16_i32 = arith.constant 16 : i32
    %28 = vector.broadcast %c16_i32 : i32 to vector<17x17xi32>
    %29 = arith.andi %0, %28 : vector<17x17xi32>
    %c0_i32_9 = arith.constant 0 : i32
    %30 = vector.broadcast %c0_i32_9 : i32 to vector<17x17xi32>
    %31 = arith.cmpi ne, %29, %30 : vector<17x17xi32>
    %c16_i32_10 = arith.constant 16 : i32
    %32 = tpu.dynamic_rotate %27 by %c16_i32_10 dim 1 : vector<17x17xf32>, i32 -> vector<17x17xf32>
    %33 = arith.select %31, %32, %27 : vector<17x17xi1>, vector<17x17xf32>
    %c16_i32_11 = arith.constant 16 : i32
    %34 = tpu.dynamic_rotate %33 by %c16_i32_11 dim 0 : vector<17x17xf32>, i32 -> vector<17x17xf32>
    %35 = arith.cmpi sle, %1, %0 : vector<17x17xi32>
    %c1_i32_12 = arith.constant 1 : i32
    %36 = vector.broadcast %c1_i32_12 : i32 to vector<17x17xi32>
    %37 = arith.addi %0, %36 : vector<17x17xi32>
    %38 = arith.cmpi eq, %1, %37 : vector<17x17xi32>
    %cst = arith.constant 0.000000e+00 : f32
    %39 = vector.broadcast %cst : f32 to vector<17x17xf32>
    %40 = arith.select %38, %39, %34 : vector<17x17xi1>, vector<17x17xf32>
    %41 = arith.select %35, %33, %40 : vector<17x17xi1>, vector<17x17xf32>
    %c0_13 = arith.constant 0 : index
    %c0_14 = arith.constant 0 : index
    %42 = vector.load %arg1[%c0_13, %c0_14] : memref<17x17xf32, #tpu.memory_space<vmem>>, vector<17x17xf32>
    tpu.vector_store %arg1[%c0_13, %c0_14], %41 {strides = array<i32>} : memref<17x17xf32, #tpu.memory_space<vmem>>, vector<17x17xf32>,
    return
  }
}

module attributes {stable_mosaic.version = 11 : i64} {
  func.func @_matmul_bias_kernel(%arg0: memref<32x64xf32, #tpu.memory_space<vmem>>, %arg1: memref<64x32xf32, #tpu.memory_space<vmem>>, %arg2: memref<1x32xf32, #tpu.memory_space<vmem>>, %arg3: memref<32x32xf32, #tpu.memory_space<vmem>>) attributes {dimension_semantics = [], scalar_prefetch = 0 : i64, scratch_operands = 0 : i64, tpu.core_type = #tpu.core_type<tc>} {
    %c0 = arith.constant 0 : index
    %c0_0 = arith.constant 0 : index
    %0 = vector.load %arg0[%c0, %c0_0] : memref<32x64xf32, #tpu.memory_space<vmem>>, vector<32x64xf32>
    %c0_1 = arith.constant 0 : index
    %c0_2 = arith.constant 0 : index
    %1 = vector.load %arg1[%c0_1, %c0_2] : memref<64x32xf32, #tpu.memory_space<vmem>>, vector<64x32xf32>
    %cst = arith.constant dense<0.000000e+00> : vector<32x32xf32>
    %2 = tpu.matmul %0, %1, %cst {dimension_numbers = #tpu.dot_dimension_numbers<[1], [0], [0], [1], [0, 0, 1, 1], [], []>} : vector<32x64xf32>, vector<64x32xf32>, vector<32x32xf32> -> vector<32x32xf32>
    %c0_3 = arith.constant 0 : index
    %c0_4 = arith.constant 0 : index
    %3 = vector.load %arg2[%c0_3, %c0_4] : memref<1x32xf32, #tpu.memory_space<vmem>>, vector<1x32xf32>
    %4 = vector.broadcast %3 : vector<1x32xf32> to vector<32x32xf32>
    %5 = arith.addf %2, %4 : vector<32x32xf32>
    %c0_5 = arith.constant 0 : index
    %c0_6 = arith.constant 0 : index
    %6 = vector.load %arg3[%c0_5, %c0_6] : memref<32x32xf32, #tpu.memory_space<vmem>>, vector<32x32xf32>
    tpu.vector_store %arg3[%c0_5, %c0_6], %5 {strides = array<i32>} : memref<32x32xf32, #tpu.memory_space<vmem>>, vector<32x32xf32>,
    return
  }
}

module attributes {stable_mosaic.version = 11 : i64} {
  func.func @kernel(%arg0: i32, %arg1: memref<1x17x32xf32, #tpu.memory_space<vmem>>, %arg2: memref<96x32xf32, #tpu.memory_space<vmem>>, %arg3: memref<96x1xf32, #tpu.memory_space<vmem>>, %arg4: memref<2x16x17xf32, #tpu.memory_space<vmem>>, %arg5: memref<32x32xf32, #tpu.memory_space<vmem>>, %arg6: memref<1x32xf32, #tpu.memory_space<vmem>>, %arg7: memref<1x32xf32, #tpu.memory_space<vmem>>, %arg8: memref<1x32xf32, #tpu.memory_space<vmem>>, %arg9: memref<32x64xf32, #tpu.memory_space<vmem>>, %arg10: memref<1x64xf32, #tpu.memory_space<vmem>>, %arg11: memref<64x32xf32, #tpu.memory_space<vmem>>, %arg12: memref<1x32xf32, #tpu.memory_space<vmem>>, %arg13: memref<1x32xf32, #tpu.memory_space<vmem>>, %arg14: memref<1x32xf32, #tpu.memory_space<vmem>>, %arg15: memref<32x10xf32, #tpu.memory_space<vmem>>, %arg16: memref<1x10xf32, #tpu.memory_space<vmem>>, %arg17: memref<1x17x32xf32, #tpu.memory_space<vmem>>, %arg18: memref<1x1x10xf32, #tpu.memory_space<vmem>>) attributes {dimension_semantics = [#tpu.dimension_semantics<parallel>], iteration_bounds = array<i64: 2>, scalar_prefetch = 0 : i64, scratch_operands = 0 : i64, tpu.core_type = #tpu.core_type<tc>, window_params = [{transform_indices = @transform_0, window_bounds = array<i64: 1, 17, 32>}, {pipeline_mode = #tpu.pipeline_mode<synchronous>, transform_indices = @transform_1, window_bounds = array<i64: 96, 32>}, {pipeline_mode = #tpu.pipeline_mode<synchronous>, transform_indices = @transform_2, window_bounds = array<i64: 96, 1>}, {pipeline_mode = #tpu.pipeline_mode<synchronous>, transform_indices = @transform_3, window_bounds = array<i64: 2, 16, 17>}, {pipeline_mode = #tpu.pipeline_mode<synchronous>, transform_indices = @transform_4, window_bounds = array<i64: 32, 32>}, {pipeline_mode = #tpu.pipeline_mode<synchronous>, transform_indices = @transform_5, window_bounds = array<i64: 1, 32>}, {pipeline_mode = #tpu.pipeline_mode<synchronous>, transform_indices = @transform_6, window_bounds = array<i64: 1, 32>}, {pipeline_mode = #tpu.pipeline_mode<synchronous>, transform_indices = @transform_7, window_bounds = array<i64: 1, 32>}, {pipeline_mode = #tpu.pipeline_mode<synchronous>, transform_indices = @transform_8, window_bounds = array<i64: 32, 64>}, {pipeline_mode = #tpu.pipeline_mode<synchronous>, transform_indices = @transform_9, window_bounds = array<i64: 1, 64>}, {pipeline_mode = #tpu.pipeline_mode<synchronous>, transform_indices = @transform_10, window_bounds = array<i64: 64, 32>}, {pipeline_mode = #tpu.pipeline_mode<synchronous>, transform_indices = @transform_11, window_bounds = array<i64: 1, 32>}, {pipeline_mode = #tpu.pipeline_mode<synchronous>, transform_indices = @transform_12, window_bounds = array<i64: 1, 32>}, {pipeline_mode = #tpu.pipeline_mode<synchronous>, transform_indices = @transform_13, window_bounds = array<i64: 1, 32>}, {pipeline_mode = #tpu.pipeline_mode<synchronous>, transform_indices = @transform_14, window_bounds = array<i64: 32, 10>}, {pipeline_mode = #tpu.pipeline_mode<synchronous>, transform_indices = @transform_15, window_bounds = array<i64: 1, 10>}, {transform_indices = @transform_16, window_bounds = array<i64: 1, 17, 32>}, {transform_indices = @transform_17, window_bounds = array<i64: 1, 1, 10>}]} {
    %c0 = arith.constant 0 : index
    %c0_0 = arith.constant 0 : index
    %c0_1 = arith.constant 0 : index
    %0 = vector.load %arg1[%c0, %c0_0, %c0_1] : memref<1x17x32xf32, #tpu.memory_space<vmem>>, vector<1x17x32xf32>
    %1 = vector.shape_cast %0 : vector<1x17x32xf32> to vector<17x32xf32>
    %c0_2 = arith.constant 0 : index
    %c0_3 = arith.constant 0 : index
    %2 = vector.load %arg2[%c0_2, %c0_3] : memref<96x32xf32, #tpu.memory_space<vmem>>, vector<96x32xf32>
    %cst = arith.constant dense<0.000000e+00> : vector<96x17xf32>
    %3 = tpu.matmul %2, %1, %cst {dimension_numbers = #tpu.dot_dimension_numbers<[1], [1], [0], [0], [0, 0, 1, 0], [], []>} : vector<96x32xf32>, vector<17x32xf32>, vector<96x17xf32> -> vector<96x17xf32>
    %c0_4 = arith.constant 0 : index
    %c0_5 = arith.constant 0 : index
    %4 = vector.load %arg3[%c0_4, %c0_5] : memref<96x1xf32, #tpu.memory_space<vmem>>, vector<96x1xf32>
    %5 = vector.broadcast %4 : vector<96x1xf32> to vector<96x17xf32>
    %6 = arith.addf %3, %5 : vector<96x17xf32>
    %7 = tpu.iota {dimensions = array<i32: 0>} : vector<17x17xi32>
    %8 = tpu.iota {dimensions = array<i32: 1>} : vector<17x17xi32>
    %c0_6 = arith.constant 0 : index
    %c0_7 = arith.constant 0 : index
    %9 = vector.load %arg6[%c0_6, %c0_7] : memref<1x32xf32, #tpu.memory_space<vmem>>, vector<1x32xf32>
    %10 = vector.extract_strided_slice %6 {offsets = [0, 0], sizes = [16, 17], strides = [1, 1]} : vector<96x17xf32> to vector<16x17xf32>
    %11 = vector.extract_strided_slice %6 {offsets = [32, 0], sizes = [16, 17], strides = [1, 1]} : vector<96x17xf32> to vector<16x17xf32>
    %12 = vector.extract_strided_slice %6 {offsets = [64, 0], sizes = [16, 17], strides = [1, 1]} : vector<96x17xf32> to vector<16x17xf32>
    %cst_8 = arith.constant dense<0.000000e+00> : vector<17x17xf32>
    %13 = tpu.matmul %10, %11, %cst_8 {dimension_numbers = #tpu.dot_dimension_numbers<[0], [0], [1], [1], [0, 1, 1, 1], [], []>} : vector<16x17xf32>, vector<16x17xf32>, vector<17x17xf32> -> vector<17x17xf32>
    %c0_9 = arith.constant 0 : index
    %c0_10 = arith.constant 0 : index
    %c0_11 = arith.constant 0 : index
    %14 = vector.load %arg4[%c0_9, %c0_10, %c0_11] : memref<2x16x17xf32, #tpu.memory_space<vmem>>, vector<1x16x17xf32>
    %15 = vector.shape_cast %14 : vector<1x16x17xf32> to vector<16x17xf32>
    %cst_12 = arith.constant dense<0.000000e+00> : vector<17x17xf32>
    %16 = tpu.matmul %10, %15, %cst_12 {dimension_numbers = #tpu.dot_dimension_numbers<[0], [0], [1], [1], [0, 1, 1, 1], [], []>} : vector<16x17xf32>, vector<16x17xf32>, vector<17x17xf32> -> vector<17x17xf32>
    %c1_i32 = arith.constant 1 : i32
    %17 = vector.broadcast %c1_i32 : i32 to vector<17x17xi32>
    %18 = arith.addi %7, %17 : vector<17x17xi32>
    %c17_i32 = arith.constant 17 : i32
    %19 = vector.broadcast %c17_i32 : i32 to vector<17x17xi32>
    %20 = arith.cmpi sge, %18, %19 : vector<17x17xi32>
    %c17_i32_13 = arith.constant 17 : i32
    %21 = vector.broadcast %c17_i32_13 : i32 to vector<17x17xi32>
    %22 = arith.subi %18, %21 : vector<17x17xi32>
    %23 = arith.select %20, %22, %18 : vector<17x17xi1>, vector<17x17xi32>
    %24 = arith.cmpi eq, %23, %8 : vector<17x17xi32>
    %25 = arith.extui %24 : vector<17x17xi1> to vector<17x17xi32>
    %26 = arith.sitofp %25 : vector<17x17xi32> to vector<17x17xf32>
    %cst_14 = arith.constant dense<0.000000e+00> : vector<17x17xf32>
    %27 = tpu.matmul %16, %26, %cst_14 {dimension_numbers = #tpu.dot_dimension_numbers<[1], [0], [0], [1], [0, 0, 1, 1], [], []>} : vector<17x17xf32>, vector<17x17xf32>, vector<17x17xf32> -> vector<17x17xf32>
    %c1_i32_15 = arith.constant 1 : i32
    %28 = vector.broadcast %c1_i32_15 : i32 to vector<17x17xi32>
    %29 = arith.andi %7, %28 : vector<17x17xi32>
    %c0_i32 = arith.constant 0 : i32
    %30 = vector.broadcast %c0_i32 : i32 to vector<17x17xi32>
    %31 = arith.cmpi ne, %29, %30 : vector<17x17xi32>
    %c1_i32_16 = arith.constant 1 : i32
    %32 = vector.broadcast %c1_i32_16 : i32 to vector<17x17xi32>
    %33 = arith.addi %7, %32 : vector<17x17xi32>
    %c17_i32_17 = arith.constant 17 : i32
    %34 = vector.broadcast %c17_i32_17 : i32 to vector<17x17xi32>
    %35 = arith.cmpi sge, %33, %34 : vector<17x17xi32>
    %c17_i32_18 = arith.constant 17 : i32
    %36 = vector.broadcast %c17_i32_18 : i32 to vector<17x17xi32>
    %37 = arith.subi %33, %36 : vector<17x17xi32>
    %38 = arith.select %35, %37, %33 : vector<17x17xi1>, vector<17x17xi32>
    %39 = arith.cmpi eq, %38, %8 : vector<17x17xi32>
    %40 = arith.extui %39 : vector<17x17xi1> to vector<17x17xi32>
    %41 = arith.sitofp %40 : vector<17x17xi32> to vector<17x17xf32>
    %cst_19 = arith.constant dense<0.000000e+00> : vector<17x17xf32>
    %42 = tpu.matmul %27, %41, %cst_19 {dimension_numbers = #tpu.dot_dimension_numbers<[1], [0], [0], [1], [0, 0, 1, 1], [], []>} : vector<17x17xf32>, vector<17x17xf32>, vector<17x17xf32> -> vector<17x17xf32>
    %43 = arith.select %31, %42, %27 : vector<17x17xi1>, vector<17x17xf32>
    %c2_i32 = arith.constant 2 : i32
    %44 = vector.broadcast %c2_i32 : i32 to vector<17x17xi32>
    %45 = arith.andi %7, %44 : vector<17x17xi32>
    %c0_i32_20 = arith.constant 0 : i32
    %46 = vector.broadcast %c0_i32_20 : i32 to vector<17x17xi32>
    %47 = arith.cmpi ne, %45, %46 : vector<17x17xi32>
    %c2_i32_21 = arith.constant 2 : i32
    %48 = vector.broadcast %c2_i32_21 : i32 to vector<17x17xi32>
    %49 = arith.addi %7, %48 : vector<17x17xi32>
    %c17_i32_22 = arith.constant 17 : i32
    %50 = vector.broadcast %c17_i32_22 : i32 to vector<17x17xi32>
    %51 = arith.cmpi sge, %49, %50 : vector<17x17xi32>
    %c17_i32_23 = arith.constant 17 : i32
    %52 = vector.broadcast %c17_i32_23 : i32 to vector<17x17xi32>
    %53 = arith.subi %49, %52 : vector<17x17xi32>
    %54 = arith.select %51, %53, %49 : vector<17x17xi1>, vector<17x17xi32>
    %55 = arith.cmpi eq, %54, %8 : vector<17x17xi32>
    %56 = arith.extui %55 : vector<17x17xi1> to vector<17x17xi32>
    %57 = arith.sitofp %56 : vector<17x17xi32> to vector<17x17xf32>
    %cst_24 = arith.constant dense<0.000000e+00> : vector<17x17xf32>
    %58 = tpu.matmul %43, %57, %cst_24 {dimension_numbers = #tpu.dot_dimension_numbers<[1], [0], [0], [1], [0, 0, 1, 1], [], []>} : vector<17x17xf32>, vector<17x17xf32>, vector<17x17xf32> -> vector<17x17xf32>
    %59 = arith.select %47, %58, %43 : vector<17x17xi1>, vector<17x17xf32>
    %c4_i32 = arith.constant 4 : i32
    %60 = vector.broadcast %c4_i32 : i32 to vector<17x17xi32>
    %61 = arith.andi %7, %60 : vector<17x17xi32>
    %c0_i32_25 = arith.constant 0 : i32
    %62 = vector.broadcast %c0_i32_25 : i32 to vector<17x17xi32>
    %63 = arith.cmpi ne, %61, %62 : vector<17x17xi32>
    %c4_i32_26 = arith.constant 4 : i32
    %64 = vector.broadcast %c4_i32_26 : i32 to vector<17x17xi32>
    %65 = arith.addi %7, %64 : vector<17x17xi32>
    %c17_i32_27 = arith.constant 17 : i32
    %66 = vector.broadcast %c17_i32_27 : i32 to vector<17x17xi32>
    %67 = arith.cmpi sge, %65, %66 : vector<17x17xi32>
    %c17_i32_28 = arith.constant 17 : i32
    %68 = vector.broadcast %c17_i32_28 : i32 to vector<17x17xi32>
    %69 = arith.subi %65, %68 : vector<17x17xi32>
    %70 = arith.select %67, %69, %65 : vector<17x17xi1>, vector<17x17xi32>
    %71 = arith.cmpi eq, %70, %8 : vector<17x17xi32>
    %72 = arith.extui %71 : vector<17x17xi1> to vector<17x17xi32>
    %73 = arith.sitofp %72 : vector<17x17xi32> to vector<17x17xf32>
    %cst_29 = arith.constant dense<0.000000e+00> : vector<17x17xf32>
    %74 = tpu.matmul %59, %73, %cst_29 {dimension_numbers = #tpu.dot_dimension_numbers<[1], [0], [0], [1], [0, 0, 1, 1], [], []>} : vector<17x17xf32>, vector<17x17xf32>, vector<17x17xf32> -> vector<17x17xf32>
    %75 = arith.select %63, %74, %59 : vector<17x17xi1>, vector<17x17xf32>
    %c8_i32 = arith.constant 8 : i32
    %76 = vector.broadcast %c8_i32 : i32 to vector<17x17xi32>
    %77 = arith.andi %7, %76 : vector<17x17xi32>
    %c0_i32_30 = arith.constant 0 : i32
    %78 = vector.broadcast %c0_i32_30 : i32 to vector<17x17xi32>
    %79 = arith.cmpi ne, %77, %78 : vector<17x17xi32>
    %c8_i32_31 = arith.constant 8 : i32
    %80 = vector.broadcast %c8_i32_31 : i32 to vector<17x17xi32>
    %81 = arith.addi %7, %80 : vector<17x17xi32>
    %c17_i32_32 = arith.constant 17 : i32
    %82 = vector.broadcast %c17_i32_32 : i32 to vector<17x17xi32>
    %83 = arith.cmpi sge, %81, %82 : vector<17x17xi32>
    %c17_i32_33 = arith.constant 17 : i32
    %84 = vector.broadcast %c17_i32_33 : i32 to vector<17x17xi32>
    %85 = arith.subi %81, %84 : vector<17x17xi32>
    %86 = arith.select %83, %85, %81 : vector<17x17xi1>, vector<17x17xi32>
    %87 = arith.cmpi eq, %86, %8 : vector<17x17xi32>
    %88 = arith.extui %87 : vector<17x17xi1> to vector<17x17xi32>
    %89 = arith.sitofp %88 : vector<17x17xi32> to vector<17x17xf32>
    %cst_34 = arith.constant dense<0.000000e+00> : vector<17x17xf32>
    %90 = tpu.matmul %75, %89, %cst_34 {dimension_numbers = #tpu.dot_dimension_numbers<[1], [0], [0], [1], [0, 0, 1, 1], [], []>} : vector<17x17xf32>, vector<17x17xf32>, vector<17x17xf32> -> vector<17x17xf32>
    %91 = arith.select %79, %90, %75 : vector<17x17xi1>, vector<17x17xf32>
    %c16_i32 = arith.constant 16 : i32
    %92 = vector.broadcast %c16_i32 : i32 to vector<17x17xi32>
    %93 = arith.andi %7, %92 : vector<17x17xi32>
    %c0_i32_35 = arith.constant 0 : i32
    %94 = vector.broadcast %c0_i32_35 : i32 to vector<17x17xi32>
    %95 = arith.cmpi ne, %93, %94 : vector<17x17xi32>
    %c16_i32_36 = arith.constant 16 : i32
    %96 = vector.broadcast %c16_i32_36 : i32 to vector<17x17xi32>
    %97 = arith.addi %7, %96 : vector<17x17xi32>
    %c17_i32_37 = arith.constant 17 : i32
    %98 = vector.broadcast %c17_i32_37 : i32 to vector<17x17xi32>
    %99 = arith.cmpi sge, %97, %98 : vector<17x17xi32>
    %c17_i32_38 = arith.constant 17 : i32
    %100 = vector.broadcast %c17_i32_38 : i32 to vector<17x17xi32>
    %101 = arith.subi %97, %100 : vector<17x17xi32>
    %102 = arith.select %99, %101, %97 : vector<17x17xi1>, vector<17x17xi32>
    %103 = arith.cmpi eq, %102, %8 : vector<17x17xi32>
    %104 = arith.extui %103 : vector<17x17xi1> to vector<17x17xi32>
    %105 = arith.sitofp %104 : vector<17x17xi32> to vector<17x17xf32>
    %cst_39 = arith.constant dense<0.000000e+00> : vector<17x17xf32>
    %106 = tpu.matmul %91, %105, %cst_39 {dimension_numbers = #tpu.dot_dimension_numbers<[1], [0], [0], [1], [0, 0, 1, 1], [], []>} : vector<17x17xf32>, vector<17x17xf32>, vector<17x17xf32> -> vector<17x17xf32>
    %107 = arith.select %95, %106, %91 : vector<17x17xi1>, vector<17x17xf32>
    %c1_i32_40 = arith.constant 1 : i32
    %108 = vector.broadcast %c1_i32_40 : i32 to vector<17x17xi32>
    %109 = arith.addi %7, %108 : vector<17x17xi32>
    %110 = arith.cmpi eq, %8, %109 : vector<17x17xi32>
    %111 = arith.extui %110 : vector<17x17xi1> to vector<17x17xi32>
    %112 = arith.sitofp %111 : vector<17x17xi32> to vector<17x17xf32>
    %cst_41 = arith.constant dense<0.000000e+00> : vector<17x17xf32>
    %113 = tpu.matmul %112, %107, %cst_41 {dimension_numbers = #tpu.dot_dimension_numbers<[1], [0], [0], [1], [0, 0, 1, 1], [], []>} : vector<17x17xf32>, vector<17x17xf32>, vector<17x17xf32> -> vector<17x17xf32>
    %114 = arith.cmpi sle, %8, %7 : vector<17x17xi32>
    %c1_i32_42 = arith.constant 1 : i32
    %115 = vector.broadcast %c1_i32_42 : i32 to vector<17x17xi32>
    %116 = arith.addi %7, %115 : vector<17x17xi32>
    %117 = arith.cmpi eq, %8, %116 : vector<17x17xi32>
    %cst_43 = arith.constant 0.000000e+00 : f32
    %118 = vector.broadcast %cst_43 : f32 to vector<17x17xf32>
    %119 = arith.select %117, %118, %113 : vector<17x17xi1>, vector<17x17xf32>
    %120 = arith.select %114, %107, %119 : vector<17x17xi1>, vector<17x17xf32>
    %121 = arith.addf %13, %120 : vector<17x17xf32>
    %cst_44 = arith.constant 2.500000e-01 : f32
    %122 = vector.broadcast %cst_44 : f32 to vector<17x17xf32>
    %123 = arith.mulf %121, %122 : vector<17x17xf32>
    %cst_45 = arith.constant dense<0xFF800000> : vector<17xf32>
    %124 = vector.multi_reduction <maximumf>, %123, %cst_45 [1] : vector<17x17xf32> to vector<17xf32>
    %125 = vector.shape_cast %124 : vector<17xf32> to vector<17x1xf32>
    %126 = vector.broadcast %125 : vector<17x1xf32> to vector<17x17xf32>
    %127 = arith.subf %123, %126 : vector<17x17xf32>
    %128 = math.exp %127 : vector<17x17xf32>
    %cst_46 = arith.constant dense<0.000000e+00> : vector<17xf32>
    %129 = vector.multi_reduction <add>, %128, %cst_46 [1] : vector<17x17xf32> to vector<17xf32>
    %130 = vector.shape_cast %129 : vector<17xf32> to vector<17x1xf32>
    %131 = vector.broadcast %130 : vector<17x1xf32> to vector<17x17xf32>
    %132 = arith.divf %128, %131 : vector<17x17xf32>
    %cst_47 = arith.constant dense<0.000000e+00> : vector<17x16xf32>
    %133 = tpu.matmul %132, %12, %cst_47 {dimension_numbers = #tpu.dot_dimension_numbers<[1], [1], [0], [0], [0, 0, 1, 0], [], []>} : vector<17x17xf32>, vector<16x17xf32>, vector<17x16xf32> -> vector<17x16xf32>
    %c0_48 = arith.constant 0 : index
    %c0_49 = arith.constant 0 : index
    %134 = vector.load %arg5[%c0_48, %c0_49] : memref<32x32xf32, #tpu.memory_space<vmem>>, vector<16x32xf32>
    %cst_50 = arith.constant dense<0.000000e+00> : vector<17x32xf32>
    %135 = tpu.matmul %133, %134, %cst_50 {dimension_numbers = #tpu.dot_dimension_numbers<[1], [0], [0], [1], [0, 0, 1, 1], [], []>} : vector<17x16xf32>, vector<16x32xf32>, vector<17x32xf32> -> vector<17x32xf32>
    %136 = vector.broadcast %9 : vector<1x32xf32> to vector<17x32xf32>
    %137 = arith.addf %136, %135 : vector<17x32xf32>
    %138 = vector.extract_strided_slice %6 {offsets = [16, 0], sizes = [16, 17], strides = [1, 1]} : vector<96x17xf32> to vector<16x17xf32>
    %139 = vector.extract_strided_slice %6 {offsets = [48, 0], sizes = [16, 17], strides = [1, 1]} : vector<96x17xf32> to vector<16x17xf32>
    %140 = vector.extract_strided_slice %6 {offsets = [80, 0], sizes = [16, 17], strides = [1, 1]} : vector<96x17xf32> to vector<16x17xf32>
    %cst_51 = arith.constant dense<0.000000e+00> : vector<17x17xf32>
    %141 = tpu.matmul %138, %139, %cst_51 {dimension_numbers = #tpu.dot_dimension_numbers<[0], [0], [1], [1], [0, 1, 1, 1], [], []>} : vector<16x17xf32>, vector<16x17xf32>, vector<17x17xf32> -> vector<17x17xf32>
    %c1 = arith.constant 1 : index
    %c0_52 = arith.constant 0 : index
    %c0_53 = arith.constant 0 : index
    %142 = vector.load %arg4[%c1, %c0_52, %c0_53] : memref<2x16x17xf32, #tpu.memory_space<vmem>>, vector<1x16x17xf32>
    %143 = vector.shape_cast %142 : vector<1x16x17xf32> to vector<16x17xf32>
    %cst_54 = arith.constant dense<0.000000e+00> : vector<17x17xf32>
    %144 = tpu.matmul %138, %143, %cst_54 {dimension_numbers = #tpu.dot_dimension_numbers<[0], [0], [1], [1], [0, 1, 1, 1], [], []>} : vector<16x17xf32>, vector<16x17xf32>, vector<17x17xf32> -> vector<17x17xf32>
    %c1_i32_55 = arith.constant 1 : i32
    %145 = vector.broadcast %c1_i32_55 : i32 to vector<17x17xi32>
    %146 = arith.addi %7, %145 : vector<17x17xi32>
    %c17_i32_56 = arith.constant 17 : i32
    %147 = vector.broadcast %c17_i32_56 : i32 to vector<17x17xi32>
    %148 = arith.cmpi sge, %146, %147 : vector<17x17xi32>
    %c17_i32_57 = arith.constant 17 : i32
    %149 = vector.broadcast %c17_i32_57 : i32 to vector<17x17xi32>
    %150 = arith.subi %146, %149 : vector<17x17xi32>
    %151 = arith.select %148, %150, %146 : vector<17x17xi1>, vector<17x17xi32>
    %152 = arith.cmpi eq, %151, %8 : vector<17x17xi32>
    %153 = arith.extui %152 : vector<17x17xi1> to vector<17x17xi32>
    %154 = arith.sitofp %153 : vector<17x17xi32> to vector<17x17xf32>
    %cst_58 = arith.constant dense<0.000000e+00> : vector<17x17xf32>
    %155 = tpu.matmul %144, %154, %cst_58 {dimension_numbers = #tpu.dot_dimension_numbers<[1], [0], [0], [1], [0, 0, 1, 1], [], []>} : vector<17x17xf32>, vector<17x17xf32>, vector<17x17xf32> -> vector<17x17xf32>
    %c1_i32_59 = arith.constant 1 : i32
    %156 = vector.broadcast %c1_i32_59 : i32 to vector<17x17xi32>
    %157 = arith.andi %7, %156 : vector<17x17xi32>
    %c0_i32_60 = arith.constant 0 : i32
    %158 = vector.broadcast %c0_i32_60 : i32 to vector<17x17xi32>
    %159 = arith.cmpi ne, %157, %158 : vector<17x17xi32>
    %c1_i32_61 = arith.constant 1 : i32
    %160 = vector.broadcast %c1_i32_61 : i32 to vector<17x17xi32>
    %161 = arith.addi %7, %160 : vector<17x17xi32>
    %c17_i32_62 = arith.constant 17 : i32
    %162 = vector.broadcast %c17_i32_62 : i32 to vector<17x17xi32>
    %163 = arith.cmpi sge, %161, %162 : vector<17x17xi32>
    %c17_i32_63 = arith.constant 17 : i32
    %164 = vector.broadcast %c17_i32_63 : i32 to vector<17x17xi32>
    %165 = arith.subi %161, %164 : vector<17x17xi32>
    %166 = arith.select %163, %165, %161 : vector<17x17xi1>, vector<17x17xi32>
    %167 = arith.cmpi eq, %166, %8 : vector<17x17xi32>
    %168 = arith.extui %167 : vector<17x17xi1> to vector<17x17xi32>
    %169 = arith.sitofp %168 : vector<17x17xi32> to vector<17x17xf32>
    %cst_64 = arith.constant dense<0.000000e+00> : vector<17x17xf32>
    %170 = tpu.matmul %155, %169, %cst_64 {dimension_numbers = #tpu.dot_dimension_numbers<[1], [0], [0], [1], [0, 0, 1, 1], [], []>} : vector<17x17xf32>, vector<17x17xf32>, vector<17x17xf32> -> vector<17x17xf32>
    %171 = arith.select %159, %170, %155 : vector<17x17xi1>, vector<17x17xf32>
    %c2_i32_65 = arith.constant 2 : i32
    %172 = vector.broadcast %c2_i32_65 : i32 to vector<17x17xi32>
    %173 = arith.andi %7, %172 : vector<17x17xi32>
    %c0_i32_66 = arith.constant 0 : i32
    %174 = vector.broadcast %c0_i32_66 : i32 to vector<17x17xi32>
    %175 = arith.cmpi ne, %173, %174 : vector<17x17xi32>
    %c2_i32_67 = arith.constant 2 : i32
    %176 = vector.broadcast %c2_i32_67 : i32 to vector<17x17xi32>
    %177 = arith.addi %7, %176 : vector<17x17xi32>
    %c17_i32_68 = arith.constant 17 : i32
    %178 = vector.broadcast %c17_i32_68 : i32 to vector<17x17xi32>
    %179 = arith.cmpi sge, %177, %178 : vector<17x17xi32>
    %c17_i32_69 = arith.constant 17 : i32
    %180 = vector.broadcast %c17_i32_69 : i32 to vector<17x17xi32>
    %181 = arith.subi %177, %180 : vector<17x17xi32>
    %182 = arith.select %179, %181, %177 : vector<17x17xi1>, vector<17x17xi32>
    %183 = arith.cmpi eq, %182, %8 : vector<17x17xi32>
    %184 = arith.extui %183 : vector<17x17xi1> to vector<17x17xi32>
    %185 = arith.sitofp %184 : vector<17x17xi32> to vector<17x17xf32>
    %cst_70 = arith.constant dense<0.000000e+00> : vector<17x17xf32>
    %186 = tpu.matmul %171, %185, %cst_70 {dimension_numbers = #tpu.dot_dimension_numbers<[1], [0], [0], [1], [0, 0, 1, 1], [], []>} : vector<17x17xf32>, vector<17x17xf32>, vector<17x17xf32> -> vector<17x17xf32>
    %187 = arith.select %175, %186, %171 : vector<17x17xi1>, vector<17x17xf32>
    %c4_i32_71 = arith.constant 4 : i32
    %188 = vector.broadcast %c4_i32_71 : i32 to vector<17x17xi32>
    %189 = arith.andi %7, %188 : vector<17x17xi32>
    %c0_i32_72 = arith.constant 0 : i32
    %190 = vector.broadcast %c0_i32_72 : i32 to vector<17x17xi32>
    %191 = arith.cmpi ne, %189, %190 : vector<17x17xi32>
    %c4_i32_73 = arith.constant 4 : i32
    %192 = vector.broadcast %c4_i32_73 : i32 to vector<17x17xi32>
    %193 = arith.addi %7, %192 : vector<17x17xi32>
    %c17_i32_74 = arith.constant 17 : i32
    %194 = vector.broadcast %c17_i32_74 : i32 to vector<17x17xi32>
    %195 = arith.cmpi sge, %193, %194 : vector<17x17xi32>
    %c17_i32_75 = arith.constant 17 : i32
    %196 = vector.broadcast %c17_i32_75 : i32 to vector<17x17xi32>
    %197 = arith.subi %193, %196 : vector<17x17xi32>
    %198 = arith.select %195, %197, %193 : vector<17x17xi1>, vector<17x17xi32>
    %199 = arith.cmpi eq, %198, %8 : vector<17x17xi32>
    %200 = arith.extui %199 : vector<17x17xi1> to vector<17x17xi32>
    %201 = arith.sitofp %200 : vector<17x17xi32> to vector<17x17xf32>
    %cst_76 = arith.constant dense<0.000000e+00> : vector<17x17xf32>
    %202 = tpu.matmul %187, %201, %cst_76 {dimension_numbers = #tpu.dot_dimension_numbers<[1], [0], [0], [1], [0, 0, 1, 1], [], []>} : vector<17x17xf32>, vector<17x17xf32>, vector<17x17xf32> -> vector<17x17xf32>
    %203 = arith.select %191, %202, %187 : vector<17x17xi1>, vector<17x17xf32>
    %c8_i32_77 = arith.constant 8 : i32
    %204 = vector.broadcast %c8_i32_77 : i32 to vector<17x17xi32>
    %205 = arith.andi %7, %204 : vector<17x17xi32>
    %c0_i32_78 = arith.constant 0 : i32
    %206 = vector.broadcast %c0_i32_78 : i32 to vector<17x17xi32>
    %207 = arith.cmpi ne, %205, %206 : vector<17x17xi32>
    %c8_i32_79 = arith.constant 8 : i32
    %208 = vector.broadcast %c8_i32_79 : i32 to vector<17x17xi32>
    %209 = arith.addi %7, %208 : vector<17x17xi32>
    %c17_i32_80 = arith.constant 17 : i32
    %210 = vector.broadcast %c17_i32_80 : i32 to vector<17x17xi32>
    %211 = arith.cmpi sge, %209, %210 : vector<17x17xi32>
    %c17_i32_81 = arith.constant 17 : i32
    %212 = vector.broadcast %c17_i32_81 : i32 to vector<17x17xi32>
    %213 = arith.subi %209, %212 : vector<17x17xi32>
    %214 = arith.select %211, %213, %209 : vector<17x17xi1>, vector<17x17xi32>
    %215 = arith.cmpi eq, %214, %8 : vector<17x17xi32>
    %216 = arith.extui %215 : vector<17x17xi1> to vector<17x17xi32>
    %217 = arith.sitofp %216 : vector<17x17xi32> to vector<17x17xf32>
    %cst_82 = arith.constant dense<0.000000e+00> : vector<17x17xf32>
    %218 = tpu.matmul %203, %217, %cst_82 {dimension_numbers = #tpu.dot_dimension_numbers<[1], [0], [0], [1], [0, 0, 1, 1], [], []>} : vector<17x17xf32>, vector<17x17xf32>, vector<17x17xf32> -> vector<17x17xf32>
    %219 = arith.select %207, %218, %203 : vector<17x17xi1>, vector<17x17xf32>
    %c16_i32_83 = arith.constant 16 : i32
    %220 = vector.broadcast %c16_i32_83 : i32 to vector<17x17xi32>
    %221 = arith.andi %7, %220 : vector<17x17xi32>
    %c0_i32_84 = arith.constant 0 : i32
    %222 = vector.broadcast %c0_i32_84 : i32 to vector<17x17xi32>
    %223 = arith.cmpi ne, %221, %222 : vector<17x17xi32>
    %c16_i32_85 = arith.constant 16 : i32
    %224 = vector.broadcast %c16_i32_85 : i32 to vector<17x17xi32>
    %225 = arith.addi %7, %224 : vector<17x17xi32>
    %c17_i32_86 = arith.constant 17 : i32
    %226 = vector.broadcast %c17_i32_86 : i32 to vector<17x17xi32>
    %227 = arith.cmpi sge, %225, %226 : vector<17x17xi32>
    %c17_i32_87 = arith.constant 17 : i32
    %228 = vector.broadcast %c17_i32_87 : i32 to vector<17x17xi32>
    %229 = arith.subi %225, %228 : vector<17x17xi32>
    %230 = arith.select %227, %229, %225 : vector<17x17xi1>, vector<17x17xi32>
    %231 = arith.cmpi eq, %230, %8 : vector<17x17xi32>
    %232 = arith.extui %231 : vector<17x17xi1> to vector<17x17xi32>
    %233 = arith.sitofp %232 : vector<17x17xi32> to vector<17x17xf32>
    %cst_88 = arith.constant dense<0.000000e+00> : vector<17x17xf32>
    %234 = tpu.matmul %219, %233, %cst_88 {dimension_numbers = #tpu.dot_dimension_numbers<[1], [0], [0], [1], [0, 0, 1, 1], [], []>} : vector<17x17xf32>, vector<17x17xf32>, vector<17x17xf32> -> vector<17x17xf32>
    %235 = arith.select %223, %234, %219 : vector<17x17xi1>, vector<17x17xf32>
    %c1_i32_89 = arith.constant 1 : i32
    %236 = vector.broadcast %c1_i32_89 : i32 to vector<17x17xi32>
    %237 = arith.addi %7, %236 : vector<17x17xi32>
    %238 = arith.cmpi eq, %8, %237 : vector<17x17xi32>
    %239 = arith.extui %238 : vector<17x17xi1> to vector<17x17xi32>
    %240 = arith.sitofp %239 : vector<17x17xi32> to vector<17x17xf32>
    %cst_90 = arith.constant dense<0.000000e+00> : vector<17x17xf32>
    %241 = tpu.matmul %240, %235, %cst_90 {dimension_numbers = #tpu.dot_dimension_numbers<[1], [0], [0], [1], [0, 0, 1, 1], [], []>} : vector<17x17xf32>, vector<17x17xf32>, vector<17x17xf32> -> vector<17x17xf32>
    %242 = arith.cmpi sle, %8, %7 : vector<17x17xi32>
    %c1_i32_91 = arith.constant 1 : i32
    %243 = vector.broadcast %c1_i32_91 : i32 to vector<17x17xi32>
    %244 = arith.addi %7, %243 : vector<17x17xi32>
    %245 = arith.cmpi eq, %8, %244 : vector<17x17xi32>
    %cst_92 = arith.constant 0.000000e+00 : f32
    %246 = vector.broadcast %cst_92 : f32 to vector<17x17xf32>
    %247 = arith.select %245, %246, %241 : vector<17x17xi1>, vector<17x17xf32>
    %248 = arith.select %242, %235, %247 : vector<17x17xi1>, vector<17x17xf32>
    %249 = arith.addf %141, %248 : vector<17x17xf32>
    %cst_93 = arith.constant 2.500000e-01 : f32
    %250 = vector.broadcast %cst_93 : f32 to vector<17x17xf32>
    %251 = arith.mulf %249, %250 : vector<17x17xf32>
    %cst_94 = arith.constant dense<0xFF800000> : vector<17xf32>
    %252 = vector.multi_reduction <maximumf>, %251, %cst_94 [1] : vector<17x17xf32> to vector<17xf32>
    %253 = vector.shape_cast %252 : vector<17xf32> to vector<17x1xf32>
    %254 = vector.broadcast %253 : vector<17x1xf32> to vector<17x17xf32>
    %255 = arith.subf %251, %254 : vector<17x17xf32>
    %256 = math.exp %255 : vector<17x17xf32>
    %cst_95 = arith.constant dense<0.000000e+00> : vector<17xf32>
    %257 = vector.multi_reduction <add>, %256, %cst_95 [1] : vector<17x17xf32> to vector<17xf32>
    %258 = vector.shape_cast %257 : vector<17xf32> to vector<17x1xf32>
    %259 = vector.broadcast %258 : vector<17x1xf32> to vector<17x17xf32>
    %260 = arith.divf %256, %259 : vector<17x17xf32>
    %cst_96 = arith.constant dense<0.000000e+00> : vector<17x16xf32>
    %261 = tpu.matmul %260, %140, %cst_96 {dimension_numbers = #tpu.dot_dimension_numbers<[1], [1], [0], [0], [0, 0, 1, 0], [], []>} : vector<17x17xf32>, vector<16x17xf32>, vector<17x16xf32> -> vector<17x16xf32>
    %c16 = arith.constant 16 : index
    %c0_97 = arith.constant 0 : index
    %262 = vector.load %arg5[%c16, %c0_97] : memref<32x32xf32, #tpu.memory_space<vmem>>, vector<16x32xf32>
    %cst_98 = arith.constant dense<0.000000e+00> : vector<17x32xf32>
    %263 = tpu.matmul %261, %262, %cst_98 {dimension_numbers = #tpu.dot_dimension_numbers<[1], [0], [0], [1], [0, 0, 1, 1], [], []>} : vector<17x16xf32>, vector<16x32xf32>, vector<17x32xf32> -> vector<17x32xf32>
    %264 = arith.addf %137, %263 : vector<17x32xf32>
    %265 = arith.addf %1, %264 : vector<17x32xf32>
    %cst_99 = arith.constant dense<0.000000e+00> : vector<17xf32>
    %266 = vector.multi_reduction <add>, %265, %cst_99 [1] : vector<17x32xf32> to vector<17xf32>
    %267 = vector.shape_cast %266 : vector<17xf32> to vector<17x1xf32>
    %cst_100 = arith.constant 3.200000e+01 : f32
    %268 = vector.broadcast %cst_100 : f32 to vector<17x1xf32>
    %269 = arith.divf %267, %268 : vector<17x1xf32>
    %270 = vector.broadcast %269 : vector<17x1xf32> to vector<17x32xf32>
    %271 = arith.subf %265, %270 : vector<17x32xf32>
    %272 = arith.mulf %271, %271 : vector<17x32xf32>
    %cst_101 = arith.constant dense<0.000000e+00> : vector<17xf32>
    %273 = vector.multi_reduction <add>, %272, %cst_101 [1] : vector<17x32xf32> to vector<17xf32>
    %274 = vector.shape_cast %273 : vector<17xf32> to vector<17x1xf32>
    %cst_102 = arith.constant 3.200000e+01 : f32
    %275 = vector.broadcast %cst_102 : f32 to vector<17x1xf32>
    %276 = arith.divf %274, %275 : vector<17x1xf32>
    %277 = vector.broadcast %269 : vector<17x1xf32> to vector<17x32xf32>
    %278 = arith.subf %265, %277 : vector<17x32xf32>
    %cst_103 = arith.constant 9.99999974E-6 : f32
    %279 = vector.broadcast %cst_103 : f32 to vector<17x1xf32>
    %280 = arith.addf %276, %279 : vector<17x1xf32>
    %281 = math.rsqrt %280 : vector<17x1xf32>
    %282 = vector.broadcast %281 : vector<17x1xf32> to vector<17x32xf32>
    %283 = arith.mulf %278, %282 : vector<17x32xf32>
    %c0_104 = arith.constant 0 : index
    %c0_105 = arith.constant 0 : index
    %284 = vector.load %arg7[%c0_104, %c0_105] : memref<1x32xf32, #tpu.memory_space<vmem>>, vector<1x32xf32>
    %285 = vector.broadcast %284 : vector<1x32xf32> to vector<17x32xf32>
    %286 = arith.mulf %283, %285 : vector<17x32xf32>
    %c0_106 = arith.constant 0 : index
    %c0_107 = arith.constant 0 : index
    %287 = vector.load %arg8[%c0_106, %c0_107] : memref<1x32xf32, #tpu.memory_space<vmem>>, vector<1x32xf32>
    %288 = vector.broadcast %287 : vector<1x32xf32> to vector<17x32xf32>
    %289 = arith.addf %286, %288 : vector<17x32xf32>
    %c0_108 = arith.constant 0 : index
    %c0_109 = arith.constant 0 : index
    %290 = vector.load %arg9[%c0_108, %c0_109] : memref<32x64xf32, #tpu.memory_space<vmem>>, vector<32x64xf32>
    %cst_110 = arith.constant dense<0.000000e+00> : vector<17x64xf32>
    %291 = tpu.matmul %289, %290, %cst_110 {dimension_numbers = #tpu.dot_dimension_numbers<[1], [0], [0], [1], [0, 0, 1, 1], [], []>} : vector<17x32xf32>, vector<32x64xf32>, vector<17x64xf32> -> vector<17x64xf32>
    %c0_111 = arith.constant 0 : index
    %c0_112 = arith.constant 0 : index
    %292 = vector.load %arg10[%c0_111, %c0_112] : memref<1x64xf32, #tpu.memory_space<vmem>>, vector<1x64xf32>
    %293 = vector.broadcast %292 : vector<1x64xf32> to vector<17x64xf32>
    %294 = arith.addf %291, %293 : vector<17x64xf32>
    %cst_113 = arith.constant 5.000000e-01 : f32
    %295 = vector.broadcast %cst_113 : f32 to vector<17x64xf32>
    %296 = arith.mulf %295, %294 : vector<17x64xf32>
    %cst_114 = arith.constant 0.707106769 : f32
    %297 = vector.broadcast %cst_114 : f32 to vector<17x64xf32>
    %298 = arith.mulf %294, %297 : vector<17x64xf32>
    %299 = math.erf %298 : vector<17x64xf32>
    %cst_115 = arith.constant 1.000000e+00 : f32
    %300 = vector.broadcast %cst_115 : f32 to vector<17x64xf32>
    %301 = arith.addf %300, %299 : vector<17x64xf32>
    %302 = arith.mulf %296, %301 : vector<17x64xf32>
    %c0_116 = arith.constant 0 : index
    %c0_117 = arith.constant 0 : index
    %303 = vector.load %arg11[%c0_116, %c0_117] : memref<64x32xf32, #tpu.memory_space<vmem>>, vector<64x32xf32>
    %cst_118 = arith.constant dense<0.000000e+00> : vector<17x32xf32>
    %304 = tpu.matmul %302, %303, %cst_118 {dimension_numbers = #tpu.dot_dimension_numbers<[1], [0], [0], [1], [0, 0, 1, 1], [], []>} : vector<17x64xf32>, vector<64x32xf32>, vector<17x32xf32> -> vector<17x32xf32>
    %c0_119 = arith.constant 0 : index
    %c0_120 = arith.constant 0 : index
    %305 = vector.load %arg12[%c0_119, %c0_120] : memref<1x32xf32, #tpu.memory_space<vmem>>, vector<1x32xf32>
    %306 = vector.broadcast %305 : vector<1x32xf32> to vector<17x32xf32>
    %307 = arith.addf %304, %306 : vector<17x32xf32>
    %308 = arith.addf %265, %307 : vector<17x32xf32>
    %c0_121 = arith.constant 0 : index
    %c0_122 = arith.constant 0 : index
    %c0_123 = arith.constant 0 : index
    %309 = vector.load %arg17[%c0_121, %c0_122, %c0_123] : memref<1x17x32xf32, #tpu.memory_space<vmem>>, vector<1x17x32xf32>
    %310 = vector.shape_cast %309 : vector<1x17x32xf32> to vector<17x32xf32>
    %311 = vector.shape_cast %308 : vector<17x32xf32> to vector<1x17x32xf32>
    tpu.vector_store %arg17[%c0_121, %c0_122, %c0_123], %311 {strides = array<i32>} : memref<1x17x32xf32, #tpu.memory_space<vmem>>, vector<1x17x32xf32>,
    %312 = vector.extract_strided_slice %308 {offsets = [0, 0], sizes = [1, 32], strides = [1, 1]} : vector<17x32xf32> to vector<1x32xf32>
    %cst_124 = arith.constant dense<0.000000e+00> : vector<1xf32>
    %313 = vector.multi_reduction <add>, %312, %cst_124 [1] : vector<1x32xf32> to vector<1xf32>
    %314 = vector.shape_cast %313 : vector<1xf32> to vector<1x1xf32>
    %cst_125 = arith.constant 3.200000e+01 : f32
    %315 = vector.broadcast %cst_125 : f32 to vector<1x1xf32>
    %316 = arith.divf %314, %315 : vector<1x1xf32>
    %317 = vector.broadcast %316 : vector<1x1xf32> to vector<1x32xf32>
    %318 = arith.subf %312, %317 : vector<1x32xf32>
    %319 = arith.mulf %318, %318 : vector<1x32xf32>
    %cst_126 = arith.constant dense<0.000000e+00> : vector<1xf32>
    %320 = vector.multi_reduction <add>, %319, %cst_126 [1] : vector<1x32xf32> to vector<1xf32>
    %321 = vector.shape_cast %320 : vector<1xf32> to vector<1x1xf32>
    %cst_127 = arith.constant 3.200000e+01 : f32
    %322 = vector.broadcast %cst_127 : f32 to vector<1x1xf32>
    %323 = arith.divf %321, %322 : vector<1x1xf32>
    %324 = vector.broadcast %316 : vector<1x1xf32> to vector<1x32xf32>
    %325 = arith.subf %312, %324 : vector<1x32xf32>
    %cst_128 = arith.constant 9.99999974E-6 : f32
    %326 = vector.broadcast %cst_128 : f32 to vector<1x1xf32>
    %327 = arith.addf %323, %326 : vector<1x1xf32>
    %328 = math.rsqrt %327 : vector<1x1xf32>
    %329 = vector.broadcast %328 : vector<1x1xf32> to vector<1x32xf32>
    %330 = arith.mulf %325, %329 : vector<1x32xf32>
    %c0_129 = arith.constant 0 : index
    %c0_130 = arith.constant 0 : index
    %331 = vector.load %arg13[%c0_129, %c0_130] : memref<1x32xf32, #tpu.memory_space<vmem>>, vector<1x32xf32>
    %332 = arith.mulf %330, %331 : vector<1x32xf32>
    %c0_131 = arith.constant 0 : index
    %c0_132 = arith.constant 0 : index
    %333 = vector.load %arg14[%c0_131, %c0_132] : memref<1x32xf32, #tpu.memory_space<vmem>>, vector<1x32xf32>
    %334 = arith.addf %332, %333 : vector<1x32xf32>
    %c0_133 = arith.constant 0 : index
    %c0_134 = arith.constant 0 : index
    %335 = vector.load %arg15[%c0_133, %c0_134] : memref<32x10xf32, #tpu.memory_space<vmem>>, vector<32x10xf32>
    %cst_135 = arith.constant dense<0.000000e+00> : vector<1x10xf32>
    %336 = tpu.matmul %334, %335, %cst_135 {dimension_numbers = #tpu.dot_dimension_numbers<[1], [0], [0], [1], [0, 0, 1, 1], [], []>} : vector<1x32xf32>, vector<32x10xf32>, vector<1x10xf32> -> vector<1x10xf32>
    %c0_136 = arith.constant 0 : index
    %c0_137 = arith.constant 0 : index
    %337 = vector.load %arg16[%c0_136, %c0_137] : memref<1x10xf32, #tpu.memory_space<vmem>>, vector<1x10xf32>
    %338 = arith.addf %336, %337 : vector<1x10xf32>
    %c0_138 = arith.constant 0 : index
    %c0_139 = arith.constant 0 : index
    %c0_140 = arith.constant 0 : index
    %339 = vector.load %arg18[%c0_138, %c0_139, %c0_140] : memref<1x1x10xf32, #tpu.memory_space<vmem>>, vector<1x1x10xf32>
    %340 = vector.shape_cast %339 : vector<1x1x10xf32> to vector<1x10xf32>
    %341 = vector.shape_cast %338 : vector<1x10xf32> to vector<1x1x10xf32>
    tpu.vector_store %arg18[%c0_138, %c0_139, %c0_140], %341 {strides = array<i32>} : memref<1x1x10xf32, #tpu.memory_space<vmem>>, vector<1x1x10xf32>,
    return
  }
  func.func @transform_0(%arg0: i32) -> (i32, i32, i32) {
    %c0_i32 = arith.constant 0 : i32
    %c0_i32_0 = arith.constant 0 : i32
    %c0_i32_1 = arith.constant 0 : i32
    return %arg0, %c0_i32, %c0_i32_0 : i32, i32, i32
  }
  func.func @transform_1(%arg0: i32) -> (i32, i32) {
    %c0_i32 = arith.constant 0 : i32
    %c0_i32_0 = arith.constant 0 : i32
    %c0_i32_1 = arith.constant 0 : i32
    return %c0_i32, %c0_i32_0 : i32, i32
  }
  func.func @transform_2(%arg0: i32) -> (i32, i32) {
    %c0_i32 = arith.constant 0 : i32
    %c0_i32_0 = arith.constant 0 : i32
    %c0_i32_1 = arith.constant 0 : i32
    return %c0_i32, %c0_i32_0 : i32, i32
  }
  func.func @transform_3(%arg0: i32) -> (i32, i32, i32) {
    %c0_i32 = arith.constant 0 : i32
    %c0_i32_0 = arith.constant 0 : i32
    %c0_i32_1 = arith.constant 0 : i32
    %c0_i32_2 = arith.constant 0 : i32
    return %c0_i32, %c0_i32_0, %c0_i32_1 : i32, i32, i32
  }
  func.func @transform_4(%arg0: i32) -> (i32, i32) {
    %c0_i32 = arith.constant 0 : i32
    %c0_i32_0 = arith.constant 0 : i32
    %c0_i32_1 = arith.constant 0 : i32
    return %c0_i32, %c0_i32_0 : i32, i32
  }
  func.func @transform_5(%arg0: i32) -> (i32, i32) {
    %c0_i32 = arith.constant 0 : i32
    %c0_i32_0 = arith.constant 0 : i32
    %c0_i32_1 = arith.constant 0 : i32
    return %c0_i32, %c0_i32_0 : i32, i32
  }
  func.func @transform_6(%arg0: i32) -> (i32, i32) {
    %c0_i32 = arith.constant 0 : i32
    %c0_i32_0 = arith.constant 0 : i32
    %c0_i32_1 = arith.constant 0 : i32
    return %c0_i32, %c0_i32_0 : i32, i32
  }
  func.func @transform_7(%arg0: i32) -> (i32, i32) {
    %c0_i32 = arith.constant 0 : i32
    %c0_i32_0 = arith.constant 0 : i32
    %c0_i32_1 = arith.constant 0 : i32
    return %c0_i32, %c0_i32_0 : i32, i32
  }
  func.func @transform_8(%arg0: i32) -> (i32, i32) {
    %c0_i32 = arith.constant 0 : i32
    %c0_i32_0 = arith.constant 0 : i32
    %c0_i32_1 = arith.constant 0 : i32
    return %c0_i32, %c0_i32_0 : i32, i32
  }
  func.func @transform_9(%arg0: i32) -> (i32, i32) {
    %c0_i32 = arith.constant 0 : i32
    %c0_i32_0 = arith.constant 0 : i32
    %c0_i32_1 = arith.constant 0 : i32
    return %c0_i32, %c0_i32_0 : i32, i32
  }
  func.func @transform_10(%arg0: i32) -> (i32, i32) {
    %c0_i32 = arith.constant 0 : i32
    %c0_i32_0 = arith.constant 0 : i32
    %c0_i32_1 = arith.constant 0 : i32
    return %c0_i32, %c0_i32_0 : i32, i32
  }
  func.func @transform_11(%arg0: i32) -> (i32, i32) {
    %c0_i32 = arith.constant 0 : i32
    %c0_i32_0 = arith.constant 0 : i32
    %c0_i32_1 = arith.constant 0 : i32
    return %c0_i32, %c0_i32_0 : i32, i32
  }
  func.func @transform_12(%arg0: i32) -> (i32, i32) {
    %c0_i32 = arith.constant 0 : i32
    %c0_i32_0 = arith.constant 0 : i32
    %c0_i32_1 = arith.constant 0 : i32
    return %c0_i32, %c0_i32_0 : i32, i32
  }
  func.func @transform_13(%arg0: i32) -> (i32, i32) {
    %c0_i32 = arith.constant 0 : i32
    %c0_i32_0 = arith.constant 0 : i32
    %c0_i32_1 = arith.constant 0 : i32
    return %c0_i32, %c0_i32_0 : i32, i32
  }
  func.func @transform_14(%arg0: i32) -> (i32, i32) {
    %c0_i32 = arith.constant 0 : i32
    %c0_i32_0 = arith.constant 0 : i32
    %c0_i32_1 = arith.constant 0 : i32
    return %c0_i32, %c0_i32_0 : i32, i32
  }
  func.func @transform_15(%arg0: i32) -> (i32, i32) {
    %c0_i32 = arith.constant 0 : i32
    %c0_i32_0 = arith.constant 0 : i32
    %c0_i32_1 = arith.constant 0 : i32
    return %c0_i32, %c0_i32_0 : i32, i32
  }
  func.func @transform_16(%arg0: i32) -> (i32, i32, i32) {
    %c0_i32 = arith.constant 0 : i32
    %c0_i32_0 = arith.constant 0 : i32
    %c0_i32_1 = arith.constant 0 : i32
    return %arg0, %c0_i32, %c0_i32_0 : i32, i32, i32
  }
  func.func @transform_17(%arg0: i32) -> (i32, i32, i32) {
    %c0_i32 = arith.constant 0 : i32
    %c0_i32_0 = arith.constant 0 : i32
    %c0_i32_1 = arith.constant 0 : i32
    return %arg0, %c0_i32, %c0_i32_0 : i32, i32, i32
  }
}

module attributes {stable_mosaic.version = 11 : i64} {
  func.func @kernel(%arg0: i32, %arg1: memref<1x17x32xf32, #tpu.memory_space<vmem>>, %arg2: memref<96x32xf32, #tpu.memory_space<vmem>>, %arg3: memref<96x1xf32, #tpu.memory_space<vmem>>, %arg4: memref<2x16x17xf32, #tpu.memory_space<vmem>>, %arg5: memref<32x32xf32, #tpu.memory_space<vmem>>, %arg6: memref<1x32xf32, #tpu.memory_space<vmem>>, %arg7: memref<1x32xf32, #tpu.memory_space<vmem>>, %arg8: memref<1x32xf32, #tpu.memory_space<vmem>>, %arg9: memref<32x64xf32, #tpu.memory_space<vmem>>, %arg10: memref<1x64xf32, #tpu.memory_space<vmem>>, %arg11: memref<64x32xf32, #tpu.memory_space<vmem>>, %arg12: memref<1x32xf32, #tpu.memory_space<vmem>>, %arg13: memref<1x17x32xf32, #tpu.memory_space<vmem>>) attributes {dimension_semantics = [#tpu.dimension_semantics<parallel>], iteration_bounds = array<i64: 2>, scalar_prefetch = 0 : i64, scratch_operands = 0 : i64, tpu.core_type = #tpu.core_type<tc>, window_params = [{transform_indices = @transform_0, window_bounds = array<i64: 1, 17, 32>}, {pipeline_mode = #tpu.pipeline_mode<synchronous>, transform_indices = @transform_1, window_bounds = array<i64: 96, 32>}, {pipeline_mode = #tpu.pipeline_mode<synchronous>, transform_indices = @transform_2, window_bounds = array<i64: 96, 1>}, {pipeline_mode = #tpu.pipeline_mode<synchronous>, transform_indices = @transform_3, window_bounds = array<i64: 2, 16, 17>}, {pipeline_mode = #tpu.pipeline_mode<synchronous>, transform_indices = @transform_4, window_bounds = array<i64: 32, 32>}, {pipeline_mode = #tpu.pipeline_mode<synchronous>, transform_indices = @transform_5, window_bounds = array<i64: 1, 32>}, {pipeline_mode = #tpu.pipeline_mode<synchronous>, transform_indices = @transform_6, window_bounds = array<i64: 1, 32>}, {pipeline_mode = #tpu.pipeline_mode<synchronous>, transform_indices = @transform_7, window_bounds = array<i64: 1, 32>}, {pipeline_mode = #tpu.pipeline_mode<synchronous>, transform_indices = @transform_8, window_bounds = array<i64: 32, 64>}, {pipeline_mode = #tpu.pipeline_mode<synchronous>, transform_indices = @transform_9, window_bounds = array<i64: 1, 64>}, {pipeline_mode = #tpu.pipeline_mode<synchronous>, transform_indices = @transform_10, window_bounds = array<i64: 64, 32>}, {pipeline_mode = #tpu.pipeline_mode<synchronous>, transform_indices = @transform_11, window_bounds = array<i64: 1, 32>}, {transform_indices = @transform_12, window_bounds = array<i64: 1, 17, 32>}]} {
    %c0 = arith.constant 0 : index
    %c0_0 = arith.constant 0 : index
    %c0_1 = arith.constant 0 : index
    %0 = vector.load %arg1[%c0, %c0_0, %c0_1] : memref<1x17x32xf32, #tpu.memory_space<vmem>>, vector<1x17x32xf32>
    %1 = vector.shape_cast %0 : vector<1x17x32xf32> to vector<17x32xf32>
    %c0_2 = arith.constant 0 : index
    %c0_3 = arith.constant 0 : index
    %2 = vector.load %arg2[%c0_2, %c0_3] : memref<96x32xf32, #tpu.memory_space<vmem>>, vector<96x32xf32>
    %cst = arith.constant dense<0.000000e+00> : vector<96x17xf32>
    %3 = tpu.matmul %2, %1, %cst {dimension_numbers = #tpu.dot_dimension_numbers<[1], [1], [0], [0], [0, 0, 1, 0], [], []>} : vector<96x32xf32>, vector<17x32xf32>, vector<96x17xf32> -> vector<96x17xf32>
    %c0_4 = arith.constant 0 : index
    %c0_5 = arith.constant 0 : index
    %4 = vector.load %arg3[%c0_4, %c0_5] : memref<96x1xf32, #tpu.memory_space<vmem>>, vector<96x1xf32>
    %5 = vector.broadcast %4 : vector<96x1xf32> to vector<96x17xf32>
    %6 = arith.addf %3, %5 : vector<96x17xf32>
    %7 = tpu.iota {dimensions = array<i32: 0>} : vector<17x17xi32>
    %8 = tpu.iota {dimensions = array<i32: 1>} : vector<17x17xi32>
    %c0_6 = arith.constant 0 : index
    %c0_7 = arith.constant 0 : index
    %9 = vector.load %arg6[%c0_6, %c0_7] : memref<1x32xf32, #tpu.memory_space<vmem>>, vector<1x32xf32>
    %10 = vector.extract_strided_slice %6 {offsets = [0, 0], sizes = [16, 17], strides = [1, 1]} : vector<96x17xf32> to vector<16x17xf32>
    %11 = vector.extract_strided_slice %6 {offsets = [32, 0], sizes = [16, 17], strides = [1, 1]} : vector<96x17xf32> to vector<16x17xf32>
    %12 = vector.extract_strided_slice %6 {offsets = [64, 0], sizes = [16, 17], strides = [1, 1]} : vector<96x17xf32> to vector<16x17xf32>
    %cst_8 = arith.constant dense<0.000000e+00> : vector<17x17xf32>
    %13 = tpu.matmul %10, %11, %cst_8 {dimension_numbers = #tpu.dot_dimension_numbers<[0], [0], [1], [1], [0, 1, 1, 1], [], []>} : vector<16x17xf32>, vector<16x17xf32>, vector<17x17xf32> -> vector<17x17xf32>
    %c0_9 = arith.constant 0 : index
    %c0_10 = arith.constant 0 : index
    %c0_11 = arith.constant 0 : index
    %14 = vector.load %arg4[%c0_9, %c0_10, %c0_11] : memref<2x16x17xf32, #tpu.memory_space<vmem>>, vector<1x16x17xf32>
    %15 = vector.shape_cast %14 : vector<1x16x17xf32> to vector<16x17xf32>
    %cst_12 = arith.constant dense<0.000000e+00> : vector<17x17xf32>
    %16 = tpu.matmul %10, %15, %cst_12 {dimension_numbers = #tpu.dot_dimension_numbers<[0], [0], [1], [1], [0, 1, 1, 1], [], []>} : vector<16x17xf32>, vector<16x17xf32>, vector<17x17xf32> -> vector<17x17xf32>
    %c1_i32 = arith.constant 1 : i32
    %17 = vector.broadcast %c1_i32 : i32 to vector<17x17xi32>
    %18 = arith.addi %7, %17 : vector<17x17xi32>
    %c17_i32 = arith.constant 17 : i32
    %19 = vector.broadcast %c17_i32 : i32 to vector<17x17xi32>
    %20 = arith.cmpi sge, %18, %19 : vector<17x17xi32>
    %c17_i32_13 = arith.constant 17 : i32
    %21 = vector.broadcast %c17_i32_13 : i32 to vector<17x17xi32>
    %22 = arith.subi %18, %21 : vector<17x17xi32>
    %23 = arith.select %20, %22, %18 : vector<17x17xi1>, vector<17x17xi32>
    %24 = arith.cmpi eq, %23, %8 : vector<17x17xi32>
    %25 = arith.extui %24 : vector<17x17xi1> to vector<17x17xi32>
    %26 = arith.sitofp %25 : vector<17x17xi32> to vector<17x17xf32>
    %cst_14 = arith.constant dense<0.000000e+00> : vector<17x17xf32>
    %27 = tpu.matmul %16, %26, %cst_14 {dimension_numbers = #tpu.dot_dimension_numbers<[1], [0], [0], [1], [0, 0, 1, 1], [], []>} : vector<17x17xf32>, vector<17x17xf32>, vector<17x17xf32> -> vector<17x17xf32>
    %c1_i32_15 = arith.constant 1 : i32
    %28 = vector.broadcast %c1_i32_15 : i32 to vector<17x17xi32>
    %29 = arith.andi %7, %28 : vector<17x17xi32>
    %c0_i32 = arith.constant 0 : i32
    %30 = vector.broadcast %c0_i32 : i32 to vector<17x17xi32>
    %31 = arith.cmpi ne, %29, %30 : vector<17x17xi32>
    %c1_i32_16 = arith.constant 1 : i32
    %32 = vector.broadcast %c1_i32_16 : i32 to vector<17x17xi32>
    %33 = arith.addi %7, %32 : vector<17x17xi32>
    %c17_i32_17 = arith.constant 17 : i32
    %34 = vector.broadcast %c17_i32_17 : i32 to vector<17x17xi32>
    %35 = arith.cmpi sge, %33, %34 : vector<17x17xi32>
    %c17_i32_18 = arith.constant 17 : i32
    %36 = vector.broadcast %c17_i32_18 : i32 to vector<17x17xi32>
    %37 = arith.subi %33, %36 : vector<17x17xi32>
    %38 = arith.select %35, %37, %33 : vector<17x17xi1>, vector<17x17xi32>
    %39 = arith.cmpi eq, %38, %8 : vector<17x17xi32>
    %40 = arith.extui %39 : vector<17x17xi1> to vector<17x17xi32>
    %41 = arith.sitofp %40 : vector<17x17xi32> to vector<17x17xf32>
    %cst_19 = arith.constant dense<0.000000e+00> : vector<17x17xf32>
    %42 = tpu.matmul %27, %41, %cst_19 {dimension_numbers = #tpu.dot_dimension_numbers<[1], [0], [0], [1], [0, 0, 1, 1], [], []>} : vector<17x17xf32>, vector<17x17xf32>, vector<17x17xf32> -> vector<17x17xf32>
    %43 = arith.select %31, %42, %27 : vector<17x17xi1>, vector<17x17xf32>
    %c2_i32 = arith.constant 2 : i32
    %44 = vector.broadcast %c2_i32 : i32 to vector<17x17xi32>
    %45 = arith.andi %7, %44 : vector<17x17xi32>
    %c0_i32_20 = arith.constant 0 : i32
    %46 = vector.broadcast %c0_i32_20 : i32 to vector<17x17xi32>
    %47 = arith.cmpi ne, %45, %46 : vector<17x17xi32>
    %c2_i32_21 = arith.constant 2 : i32
    %48 = vector.broadcast %c2_i32_21 : i32 to vector<17x17xi32>
    %49 = arith.addi %7, %48 : vector<17x17xi32>
    %c17_i32_22 = arith.constant 17 : i32
    %50 = vector.broadcast %c17_i32_22 : i32 to vector<17x17xi32>
    %51 = arith.cmpi sge, %49, %50 : vector<17x17xi32>
    %c17_i32_23 = arith.constant 17 : i32
    %52 = vector.broadcast %c17_i32_23 : i32 to vector<17x17xi32>
    %53 = arith.subi %49, %52 : vector<17x17xi32>
    %54 = arith.select %51, %53, %49 : vector<17x17xi1>, vector<17x17xi32>
    %55 = arith.cmpi eq, %54, %8 : vector<17x17xi32>
    %56 = arith.extui %55 : vector<17x17xi1> to vector<17x17xi32>
    %57 = arith.sitofp %56 : vector<17x17xi32> to vector<17x17xf32>
    %cst_24 = arith.constant dense<0.000000e+00> : vector<17x17xf32>
    %58 = tpu.matmul %43, %57, %cst_24 {dimension_numbers = #tpu.dot_dimension_numbers<[1], [0], [0], [1], [0, 0, 1, 1], [], []>} : vector<17x17xf32>, vector<17x17xf32>, vector<17x17xf32> -> vector<17x17xf32>
    %59 = arith.select %47, %58, %43 : vector<17x17xi1>, vector<17x17xf32>
    %c4_i32 = arith.constant 4 : i32
    %60 = vector.broadcast %c4_i32 : i32 to vector<17x17xi32>
    %61 = arith.andi %7, %60 : vector<17x17xi32>
    %c0_i32_25 = arith.constant 0 : i32
    %62 = vector.broadcast %c0_i32_25 : i32 to vector<17x17xi32>
    %63 = arith.cmpi ne, %61, %62 : vector<17x17xi32>
    %c4_i32_26 = arith.constant 4 : i32
    %64 = vector.broadcast %c4_i32_26 : i32 to vector<17x17xi32>
    %65 = arith.addi %7, %64 : vector<17x17xi32>
    %c17_i32_27 = arith.constant 17 : i32
    %66 = vector.broadcast %c17_i32_27 : i32 to vector<17x17xi32>
    %67 = arith.cmpi sge, %65, %66 : vector<17x17xi32>
    %c17_i32_28 = arith.constant 17 : i32
    %68 = vector.broadcast %c17_i32_28 : i32 to vector<17x17xi32>
    %69 = arith.subi %65, %68 : vector<17x17xi32>
    %70 = arith.select %67, %69, %65 : vector<17x17xi1>, vector<17x17xi32>
    %71 = arith.cmpi eq, %70, %8 : vector<17x17xi32>
    %72 = arith.extui %71 : vector<17x17xi1> to vector<17x17xi32>
    %73 = arith.sitofp %72 : vector<17x17xi32> to vector<17x17xf32>
    %cst_29 = arith.constant dense<0.000000e+00> : vector<17x17xf32>
    %74 = tpu.matmul %59, %73, %cst_29 {dimension_numbers = #tpu.dot_dimension_numbers<[1], [0], [0], [1], [0, 0, 1, 1], [], []>} : vector<17x17xf32>, vector<17x17xf32>, vector<17x17xf32> -> vector<17x17xf32>
    %75 = arith.select %63, %74, %59 : vector<17x17xi1>, vector<17x17xf32>
    %c8_i32 = arith.constant 8 : i32
    %76 = vector.broadcast %c8_i32 : i32 to vector<17x17xi32>
    %77 = arith.andi %7, %76 : vector<17x17xi32>
    %c0_i32_30 = arith.constant 0 : i32
    %78 = vector.broadcast %c0_i32_30 : i32 to vector<17x17xi32>
    %79 = arith.cmpi ne, %77, %78 : vector<17x17xi32>
    %c8_i32_31 = arith.constant 8 : i32
    %80 = vector.broadcast %c8_i32_31 : i32 to vector<17x17xi32>
    %81 = arith.addi %7, %80 : vector<17x17xi32>
    %c17_i32_32 = arith.constant 17 : i32
    %82 = vector.broadcast %c17_i32_32 : i32 to vector<17x17xi32>
    %83 = arith.cmpi sge, %81, %82 : vector<17x17xi32>
    %c17_i32_33 = arith.constant 17 : i32
    %84 = vector.broadcast %c17_i32_33 : i32 to vector<17x17xi32>
    %85 = arith.subi %81, %84 : vector<17x17xi32>
    %86 = arith.select %83, %85, %81 : vector<17x17xi1>, vector<17x17xi32>
    %87 = arith.cmpi eq, %86, %8 : vector<17x17xi32>
    %88 = arith.extui %87 : vector<17x17xi1> to vector<17x17xi32>
    %89 = arith.sitofp %88 : vector<17x17xi32> to vector<17x17xf32>
    %cst_34 = arith.constant dense<0.000000e+00> : vector<17x17xf32>
    %90 = tpu.matmul %75, %89, %cst_34 {dimension_numbers = #tpu.dot_dimension_numbers<[1], [0], [0], [1], [0, 0, 1, 1], [], []>} : vector<17x17xf32>, vector<17x17xf32>, vector<17x17xf32> -> vector<17x17xf32>
    %91 = arith.select %79, %90, %75 : vector<17x17xi1>, vector<17x17xf32>
    %c16_i32 = arith.constant 16 : i32
    %92 = vector.broadcast %c16_i32 : i32 to vector<17x17xi32>
    %93 = arith.andi %7, %92 : vector<17x17xi32>
    %c0_i32_35 = arith.constant 0 : i32
    %94 = vector.broadcast %c0_i32_35 : i32 to vector<17x17xi32>
    %95 = arith.cmpi ne, %93, %94 : vector<17x17xi32>
    %c16_i32_36 = arith.constant 16 : i32
    %96 = vector.broadcast %c16_i32_36 : i32 to vector<17x17xi32>
    %97 = arith.addi %7, %96 : vector<17x17xi32>
    %c17_i32_37 = arith.constant 17 : i32
    %98 = vector.broadcast %c17_i32_37 : i32 to vector<17x17xi32>
    %99 = arith.cmpi sge, %97, %98 : vector<17x17xi32>
    %c17_i32_38 = arith.constant 17 : i32
    %100 = vector.broadcast %c17_i32_38 : i32 to vector<17x17xi32>
    %101 = arith.subi %97, %100 : vector<17x17xi32>
    %102 = arith.select %99, %101, %97 : vector<17x17xi1>, vector<17x17xi32>
    %103 = arith.cmpi eq, %102, %8 : vector<17x17xi32>
    %104 = arith.extui %103 : vector<17x17xi1> to vector<17x17xi32>
    %105 = arith.sitofp %104 : vector<17x17xi32> to vector<17x17xf32>
    %cst_39 = arith.constant dense<0.000000e+00> : vector<17x17xf32>
    %106 = tpu.matmul %91, %105, %cst_39 {dimension_numbers = #tpu.dot_dimension_numbers<[1], [0], [0], [1], [0, 0, 1, 1], [], []>} : vector<17x17xf32>, vector<17x17xf32>, vector<17x17xf32> -> vector<17x17xf32>
    %107 = arith.select %95, %106, %91 : vector<17x17xi1>, vector<17x17xf32>
    %c1_i32_40 = arith.constant 1 : i32
    %108 = vector.broadcast %c1_i32_40 : i32 to vector<17x17xi32>
    %109 = arith.addi %7, %108 : vector<17x17xi32>
    %110 = arith.cmpi eq, %8, %109 : vector<17x17xi32>
    %111 = arith.extui %110 : vector<17x17xi1> to vector<17x17xi32>
    %112 = arith.sitofp %111 : vector<17x17xi32> to vector<17x17xf32>
    %cst_41 = arith.constant dense<0.000000e+00> : vector<17x17xf32>
    %113 = tpu.matmul %112, %107, %cst_41 {dimension_numbers = #tpu.dot_dimension_numbers<[1], [0], [0], [1], [0, 0, 1, 1], [], []>} : vector<17x17xf32>, vector<17x17xf32>, vector<17x17xf32> -> vector<17x17xf32>
    %114 = arith.cmpi sle, %8, %7 : vector<17x17xi32>
    %c1_i32_42 = arith.constant 1 : i32
    %115 = vector.broadcast %c1_i32_42 : i32 to vector<17x17xi32>
    %116 = arith.addi %7, %115 : vector<17x17xi32>
    %117 = arith.cmpi eq, %8, %116 : vector<17x17xi32>
    %cst_43 = arith.constant 0.000000e+00 : f32
    %118 = vector.broadcast %cst_43 : f32 to vector<17x17xf32>
    %119 = arith.select %117, %118, %113 : vector<17x17xi1>, vector<17x17xf32>
    %120 = arith.select %114, %107, %119 : vector<17x17xi1>, vector<17x17xf32>
    %121 = arith.addf %13, %120 : vector<17x17xf32>
    %cst_44 = arith.constant 2.500000e-01 : f32
    %122 = vector.broadcast %cst_44 : f32 to vector<17x17xf32>
    %123 = arith.mulf %121, %122 : vector<17x17xf32>
    %cst_45 = arith.constant dense<0xFF800000> : vector<17xf32>
    %124 = vector.multi_reduction <maximumf>, %123, %cst_45 [1] : vector<17x17xf32> to vector<17xf32>
    %125 = vector.shape_cast %124 : vector<17xf32> to vector<17x1xf32>
    %126 = vector.broadcast %125 : vector<17x1xf32> to vector<17x17xf32>
    %127 = arith.subf %123, %126 : vector<17x17xf32>
    %128 = math.exp %127 : vector<17x17xf32>
    %cst_46 = arith.constant dense<0.000000e+00> : vector<17xf32>
    %129 = vector.multi_reduction <add>, %128, %cst_46 [1] : vector<17x17xf32> to vector<17xf32>
    %130 = vector.shape_cast %129 : vector<17xf32> to vector<17x1xf32>
    %131 = vector.broadcast %130 : vector<17x1xf32> to vector<17x17xf32>
    %132 = arith.divf %128, %131 : vector<17x17xf32>
    %cst_47 = arith.constant dense<0.000000e+00> : vector<17x16xf32>
    %133 = tpu.matmul %132, %12, %cst_47 {dimension_numbers = #tpu.dot_dimension_numbers<[1], [1], [0], [0], [0, 0, 1, 0], [], []>} : vector<17x17xf32>, vector<16x17xf32>, vector<17x16xf32> -> vector<17x16xf32>
    %c0_48 = arith.constant 0 : index
    %c0_49 = arith.constant 0 : index
    %134 = vector.load %arg5[%c0_48, %c0_49] : memref<32x32xf32, #tpu.memory_space<vmem>>, vector<16x32xf32>
    %cst_50 = arith.constant dense<0.000000e+00> : vector<17x32xf32>
    %135 = tpu.matmul %133, %134, %cst_50 {dimension_numbers = #tpu.dot_dimension_numbers<[1], [0], [0], [1], [0, 0, 1, 1], [], []>} : vector<17x16xf32>, vector<16x32xf32>, vector<17x32xf32> -> vector<17x32xf32>
    %136 = vector.broadcast %9 : vector<1x32xf32> to vector<17x32xf32>
    %137 = arith.addf %136, %135 : vector<17x32xf32>
    %138 = vector.extract_strided_slice %6 {offsets = [16, 0], sizes = [16, 17], strides = [1, 1]} : vector<96x17xf32> to vector<16x17xf32>
    %139 = vector.extract_strided_slice %6 {offsets = [48, 0], sizes = [16, 17], strides = [1, 1]} : vector<96x17xf32> to vector<16x17xf32>
    %140 = vector.extract_strided_slice %6 {offsets = [80, 0], sizes = [16, 17], strides = [1, 1]} : vector<96x17xf32> to vector<16x17xf32>
    %cst_51 = arith.constant dense<0.000000e+00> : vector<17x17xf32>
    %141 = tpu.matmul %138, %139, %cst_51 {dimension_numbers = #tpu.dot_dimension_numbers<[0], [0], [1], [1], [0, 1, 1, 1], [], []>} : vector<16x17xf32>, vector<16x17xf32>, vector<17x17xf32> -> vector<17x17xf32>
    %c1 = arith.constant 1 : index
    %c0_52 = arith.constant 0 : index
    %c0_53 = arith.constant 0 : index
    %142 = vector.load %arg4[%c1, %c0_52, %c0_53] : memref<2x16x17xf32, #tpu.memory_space<vmem>>, vector<1x16x17xf32>
    %143 = vector.shape_cast %142 : vector<1x16x17xf32> to vector<16x17xf32>
    %cst_54 = arith.constant dense<0.000000e+00> : vector<17x17xf32>
    %144 = tpu.matmul %138, %143, %cst_54 {dimension_numbers = #tpu.dot_dimension_numbers<[0], [0], [1], [1], [0, 1, 1, 1], [], []>} : vector<16x17xf32>, vector<16x17xf32>, vector<17x17xf32> -> vector<17x17xf32>
    %c1_i32_55 = arith.constant 1 : i32
    %145 = vector.broadcast %c1_i32_55 : i32 to vector<17x17xi32>
    %146 = arith.addi %7, %145 : vector<17x17xi32>
    %c17_i32_56 = arith.constant 17 : i32
    %147 = vector.broadcast %c17_i32_56 : i32 to vector<17x17xi32>
    %148 = arith.cmpi sge, %146, %147 : vector<17x17xi32>
    %c17_i32_57 = arith.constant 17 : i32
    %149 = vector.broadcast %c17_i32_57 : i32 to vector<17x17xi32>
    %150 = arith.subi %146, %149 : vector<17x17xi32>
    %151 = arith.select %148, %150, %146 : vector<17x17xi1>, vector<17x17xi32>
    %152 = arith.cmpi eq, %151, %8 : vector<17x17xi32>
    %153 = arith.extui %152 : vector<17x17xi1> to vector<17x17xi32>
    %154 = arith.sitofp %153 : vector<17x17xi32> to vector<17x17xf32>
    %cst_58 = arith.constant dense<0.000000e+00> : vector<17x17xf32>
    %155 = tpu.matmul %144, %154, %cst_58 {dimension_numbers = #tpu.dot_dimension_numbers<[1], [0], [0], [1], [0, 0, 1, 1], [], []>} : vector<17x17xf32>, vector<17x17xf32>, vector<17x17xf32> -> vector<17x17xf32>
    %c1_i32_59 = arith.constant 1 : i32
    %156 = vector.broadcast %c1_i32_59 : i32 to vector<17x17xi32>
    %157 = arith.andi %7, %156 : vector<17x17xi32>
    %c0_i32_60 = arith.constant 0 : i32
    %158 = vector.broadcast %c0_i32_60 : i32 to vector<17x17xi32>
    %159 = arith.cmpi ne, %157, %158 : vector<17x17xi32>
    %c1_i32_61 = arith.constant 1 : i32
    %160 = vector.broadcast %c1_i32_61 : i32 to vector<17x17xi32>
    %161 = arith.addi %7, %160 : vector<17x17xi32>
    %c17_i32_62 = arith.constant 17 : i32
    %162 = vector.broadcast %c17_i32_62 : i32 to vector<17x17xi32>
    %163 = arith.cmpi sge, %161, %162 : vector<17x17xi32>
    %c17_i32_63 = arith.constant 17 : i32
    %164 = vector.broadcast %c17_i32_63 : i32 to vector<17x17xi32>
    %165 = arith.subi %161, %164 : vector<17x17xi32>
    %166 = arith.select %163, %165, %161 : vector<17x17xi1>, vector<17x17xi32>
    %167 = arith.cmpi eq, %166, %8 : vector<17x17xi32>
    %168 = arith.extui %167 : vector<17x17xi1> to vector<17x17xi32>
    %169 = arith.sitofp %168 : vector<17x17xi32> to vector<17x17xf32>
    %cst_64 = arith.constant dense<0.000000e+00> : vector<17x17xf32>
    %170 = tpu.matmul %155, %169, %cst_64 {dimension_numbers = #tpu.dot_dimension_numbers<[1], [0], [0], [1], [0, 0, 1, 1], [], []>} : vector<17x17xf32>, vector<17x17xf32>, vector<17x17xf32> -> vector<17x17xf32>
    %171 = arith.select %159, %170, %155 : vector<17x17xi1>, vector<17x17xf32>
    %c2_i32_65 = arith.constant 2 : i32
    %172 = vector.broadcast %c2_i32_65 : i32 to vector<17x17xi32>
    %173 = arith.andi %7, %172 : vector<17x17xi32>
    %c0_i32_66 = arith.constant 0 : i32
    %174 = vector.broadcast %c0_i32_66 : i32 to vector<17x17xi32>
    %175 = arith.cmpi ne, %173, %174 : vector<17x17xi32>
    %c2_i32_67 = arith.constant 2 : i32
    %176 = vector.broadcast %c2_i32_67 : i32 to vector<17x17xi32>
    %177 = arith.addi %7, %176 : vector<17x17xi32>
    %c17_i32_68 = arith.constant 17 : i32
    %178 = vector.broadcast %c17_i32_68 : i32 to vector<17x17xi32>
    %179 = arith.cmpi sge, %177, %178 : vector<17x17xi32>
    %c17_i32_69 = arith.constant 17 : i32
    %180 = vector.broadcast %c17_i32_69 : i32 to vector<17x17xi32>
    %181 = arith.subi %177, %180 : vector<17x17xi32>
    %182 = arith.select %179, %181, %177 : vector<17x17xi1>, vector<17x17xi32>
    %183 = arith.cmpi eq, %182, %8 : vector<17x17xi32>
    %184 = arith.extui %183 : vector<17x17xi1> to vector<17x17xi32>
    %185 = arith.sitofp %184 : vector<17x17xi32> to vector<17x17xf32>
    %cst_70 = arith.constant dense<0.000000e+00> : vector<17x17xf32>
    %186 = tpu.matmul %171, %185, %cst_70 {dimension_numbers = #tpu.dot_dimension_numbers<[1], [0], [0], [1], [0, 0, 1, 1], [], []>} : vector<17x17xf32>, vector<17x17xf32>, vector<17x17xf32> -> vector<17x17xf32>
    %187 = arith.select %175, %186, %171 : vector<17x17xi1>, vector<17x17xf32>
    %c4_i32_71 = arith.constant 4 : i32
    %188 = vector.broadcast %c4_i32_71 : i32 to vector<17x17xi32>
    %189 = arith.andi %7, %188 : vector<17x17xi32>
    %c0_i32_72 = arith.constant 0 : i32
    %190 = vector.broadcast %c0_i32_72 : i32 to vector<17x17xi32>
    %191 = arith.cmpi ne, %189, %190 : vector<17x17xi32>
    %c4_i32_73 = arith.constant 4 : i32
    %192 = vector.broadcast %c4_i32_73 : i32 to vector<17x17xi32>
    %193 = arith.addi %7, %192 : vector<17x17xi32>
    %c17_i32_74 = arith.constant 17 : i32
    %194 = vector.broadcast %c17_i32_74 : i32 to vector<17x17xi32>
    %195 = arith.cmpi sge, %193, %194 : vector<17x17xi32>
    %c17_i32_75 = arith.constant 17 : i32
    %196 = vector.broadcast %c17_i32_75 : i32 to vector<17x17xi32>
    %197 = arith.subi %193, %196 : vector<17x17xi32>
    %198 = arith.select %195, %197, %193 : vector<17x17xi1>, vector<17x17xi32>
    %199 = arith.cmpi eq, %198, %8 : vector<17x17xi32>
    %200 = arith.extui %199 : vector<17x17xi1> to vector<17x17xi32>
    %201 = arith.sitofp %200 : vector<17x17xi32> to vector<17x17xf32>
    %cst_76 = arith.constant dense<0.000000e+00> : vector<17x17xf32>
    %202 = tpu.matmul %187, %201, %cst_76 {dimension_numbers = #tpu.dot_dimension_numbers<[1], [0], [0], [1], [0, 0, 1, 1], [], []>} : vector<17x17xf32>, vector<17x17xf32>, vector<17x17xf32> -> vector<17x17xf32>
    %203 = arith.select %191, %202, %187 : vector<17x17xi1>, vector<17x17xf32>
    %c8_i32_77 = arith.constant 8 : i32
    %204 = vector.broadcast %c8_i32_77 : i32 to vector<17x17xi32>
    %205 = arith.andi %7, %204 : vector<17x17xi32>
    %c0_i32_78 = arith.constant 0 : i32
    %206 = vector.broadcast %c0_i32_78 : i32 to vector<17x17xi32>
    %207 = arith.cmpi ne, %205, %206 : vector<17x17xi32>
    %c8_i32_79 = arith.constant 8 : i32
    %208 = vector.broadcast %c8_i32_79 : i32 to vector<17x17xi32>
    %209 = arith.addi %7, %208 : vector<17x17xi32>
    %c17_i32_80 = arith.constant 17 : i32
    %210 = vector.broadcast %c17_i32_80 : i32 to vector<17x17xi32>
    %211 = arith.cmpi sge, %209, %210 : vector<17x17xi32>
    %c17_i32_81 = arith.constant 17 : i32
    %212 = vector.broadcast %c17_i32_81 : i32 to vector<17x17xi32>
    %213 = arith.subi %209, %212 : vector<17x17xi32>
    %214 = arith.select %211, %213, %209 : vector<17x17xi1>, vector<17x17xi32>
    %215 = arith.cmpi eq, %214, %8 : vector<17x17xi32>
    %216 = arith.extui %215 : vector<17x17xi1> to vector<17x17xi32>
    %217 = arith.sitofp %216 : vector<17x17xi32> to vector<17x17xf32>
    %cst_82 = arith.constant dense<0.000000e+00> : vector<17x17xf32>
    %218 = tpu.matmul %203, %217, %cst_82 {dimension_numbers = #tpu.dot_dimension_numbers<[1], [0], [0], [1], [0, 0, 1, 1], [], []>} : vector<17x17xf32>, vector<17x17xf32>, vector<17x17xf32> -> vector<17x17xf32>
    %219 = arith.select %207, %218, %203 : vector<17x17xi1>, vector<17x17xf32>
    %c16_i32_83 = arith.constant 16 : i32
    %220 = vector.broadcast %c16_i32_83 : i32 to vector<17x17xi32>
    %221 = arith.andi %7, %220 : vector<17x17xi32>
    %c0_i32_84 = arith.constant 0 : i32
    %222 = vector.broadcast %c0_i32_84 : i32 to vector<17x17xi32>
    %223 = arith.cmpi ne, %221, %222 : vector<17x17xi32>
    %c16_i32_85 = arith.constant 16 : i32
    %224 = vector.broadcast %c16_i32_85 : i32 to vector<17x17xi32>
    %225 = arith.addi %7, %224 : vector<17x17xi32>
    %c17_i32_86 = arith.constant 17 : i32
    %226 = vector.broadcast %c17_i32_86 : i32 to vector<17x17xi32>
    %227 = arith.cmpi sge, %225, %226 : vector<17x17xi32>
    %c17_i32_87 = arith.constant 17 : i32
    %228 = vector.broadcast %c17_i32_87 : i32 to vector<17x17xi32>
    %229 = arith.subi %225, %228 : vector<17x17xi32>
    %230 = arith.select %227, %229, %225 : vector<17x17xi1>, vector<17x17xi32>
    %231 = arith.cmpi eq, %230, %8 : vector<17x17xi32>
    %232 = arith.extui %231 : vector<17x17xi1> to vector<17x17xi32>
    %233 = arith.sitofp %232 : vector<17x17xi32> to vector<17x17xf32>
    %cst_88 = arith.constant dense<0.000000e+00> : vector<17x17xf32>
    %234 = tpu.matmul %219, %233, %cst_88 {dimension_numbers = #tpu.dot_dimension_numbers<[1], [0], [0], [1], [0, 0, 1, 1], [], []>} : vector<17x17xf32>, vector<17x17xf32>, vector<17x17xf32> -> vector<17x17xf32>
    %235 = arith.select %223, %234, %219 : vector<17x17xi1>, vector<17x17xf32>
    %c1_i32_89 = arith.constant 1 : i32
    %236 = vector.broadcast %c1_i32_89 : i32 to vector<17x17xi32>
    %237 = arith.addi %7, %236 : vector<17x17xi32>
    %238 = arith.cmpi eq, %8, %237 : vector<17x17xi32>
    %239 = arith.extui %238 : vector<17x17xi1> to vector<17x17xi32>
    %240 = arith.sitofp %239 : vector<17x17xi32> to vector<17x17xf32>
    %cst_90 = arith.constant dense<0.000000e+00> : vector<17x17xf32>
    %241 = tpu.matmul %240, %235, %cst_90 {dimension_numbers = #tpu.dot_dimension_numbers<[1], [0], [0], [1], [0, 0, 1, 1], [], []>} : vector<17x17xf32>, vector<17x17xf32>, vector<17x17xf32> -> vector<17x17xf32>
    %242 = arith.cmpi sle, %8, %7 : vector<17x17xi32>
    %c1_i32_91 = arith.constant 1 : i32
    %243 = vector.broadcast %c1_i32_91 : i32 to vector<17x17xi32>
    %244 = arith.addi %7, %243 : vector<17x17xi32>
    %245 = arith.cmpi eq, %8, %244 : vector<17x17xi32>
    %cst_92 = arith.constant 0.000000e+00 : f32
    %246 = vector.broadcast %cst_92 : f32 to vector<17x17xf32>
    %247 = arith.select %245, %246, %241 : vector<17x17xi1>, vector<17x17xf32>
    %248 = arith.select %242, %235, %247 : vector<17x17xi1>, vector<17x17xf32>
    %249 = arith.addf %141, %248 : vector<17x17xf32>
    %cst_93 = arith.constant 2.500000e-01 : f32
    %250 = vector.broadcast %cst_93 : f32 to vector<17x17xf32>
    %251 = arith.mulf %249, %250 : vector<17x17xf32>
    %cst_94 = arith.constant dense<0xFF800000> : vector<17xf32>
    %252 = vector.multi_reduction <maximumf>, %251, %cst_94 [1] : vector<17x17xf32> to vector<17xf32>
    %253 = vector.shape_cast %252 : vector<17xf32> to vector<17x1xf32>
    %254 = vector.broadcast %253 : vector<17x1xf32> to vector<17x17xf32>
    %255 = arith.subf %251, %254 : vector<17x17xf32>
    %256 = math.exp %255 : vector<17x17xf32>
    %cst_95 = arith.constant dense<0.000000e+00> : vector<17xf32>
    %257 = vector.multi_reduction <add>, %256, %cst_95 [1] : vector<17x17xf32> to vector<17xf32>
    %258 = vector.shape_cast %257 : vector<17xf32> to vector<17x1xf32>
    %259 = vector.broadcast %258 : vector<17x1xf32> to vector<17x17xf32>
    %260 = arith.divf %256, %259 : vector<17x17xf32>
    %cst_96 = arith.constant dense<0.000000e+00> : vector<17x16xf32>
    %261 = tpu.matmul %260, %140, %cst_96 {dimension_numbers = #tpu.dot_dimension_numbers<[1], [1], [0], [0], [0, 0, 1, 0], [], []>} : vector<17x17xf32>, vector<16x17xf32>, vector<17x16xf32> -> vector<17x16xf32>
    %c16 = arith.constant 16 : index
    %c0_97 = arith.constant 0 : index
    %262 = vector.load %arg5[%c16, %c0_97] : memref<32x32xf32, #tpu.memory_space<vmem>>, vector<16x32xf32>
    %cst_98 = arith.constant dense<0.000000e+00> : vector<17x32xf32>
    %263 = tpu.matmul %261, %262, %cst_98 {dimension_numbers = #tpu.dot_dimension_numbers<[1], [0], [0], [1], [0, 0, 1, 1], [], []>} : vector<17x16xf32>, vector<16x32xf32>, vector<17x32xf32> -> vector<17x32xf32>
    %264 = arith.addf %137, %263 : vector<17x32xf32>
    %265 = arith.addf %1, %264 : vector<17x32xf32>
    %cst_99 = arith.constant dense<0.000000e+00> : vector<17xf32>
    %266 = vector.multi_reduction <add>, %265, %cst_99 [1] : vector<17x32xf32> to vector<17xf32>
    %267 = vector.shape_cast %266 : vector<17xf32> to vector<17x1xf32>
    %cst_100 = arith.constant 3.200000e+01 : f32
    %268 = vector.broadcast %cst_100 : f32 to vector<17x1xf32>
    %269 = arith.divf %267, %268 : vector<17x1xf32>
    %270 = vector.broadcast %269 : vector<17x1xf32> to vector<17x32xf32>
    %271 = arith.subf %265, %270 : vector<17x32xf32>
    %272 = arith.mulf %271, %271 : vector<17x32xf32>
    %cst_101 = arith.constant dense<0.000000e+00> : vector<17xf32>
    %273 = vector.multi_reduction <add>, %272, %cst_101 [1] : vector<17x32xf32> to vector<17xf32>
    %274 = vector.shape_cast %273 : vector<17xf32> to vector<17x1xf32>
    %cst_102 = arith.constant 3.200000e+01 : f32
    %275 = vector.broadcast %cst_102 : f32 to vector<17x1xf32>
    %276 = arith.divf %274, %275 : vector<17x1xf32>
    %277 = vector.broadcast %269 : vector<17x1xf32> to vector<17x32xf32>
    %278 = arith.subf %265, %277 : vector<17x32xf32>
    %cst_103 = arith.constant 9.99999974E-6 : f32
    %279 = vector.broadcast %cst_103 : f32 to vector<17x1xf32>
    %280 = arith.addf %276, %279 : vector<17x1xf32>
    %281 = math.rsqrt %280 : vector<17x1xf32>
    %282 = vector.broadcast %281 : vector<17x1xf32> to vector<17x32xf32>
    %283 = arith.mulf %278, %282 : vector<17x32xf32>
    %c0_104 = arith.constant 0 : index
    %c0_105 = arith.constant 0 : index
    %284 = vector.load %arg7[%c0_104, %c0_105] : memref<1x32xf32, #tpu.memory_space<vmem>>, vector<1x32xf32>
    %285 = vector.broadcast %284 : vector<1x32xf32> to vector<17x32xf32>
    %286 = arith.mulf %283, %285 : vector<17x32xf32>
    %c0_106 = arith.constant 0 : index
    %c0_107 = arith.constant 0 : index
    %287 = vector.load %arg8[%c0_106, %c0_107] : memref<1x32xf32, #tpu.memory_space<vmem>>, vector<1x32xf32>
    %288 = vector.broadcast %287 : vector<1x32xf32> to vector<17x32xf32>
    %289 = arith.addf %286, %288 : vector<17x32xf32>
    %c0_108 = arith.constant 0 : index
    %c0_109 = arith.constant 0 : index
    %290 = vector.load %arg9[%c0_108, %c0_109] : memref<32x64xf32, #tpu.memory_space<vmem>>, vector<32x64xf32>
    %cst_110 = arith.constant dense<0.000000e+00> : vector<17x64xf32>
    %291 = tpu.matmul %289, %290, %cst_110 {dimension_numbers = #tpu.dot_dimension_numbers<[1], [0], [0], [1], [0, 0, 1, 1], [], []>} : vector<17x32xf32>, vector<32x64xf32>, vector<17x64xf32> -> vector<17x64xf32>
    %c0_111 = arith.constant 0 : index
    %c0_112 = arith.constant 0 : index
    %292 = vector.load %arg10[%c0_111, %c0_112] : memref<1x64xf32, #tpu.memory_space<vmem>>, vector<1x64xf32>
    %293 = vector.broadcast %292 : vector<1x64xf32> to vector<17x64xf32>
    %294 = arith.addf %291, %293 : vector<17x64xf32>
    %cst_113 = arith.constant 5.000000e-01 : f32
    %295 = vector.broadcast %cst_113 : f32 to vector<17x64xf32>
    %296 = arith.mulf %295, %294 : vector<17x64xf32>
    %cst_114 = arith.constant 0.707106769 : f32
    %297 = vector.broadcast %cst_114 : f32 to vector<17x64xf32>
    %298 = arith.mulf %294, %297 : vector<17x64xf32>
    %299 = math.erf %298 : vector<17x64xf32>
    %cst_115 = arith.constant 1.000000e+00 : f32
    %300 = vector.broadcast %cst_115 : f32 to vector<17x64xf32>
    %301 = arith.addf %300, %299 : vector<17x64xf32>
    %302 = arith.mulf %296, %301 : vector<17x64xf32>
    %c0_116 = arith.constant 0 : index
    %c0_117 = arith.constant 0 : index
    %303 = vector.load %arg11[%c0_116, %c0_117] : memref<64x32xf32, #tpu.memory_space<vmem>>, vector<64x32xf32>
    %cst_118 = arith.constant dense<0.000000e+00> : vector<17x32xf32>
    %304 = tpu.matmul %302, %303, %cst_118 {dimension_numbers = #tpu.dot_dimension_numbers<[1], [0], [0], [1], [0, 0, 1, 1], [], []>} : vector<17x64xf32>, vector<64x32xf32>, vector<17x32xf32> -> vector<17x32xf32>
    %c0_119 = arith.constant 0 : index
    %c0_120 = arith.constant 0 : index
    %305 = vector.load %arg12[%c0_119, %c0_120] : memref<1x32xf32, #tpu.memory_space<vmem>>, vector<1x32xf32>
    %306 = vector.broadcast %305 : vector<1x32xf32> to vector<17x32xf32>
    %307 = arith.addf %304, %306 : vector<17x32xf32>
    %308 = arith.addf %265, %307 : vector<17x32xf32>
    %c0_121 = arith.constant 0 : index
    %c0_122 = arith.constant 0 : index
    %c0_123 = arith.constant 0 : index
    %309 = vector.load %arg13[%c0_121, %c0_122, %c0_123] : memref<1x17x32xf32, #tpu.memory_space<vmem>>, vector<1x17x32xf32>
    %310 = vector.shape_cast %309 : vector<1x17x32xf32> to vector<17x32xf32>
    %311 = vector.shape_cast %308 : vector<17x32xf32> to vector<1x17x32xf32>
    tpu.vector_store %arg13[%c0_121, %c0_122, %c0_123], %311 {strides = array<i32>} : memref<1x17x32xf32, #tpu.memory_space<vmem>>, vector<1x17x32xf32>,
    return
  }
  func.func @transform_0(%arg0: i32) -> (i32, i32, i32) {
    %c0_i32 = arith.constant 0 : i32
    %c0_i32_0 = arith.constant 0 : i32
    %c0_i32_1 = arith.constant 0 : i32
    return %arg0, %c0_i32, %c0_i32_0 : i32, i32, i32
  }
  func.func @transform_1(%arg0: i32) -> (i32, i32) {
    %c0_i32 = arith.constant 0 : i32
    %c0_i32_0 = arith.constant 0 : i32
    %c0_i32_1 = arith.constant 0 : i32
    return %c0_i32, %c0_i32_0 : i32, i32
  }
  func.func @transform_2(%arg0: i32) -> (i32, i32) {
    %c0_i32 = arith.constant 0 : i32
    %c0_i32_0 = arith.constant 0 : i32
    %c0_i32_1 = arith.constant 0 : i32
    return %c0_i32, %c0_i32_0 : i32, i32
  }
  func.func @transform_3(%arg0: i32) -> (i32, i32, i32) {
    %c0_i32 = arith.constant 0 : i32
    %c0_i32_0 = arith.constant 0 : i32
    %c0_i32_1 = arith.constant 0 : i32
    %c0_i32_2 = arith.constant 0 : i32
    return %c0_i32, %c0_i32_0, %c0_i32_1 : i32, i32, i32
  }
  func.func @transform_4(%arg0: i32) -> (i32, i32) {
    %c0_i32 = arith.constant 0 : i32
    %c0_i32_0 = arith.constant 0 : i32
    %c0_i32_1 = arith.constant 0 : i32
    return %c0_i32, %c0_i32_0 : i32, i32
  }
  func.func @transform_5(%arg0: i32) -> (i32, i32) {
    %c0_i32 = arith.constant 0 : i32
    %c0_i32_0 = arith.constant 0 : i32
    %c0_i32_1 = arith.constant 0 : i32
    return %c0_i32, %c0_i32_0 : i32, i32
  }
  func.func @transform_6(%arg0: i32) -> (i32, i32) {
    %c0_i32 = arith.constant 0 : i32
    %c0_i32_0 = arith.constant 0 : i32
    %c0_i32_1 = arith.constant 0 : i32
    return %c0_i32, %c0_i32_0 : i32, i32
  }
  func.func @transform_7(%arg0: i32) -> (i32, i32) {
    %c0_i32 = arith.constant 0 : i32
    %c0_i32_0 = arith.constant 0 : i32
    %c0_i32_1 = arith.constant 0 : i32
    return %c0_i32, %c0_i32_0 : i32, i32
  }
  func.func @transform_8(%arg0: i32) -> (i32, i32) {
    %c0_i32 = arith.constant 0 : i32
    %c0_i32_0 = arith.constant 0 : i32
    %c0_i32_1 = arith.constant 0 : i32
    return %c0_i32, %c0_i32_0 : i32, i32
  }
  func.func @transform_9(%arg0: i32) -> (i32, i32) {
    %c0_i32 = arith.constant 0 : i32
    %c0_i32_0 = arith.constant 0 : i32
    %c0_i32_1 = arith.constant 0 : i32
    return %c0_i32, %c0_i32_0 : i32, i32
  }
  func.func @transform_10(%arg0: i32) -> (i32, i32) {
    %c0_i32 = arith.constant 0 : i32
    %c0_i32_0 = arith.constant 0 : i32
    %c0_i32_1 = arith.constant 0 : i32
    return %c0_i32, %c0_i32_0 : i32, i32
  }
  func.func @transform_11(%arg0: i32) -> (i32, i32) {
    %c0_i32 = arith.constant 0 : i32
    %c0_i32_0 = arith.constant 0 : i32
    %c0_i32_1 = arith.constant 0 : i32
    return %c0_i32, %c0_i32_0 : i32, i32
  }
  func.func @transform_12(%arg0: i32) -> (i32, i32, i32) {
    %c0_i32 = arith.constant 0 : i32
    %c0_i32_0 = arith.constant 0 : i32
    %c0_i32_1 = arith.constant 0 : i32
    return %arg0, %c0_i32, %c0_i32_0 : i32, i32, i32
  }
}

</mosaic_0001>

<bundles_post_ra>
// kernel: tpu_custom_call.1
= control target key start
LH: loop header
LB: loop body
LE: loop exit
PB: predicated region body
PF: predicated region fallthrough
CT: control target
= control target key end

     0   :  { %6 = vsyncpa [#allocation3], 0  ;;  %s544_s0 = inlined_call_operand.hbm [shape: f32[17,17], index: 0, kind: input, shape index: {}]   ;;  %s545_s1 = inlined_call_operand.hbm [shape: f32[17,17], index: 1, kind: output, shape index: {}]  }
   0x1   :  { %7 = vsyncpa [#allocation4], 0  ;;  %s12_s8 = sshll.u32 %s544_s0, 4  ;;  %s413_s9 = smov [#allocation2]   ;;  %s13_s8 = int_to_ptr.hbm [resolvable:$true] %s12_s8 }
   0x2   :  { %s14_s10 = sshll.u32 %s413_s9, 4  ;;  %s414_s11 = smov 128   ;;  %s15_s10 = int_to_ptr.vmem [resolvable:$true] %s14_s10 }
   0x3   :  { %s415_s12 = smov 8  }
   0x4   :  { %20 = dma.hbm_to_vmem [thread:$0]  %s13_s8, 384, %s15_s10, [#allocation3], %s414_s11, %s414_s11, %s415_s12  }
   0x5   :  { %409 = dma.done.wait [#allocation3], 384  }
   0x6   :  { %410 = vsyncadd [#allocation3], 4294966912  ;;  %v33_v0 = vld [vmem:[#allocation2 + $0x10] sm:$0x1]  ;;  %v31_v1 = vld [vmem:[#allocation2] sm:$0xff]  ;;  %s416_s13 = smov 17   ;;  %v25_v24 = vlaneseq }
   0x7   :  { %41 = vrot.lane.b32.xlu0 %v33_v0, %s416_s13  ;;  %35 = vrot.lane.b32.xlu2 %v31_v1, %s416_s13  ;;  %v32_v2 = vld [vmem:[#allocation2 + $0x8] sm:$0xff]  ;;  %vm34_vm0 = vcmask 1047688   ;;  %s417_s0 = smov 112   ;;  %s418_s14 = smov 127   ;;  %vm295_vm10 = vcmask 1047553   ;;  %vm327_vm13 = vcmask 131072  }
   0x8   :  { %v467_v25 = vshrl.u32 %v25_v24, 7  ;;  %s419_s15 = smov 113   ;;  %s420_s16 = smov 126   ;;  %vm308_vm14 = vcmask 1046528  }
   0x9   :  { %s421_s17 = smov 124   ;;  %s422_s18 = smov 115  }
   0xa   :  { %v470_v26 = vadd.s32 16, %v467_v25  ;;  %v476_v31 = vadd.s32 8, %v467_v25  ;;  %v53_v36 = vand.u32 1, %v467_v25  ;;  %v92_v63 = vand.u32 2, %v467_v25  ;;  %s423_s19 = smov 119   ;;  %s424_s20 = smov 120  }
   0xb   :  { %s425_s21 = smov [#allocation5]   ;;  %s335_s25 = sshll.u32 %s545_s1, 4  ;;  %s336_s25 = int_to_ptr.hbm [resolvable:$true] %s335_s25 }
   0xc   :  { %v55_v27 = vand.u32 1, %v470_v26  ;;  %v54_v32 = vand.u32 1, %v476_v31  ;;  %vm56_vm3 = vcmp.ne.s32.totalorder %v53_v36, 0  ;;  %v94_v45 = vand.u32 2, %v470_v26  ;;  %s333_s22 = sshll.u32 %s425_s21, 4  ;;  %s334_s22 = int_to_ptr.vmem [resolvable:$true] %s333_s22 }
   0xd   :  { %v93_v52 = vand.u32 2, %v476_v31  ;;  %vm95_vm6 = vcmp.ne.s32.totalorder %v92_v63, 0 }
   0xe   :  { %vm58_vm1 = vcmp.ne.s32.totalorder %v55_v27, 0  ;;  %vm57_vm2 = vcmp.ne.s32.totalorder %v54_v32, 0  ;;  %vm97_vm4 = vcmp.ne.s32.totalorder %v94_v45, 0 }
   0xf   :  { %38 = vrot.lane.b32.xlu0 %v32_v2, %s416_s13  ;;  %vm96_vm5 = vcmp.ne.s32.totalorder %v93_v52, 0  ;;  %v302_v52 = vadd.s32 1, %v476_v31 }
  0x61   :  { %v36_v7 = vpop.permute.xlu2 %35 }
  0x62   :  { %v37_v8 = vsel %vm34_vm0, %v36_v7, %v31_v1  ;;  %v142_v7 = vand.u32 4, %v470_v26 }
  0x64   :  { %vm145_vm7 = vcmp.ne.s32.totalorder %v142_v7, 0 }
  0x79   :  { %v42_v3 = vpop.permute.xlu0 %41 }
  0x7a   :  { %v43_v4 = vsel %vm34_vm0, %v42_v3, %v33_v0 }
  0x7b   :  { %48 = vrot.lane.b32.xlu1 %v43_v4, %s416_s13 }
  0x81   :  { %v39_v5 = vpop.permute.xlu0 %38 }
  0x82   :  { %v40_v6 = vsel %vm34_vm0, %v39_v5, %v32_v2 }
  0x83   :  { %46 = vrot.lane.b32.xlu1 %v40_v6, %s416_s13 }
  0x8b   :  { %44 = vrot.lane.b32.xlu1 %v37_v8, %s416_s13 }
  0xed   :  { %v49_v9 = vpop.permute.xlu1 %48 }
  0xee   :  { %v52_v10 = vsel %vm34_vm0, %v49_v9, %v33_v0 }
  0xef   :  { %66 = vrot.lane.b32.xlu2 %v52_v10, %s417_s0 }
  0xf5   :  { %v47_v11 = vpop.permute.xlu1 %46 }
  0xf6   :  { %v51_v12 = vsel %vm34_vm0, %v47_v11, %v32_v2 }
  0xf7   :  { %64 = vrot.lane.b32.xlu0 %v51_v12, %s417_s0 }
  0xfd   :  { %v45_v13 = vpop.permute.xlu1 %44 }
  0xfe   :  { %v50_v14 = vsel %vm34_vm0, %v45_v13, %v31_v1 }
  0xff   :  { %62 = vrot.lane.b32.xlu1 %v50_v14, %s417_s0 }
 0x149   :  { %v67_v15 = vpop.permute.xlu2 %66 }
 0x14a   :  { %77 = vrot.lane.b32.xlu2 %v67_v15, %s416_s13 }
 0x169   :  { %v65_v16 = vpop.permute.xlu0 %64 }
 0x16a   :  { %74 = vrot.lane.b32.xlu0 %v65_v16, %s416_s13 }
 0x171   :  { %v63_v17 = vpop.permute.xlu1 %62 }
 0x172   :  { %71 = vrot.lane.b32.xlu1 %v63_v17, %s416_s13 }
 0x1a4   :  { %v78_v18 = vpop.permute.xlu2 %77 }
 0x1a5   :  { %v79_v19 = vsel %vm34_vm0, %v78_v18, %v67_v15 }
 0x1a6   :  { %84 = vrot.lane.b32.xlu2 %v79_v19, %s416_s13 }
 0x1dc   :  { %v75_v20 = vpop.permute.xlu0 %74 }
 0x1dd   :  { %v76_v21 = vsel %vm34_vm0, %v75_v20, %v65_v16 }
 0x1de   :  { %82 = vrot.lane.b32.xlu0 %v76_v21, %s416_s13 }
 0x1e4   :  { %v72_v22 = vpop.permute.xlu1 %71 }
 0x1e5   :  { %v73_v23 = vsel %vm34_vm0, %v72_v22, %v63_v17  ;;  %v140_v22 = vand.u32 4, %v467_v25 }
 0x1e6   :  { %80 = vrot.lane.b32.xlu1 %v73_v23, %s416_s13 }
 0x1e7   :  { %vm143_vm9 = vcmp.ne.s32.totalorder %v140_v22, 0 }
 0x200   :  { %v85_v28 = vpop.permute.xlu2 %84 }
 0x201   :  { %v88_v29 = vsel %vm34_vm0, %v85_v28, %v67_v15 }
 0x202   :  { %v91_v30 = vsel %vm58_vm1, %v88_v29, %v52_v10 }
 0x203   :  { %105 = vrot.lane.b32.xlu2 %v91_v30, %s417_s0 }
 0x250   :  { %v83_v33 = vpop.permute.xlu0 %82 }
 0x251   :  { %v87_v34 = vsel %vm34_vm0, %v83_v33, %v65_v16 }
 0x252   :  { %v90_v35 = vsel %vm57_vm2, %v87_v34, %v51_v12  ;;  %v141_v12 = vand.u32 4, %v476_v31 }
 0x253   :  { %103 = vrot.lane.b32.xlu0 %v90_v35, %s417_s0 }
 0x254   :  { %vm144_vm8 = vcmp.ne.s32.totalorder %v141_v12, 0 }
 0x258   :  { %v81_v37 = vpop.permute.xlu1 %80 }
 0x259   :  { %v86_v38 = vsel %vm34_vm0, %v81_v37, %v63_v17 }
 0x25a   :  { %v89_v39 = vsel %vm56_vm3, %v86_v38, %v50_v14  ;;  %vm324_vm3 = vcmask 138240  }
 0x25b   :  { %101 = vrot.lane.b32.xlu1 %v89_v39, %s417_s0 }
 0x25d   :  { %v106_v40 = vpop.permute.xlu2 %105 }
 0x25e   :  { %116 = vrot.lane.b32.xlu2 %v106_v40, %s416_s13 }
 0x263   :  { %132 = vrot.lane.b32.xlu1 %v91_v30, %s418_s14 }
 0x2b8   :  { %v117_v41 = vpop.permute.xlu2 %116 }
 0x2b9   :  { %v118_v42 = vsel %vm34_vm0, %v117_v41, %v106_v40 }
 0x2ba   :  { %123 = vrot.lane.b32.xlu2 %v118_v42, %s416_s13  ;;  %v30_v42 = vand.u32 127, %v25_v24 }
 0x2bc   :  { %vm300_vm12 = vcmp.le.s32.totalorder %v30_v42, %v470_v26  ;;  %vm298_vm1 = vcmp.le.s32.totalorder %v30_v42, %v467_v25  ;;  %vm299_vm2 = vcmp.le.s32.totalorder %v30_v42, %v476_v31 }
 0x2c2   :  { %130 = vrot.lane.b32.xlu2 %v90_v35, %s418_s14 }
 0x2c5   :  { %v104_v43 = vpop.permute.xlu0 %103 }
 0x2c6   :  { %113 = vrot.lane.b32.xlu0 %v104_v43, %s416_s13 }
 0x2cd   :  { %v102_v44 = vpop.permute.xlu1 %101 }
 0x2d5   :  { %v133_v47 = vpop.permute.xlu1 %132 }
 0x314   :  { %v124_v46 = vpop.permute.xlu2 %123 }
 0x315   :  { %v127_v48 = vsel %vm34_vm0, %v124_v46, %v106_v40 }
 0x316   :  { %v139_v49 = vsel %vm97_vm4, %v127_v48, %v133_v47 }
 0x317   :  { %153 = vrot.lane.b32.xlu1 %v139_v49, %s419_s15 }
 0x31c   :  { %v131_v54 = vpop.permute.xlu2 %130 }
 0x31f   :  { %128 = vrot.lane.b32.xlu1 %v89_v39, %s418_s14 }
 0x338   :  { %v114_v50 = vpop.permute.xlu0 %113 }
 0x339   :  { %v115_v51 = vsel %vm34_vm0, %v114_v50, %v104_v43 }
 0x33a   :  { %121 = vrot.lane.b32.xlu0 %v115_v51, %s416_s13  ;;  %v301_v51 = vadd.s32 1, %v467_v25 }
 0x33c   :  { %vm304_vm15 = vcmp.eq.s32.totalorder %v30_v42, %v301_v51 }
 0x342   :  { %110 = vrot.lane.b32.xlu0 %v102_v44, %s416_s13 }
 0x389   :  { %v154_v59 = vpop.permute.xlu1 %153 }
 0x391   :  { %v129_v1 = vpop.permute.xlu1 %128 }
 0x3ac   :  { %v122_v53 = vpop.permute.xlu0 %121 }
 0x3ad   :  { %v126_v55 = vsel %vm34_vm0, %v122_v53, %v104_v43  ;;  %v303_v43 = vadd.s32 1, %v470_v26 }
 0x3ae   :  { %v138_v56 = vsel %vm96_vm5, %v126_v55, %v131_v54 }
 0x3af   :  { %151 = vrot.lane.b32.xlu2 %v138_v56, %s419_s15  ;;  %vm306_vm11 = vcmp.eq.s32.totalorder %v30_v42, %v303_v43 }
 0x3b4   :  { %v111_v57 = vpop.permute.xlu0 %110 }
 0x3b5   :  { %v112_v58 = vsel %vm34_vm0, %v111_v57, %v102_v44 }
 0x3b6   :  { %119 = vrot.lane.b32.xlu0 %v112_v58, %s416_s13 }
 0x3b7   :  { %164 = vrot.lane.b32.xlu2 %v154_v59, %s416_s13 }
 0x409   :  { %v152_v60 = vpop.permute.xlu2 %151 }
 0x40a   :  { %161 = vrot.lane.b32.xlu0 %v152_v60, %s416_s13 }
 0x411   :  { %v165_v61 = vpop.permute.xlu2 %164 }
 0x412   :  { %v166_v62 = vsel %vm34_vm0, %v165_v61, %v154_v59 }
 0x413   :  { %171 = vrot.lane.b32.xlu2 %v166_v62, %s416_s13 }
 0x41b   :  { %178 = vrot.lane.b32.xlu2 %v138_v56, %s420_s16 }
 0x428   :  { %v120_v0 = vpop.permute.xlu0 %119 }
 0x429   :  { %v125_v2 = vsel %vm34_vm0, %v120_v0, %v102_v44 }
 0x42a   :  { %v137_v3 = vsel %vm95_vm6, %v125_v2, %v129_v1 }
 0x42b   :  { %149 = vrot.lane.b32.xlu1 %v137_v3, %s419_s15 }
 0x433   :  { %180 = vrot.lane.b32.xlu1 %v139_v49, %s420_s16 }
 0x46d   :  { %v172_v8 = vpop.permute.xlu2 %171 }
 0x46e   :  { %v175_v9 = vsel %vm34_vm0, %v172_v8, %v154_v59 }
 0x475   :  { %v179_v14 = vpop.permute.xlu2 %178 }
 0x47c   :  { %v162_v4 = vpop.permute.xlu0 %161 }
 0x47d   :  { %v163_v5 = vsel %vm34_vm0, %v162_v4, %v152_v60 }
 0x47e   :  { %169 = vrot.lane.b32.xlu0 %v163_v5, %s416_s13 }
 0x49d   :  { %v150_v6 = vpop.permute.xlu1 %149 }
 0x49e   :  { %158 = vrot.lane.b32.xlu0 %v150_v6, %s416_s13 }
 0x4a5   :  { %v181_v10 = vpop.permute.xlu1 %180 }
 0x4a6   :  { %v187_v11 = vsel %vm145_vm7, %v175_v9, %v181_v10 }
 0x4a7   :  { %228 = vrot.lane.b32.xlu1 %v187_v11, %s421_s17 }
 0x4af   :  { %176 = vrot.lane.b32.xlu1 %v137_v3, %s420_s16 }
 0x4f0   :  { %v170_v13 = vpop.permute.xlu0 %169 }
 0x4f1   :  { %v174_v15 = vsel %vm34_vm0, %v170_v13, %v152_v60 }
 0x4f2   :  { %v186_v16 = vsel %vm144_vm8, %v174_v15, %v179_v14 }
 0x4f3   :  { %199 = vrot.lane.b32.xlu2 %v186_v16, %s422_s18 }
 0x510   :  { %v159_v17 = vpop.permute.xlu0 %158 }
 0x511   :  { %v160_v18 = vsel %vm34_vm0, %v159_v17, %v150_v6 }
 0x512   :  { %167 = vrot.lane.b32.xlu0 %v160_v18, %s416_s13 }
 0x519   :  { %v229_v19 = vpop.permute.xlu1 %228 }
 0x51a   :  { %249 = vrot.lane.b32.xlu2 %v229_v19, %s423_s19 }
 0x521   :  { %v177_v27 = vpop.permute.xlu1 %176 }
 0x54d   :  { %v200_v20 = vpop.permute.xlu2 %199 }
 0x54e   :  { %209 = vrot.lane.b32.xlu0 %v200_v20, %s416_s13 }
 0x574   :  { %v250_v21 = vpop.permute.xlu2 %249 }
 0x575   :  { %260 = vrot.lane.b32.xlu2 %v250_v21, %s416_s13 }
 0x584   :  { %v168_v23 = vpop.permute.xlu0 %167 }
 0x585   :  { %v173_v28 = vsel %vm34_vm0, %v168_v23, %v150_v6 }
 0x586   :  { %v185_v29 = vsel %vm143_vm9, %v173_v28, %v177_v27 }
 0x587   :  { %224 = vrot.lane.b32.xlu1 %v185_v29, %s421_s17 }
 0x5c0   :  { %v210_v30 = vpop.permute.xlu0 %209 }
 0x5c1   :  { %v211_v32 = vsel %vm34_vm0, %v210_v30, %v200_v20 }
 0x5c2   :  { %217 = vrot.lane.b32.xlu0 %v211_v32, %s416_s13 }
 0x5cf   :  { %v261_v33 = vpop.permute.xlu2 %260 }
 0x5d0   :  { %v262_v34 = vsel %vm34_vm0, %v261_v33, %v250_v21 }
 0x5d1   :  { %267 = vrot.lane.b32.xlu2 %v262_v34, %s416_s13 }
 0x5f9   :  { %v225_v35 = vpop.permute.xlu1 %224 }
 0x5fa   :  { %272 = vrot.lane.b32.xlu1 %v225_v35, %s424_s20 }
 0x62b   :  { %v268_v36 = vpop.permute.xlu2 %267 }
 0x62c   :  { %v271_v37 = vsel %vm34_vm0, %v268_v36, %v250_v21 }
 0x62d   :  { %291 = vrot.lane.b32.xlu2 %v271_v37, %s418_s14 }
 0x634   :  { %v218_v38 = vpop.permute.xlu0 %217 }
 0x635   :  { %v222_v39 = vsel %vm34_vm0, %v218_v38, %v200_v20  ;;  %vm305_vm0 = vcmp.eq.s32.totalorder %v30_v42, %v302_v52 }
 0x636   :  { %274 = vrot.lane.b32.xlu0 %v222_v39, %s424_s20 }
 0x66c   :  { %v273_v40 = vpop.permute.xlu1 %272 }
 0x66d   :  { %287 = vrot.lane.b32.xlu1 %v273_v40, %s418_s14 }
 0x687   :  { %v292_v46 = vpop.permute.xlu2 %291 }
 0x6a8   :  { %v275_v41 = vpop.permute.xlu0 %274 }
 0x6a9   :  { %289 = vrot.lane.b32.xlu0 %v275_v41, %s418_s14 }
 0x6df   :  { %v288_v44 = vpop.permute.xlu1 %287 }
 0x6e0   :  { %v296_v45 = vrot.slane %v288_v44, 7  ;;  %v309_v53 = vrot.slane %v288_v44, 1 }
 0x6e2   :  { %v297_v47 = vsel %vm295_vm10, %v296_v45, %v292_v46 }
 0x6e3   :  { %v312_v48 = vrot.slane %v297_v47, 1 }
 0x6e5   :  { %v319_v49 = vsel %vm306_vm11, 0.0, %v312_v48 }
 0x6e6   :  { %v323_v50 = vsel %vm300_vm12, %v292_v46, %v319_v49 }
 0x6e7   :  { %328 = vst.msk [vmem:[#allocation5 + $0x10] sm:$0x1] %vm327_vm13, %v323_v50 }
 0x71b   :  { %v290_v24 = vpop.permute.xlu0 %289 }
 0x71c   :  { %v310_v54 = vrot.slane %v290_v24, 1 }
 0x71e   :  { %v311_v26 = vsel %vm308_vm14, %v309_v53, %v310_v54  ;;  %v313_v55 = vsel %vm308_vm14, %v310_v54, %v312_v48 }
 0x71f   :  { %v317_v56 = vsel %vm304_vm15, 0.0, %v311_v26  ;;  %v318_v57 = vsel %vm305_vm0, 0.0, %v313_v55 }
 0x720   :  { %v321_v58 = vsel %vm298_vm1, %v288_v44, %v317_v56  ;;  %v322_v59 = vsel %vm299_vm2, %v290_v24, %v318_v57 }
 0x721   :  { %326 = vst.msk [vmem:[#allocation5 + $0x8] sm:$0xff] %vm324_vm3, %v322_v59 }
 0x722   :  { %325 = vst.msk [vmem:[#allocation5] sm:$0xff] %vm324_vm3, %v321_v58 }
 0x723   :  { %341 = dma.vmem_to_hbm [thread:$0]  %s334_s22, 384, %s336_s25, [#allocation4], %s414_s11, %s414_s11, %s415_s12  }
 0x724   :  { %411 = dma.done.wait [#allocation4], 384  }
 0x725   :  { %412 = vsyncadd [#allocation4], 4294966912 }
 0x726   :  { %346 = vsyncpa [#allocation3], 1 }
 0x727   :  { %347 = vsyncpa [#allocation4], 1 }

// kernel: vit_forward.3
= control target key start
LH: loop header
LB: loop body
LE: loop exit
PB: predicated region body
PF: predicated region fallthrough
CT: control target
= control target key end

     0   :  { %vm30_vm0 = vcmask 523264   ;;  %vm72_vm1 = vcmask 261120   ;;  %s181_s1 = inlined_call_operand.vmem [shape: f32[64,32], index: 1, kind: input, shape index: {}]   ;;  %s182_s2 = inlined_call_operand.vmem [shape: f32[1,32], index: 2, kind: input, shape index: {}]   ;;  %s183_s0 = inlined_call_operand.vmem [shape: f32[32,64], index: 0, kind: input, shape index: {}]   ;;  %s184_s3 = inlined_call_operand.vmem [shape: f32[32,32], index: 3, kind: output, shape index: {}]  }
   0x1   :  { %v25_v0 = vld [vmem:[%s181_s1 + $0x38] sm:$0xff]  ;;  %v24_v1 = vld [vmem:[%s181_s1 + $0x30] sm:$0xff]  ;;  %v23_v2 = vld [vmem:[%s181_s1 + $0x28] sm:$0xff] }
   0x2   :  { %86 = vmatpush.msra.mxu2 %v25_v0  ;;  %87 = vmatpush.msra.mxu3 %v25_v0  ;;  %v22_v3 = vld [vmem:[%s181_s1 + $0x20] sm:$0xff]  ;;  %v21_v4 = vld [vmem:[%s181_s1 + $0x18] sm:$0xff]  ;;  %v20_v5 = vld [vmem:[%s181_s1 + $0x10] sm:$0xff] }
   0x3   :  { %51 = vmatpush.msra.mxu0 %v25_v0  ;;  %85 = vmatpush.msra.mxu1 %v25_v0  ;;  %v19_v6 = vld [vmem:[%s181_s1 + $0x8] sm:$0xff]  ;;  %v18_v7 = vld [vmem:[%s181_s1] sm:$0xff]  ;;  %v16_v8 = vld [vmem:[%s183_s0 + $0x10] sm:$0xff] }
   0x4   :  { %89 = vmatpush.msra.mxu2 %v24_v1  ;;  %90 = vmatpush.msra.mxu3 %v24_v1  ;;  %v17_v9 = vld [vmem:[%s183_s0 + $0x18] sm:$0xff]  ;;  %v14_v10 = vld [vmem:[%s183_s0] sm:$0xff]  ;;  %v15_v11 = vld [vmem:[%s183_s0 + $0x8] sm:$0xff] }
   0x5   :  { %52 = vmatpush.msra.mxu0 %v24_v1  ;;  %88 = vmatpush.msra.mxu1 %v24_v1  ;;  %v109_v12 = vld [vmem:[%s182_s2] ss:$0 sm:$0xff] }
   0x6   :  { %92 = vmatpush.msra.mxu2 %v23_v2  ;;  %93 = vmatpush.msra.mxu3 %v23_v2 }
   0x7   :  { %53 = vmatpush.msra.mxu0 %v23_v2  ;;  %91 = vmatpush.msra.mxu1 %v23_v2 }
   0x8   :  { %95 = vmatpush.msra.mxu2 %v22_v3  ;;  %96 = vmatpush.msra.mxu3 %v22_v3 }
   0x9   :  { %54 = vmatpush.msra.mxu0 %v22_v3  ;;  %94 = vmatpush.msra.mxu1 %v22_v3 }
   0xa   :  { %98 = vmatpush.msra.mxu2 %v21_v4  ;;  %99 = vmatpush.msra.mxu3 %v21_v4 }
   0xb   :  { %55 = vmatpush.msra.mxu0 %v21_v4  ;;  %97 = vmatpush.msra.mxu1 %v21_v4 }
   0xc   :  { %101 = vmatpush.msra.mxu2 %v20_v5  ;;  %102 = vmatpush.msra.mxu3 %v20_v5 }
   0xd   :  { %56 = vmatpush.msra.mxu0 %v20_v5  ;;  %100 = vmatpush.msra.mxu1 %v20_v5 }
   0xe   :  { %104 = vmatpush.msra.mxu2 %v19_v6  ;;  %105 = vmatpush.msra.mxu3 %v19_v6 }
   0xf   :  { %57 = vmatpush.msra.mxu0 %v19_v6  ;;  %103 = vmatpush.msra.mxu1 %v19_v6 }
  0x10   :  { %107 = vmatpush.msra.mxu2 %v18_v7  ;;  %108 = vmatpush.msra.mxu3 %v18_v7 }
  0x11   :  { %83 = vmatmul.msk.f32.vlgmr.msra.gmra.mxu2 %vm30_vm0, %v16_v8  ;;  %84 = vmatmul.msk.f32.vlgmr.msra.gmra.mxu3 %vm30_vm0, %v17_v9 }
  0x12   :  { %58 = vmatpush.msra.mxu0 %v18_v7  ;;  %106 = vmatpush.msra.mxu1 %v18_v7 }
  0x13   :  { %81 = vmatmul.msk.f32.vlgmr.msra.gmra.mxu0 %vm30_vm0, %v14_v10  ;;  %82 = vmatmul.msk.f32.vlgmr.msra.gmra.mxu1 %vm30_vm0, %v15_v11 }
  0x90   :  { %v60_v13 = vpop.f32.mrf.mxu0  ;;  %v63_v14 = vpop.f32.mrf.mxu1 }
  0x91   :  { %v61_v15 = vadd.f32 %v109_v12, %v60_v13  ;;  %v64_v16 = vadd.f32 %v109_v12, %v63_v14 }
  0x93   :  { %73 = vst.msk [vmem:[%s184_s3] sm:$0xff] %vm72_vm1, %v61_v15 }
  0x94   :  { %74 = vst.msk [vmem:[%s184_s3 + $0x8] sm:$0xff] %vm72_vm1, %v64_v16  ;;  %v66_v17 = vpop.f32.mrf.mxu2  ;;  %v69_v18 = vpop.f32.mrf.mxu3 }
  0x95   :  { %v67_v19 = vadd.f32 %v109_v12, %v66_v17  ;;  %v70_v20 = vadd.f32 %v109_v12, %v69_v18 }
  0x97   :  { %75 = vst.msk [vmem:[%s184_s3 + $0x10] sm:$0xff] %vm72_vm1, %v67_v19 }
  0x98   :  { %76 = vst.msk [vmem:[%s184_s3 + $0x18] sm:$0xff] %vm72_vm1, %v70_v20 }

// kernel: vit_forward.5
= control target key start
LH: loop header
LB: loop body
LE: loop exit
PB: predicated region body
PF: predicated region fallthrough
CT: control target
= control target key end

     0   :  { %s3779_s0 = inlined_call_operand.vmem [shape: f32[2,17,32], index: 0, kind: input, shape index: {}]   ;;  %s3780_s1 = inlined_call_operand.vmem [shape: f32[96,32], index: 1, kind: input, shape index: {}]   ;;  %s3781_s2 = inlined_call_operand.vmem [shape: f32[96,1], index: 2, kind: input, shape index: {}]   ;;  %s3782_s3 = inlined_call_operand.vmem [shape: f32[2,16,17], index: 3, kind: input, shape index: {}]   ;;  %s3783_s4 = inlined_call_operand.vmem [shape: f32[32,32], index: 4, kind: input, shape index: {}]   ;;  %s3784_s5 = inlined_call_operand.vmem [shape: f32[1,32], index: 5, kind: input, shape index: {}]   ;;  %s3785_s6 = inlined_call_operand.vmem [shape: f32[1,32], index: 6, kind: input, shape index: {}]   ;;  %s3786_s7 = inlined_call_operand.vmem [shape: f32[1,32], index: 7, kind: input, shape index: {}]   ;;  %s3787_s8 = inlined_call_operand.vmem [shape: f32[32,64], index: 8, kind: input, shape index: {}]   ;;  %s3788_s9 = inlined_call_operand.vmem [shape: f32[1,64], index: 9, kind: input, shape index: {}]   ;;  %s3789_s10 = inlined_call_operand.vmem [shape: f32[64,32], index: 10, kind: input, shape index: {}]   ;;  %s3790_s11 = inlined_call_operand.vmem [shape: f32[1,32], index: 11, kind: input, shape index: {}]   ;;  %s3791_s12 = inlined_call_operand.vmem [shape: f32[1,32], index: 12, kind: input, shape index: {}]   ;;  %s3792_s13 = inlined_call_operand.vmem [shape: f32[1,32], index: 13, kind: input, shape index: {}]   ;;  %s3793_s14 = inlined_call_operand.vmem [shape: f32[32,10], index: 14, kind: input, shape index: {}]   ;;  %s3794_s15 = inlined_call_operand.vmem [shape: f32[1,10], index: 15, kind: input, shape index: {}]   ;;  %s3795_s16 = inlined_call_operand.hbm [shape: f32[2,17,32], index: 16, kind: output, shape index: {0}]   ;;  %s3796_s17 = inlined_call_operand.hbm [shape: f32[2,1,10], index: 17, kind: output, shape index: {1}]  }
   0x1   :  { %3822 = sst [smem:[#allocation12_spill]] %s3779_s0 }
   0x2   :  { %3823 = sst [smem:[#allocation13_spill]] %s3780_s1 }
   0x3   :  { %3824 = sst [smem:[#allocation14_spill]] %s3781_s2 }
   0x4   :  { %3825 = sst [smem:[#allocation15_spill]] %s3782_s3 }
   0x5   :  { %3826 = sst [smem:[#allocation16_spill]] %s3783_s4 }
   0x6   :  { %3827 = sst [smem:[#allocation17_spill]] %s3784_s5 }
   0x7   :  { %3828 = sst [smem:[#allocation18_spill]] %s3785_s6 }
   0x8   :  { %3829 = sst [smem:[#allocation19_spill]] %s3786_s7 }
   0x9   :  { %3830 = sst [smem:[#allocation20_spill]] %s3787_s8 }
   0xa   :  { %23 = vsyncpa [#allocation3], 0 }
   0xb   :  { %25 = vsyncpa [#allocation3 + $0x1], 0 }
   0xc   :  { %26 = vsyncpa [#allocation5], 0 }
   0xd   :  { %28 = vsyncpa [#allocation5 + $0x1], 0  ;;  %s2920_s24 = smov 0   ;;  %s2922_s25 = smov 0  }
   0xe   :  { %s2924_s26 = smov 0   ;;  %s2926_s27 = smov 0  }
   0xf LB: > { %3831 = sst [smem:[#allocation8_spill]] %s2818_s26  ;;  %s2941_s28 = sadd.s32 4294967295, %s2822_s27   ;;  %s2822_s27 = sphi %s2926_s27, %s3915_s27   ;;  %s2818_s26 = sphi %s2924_s26, %s3917_s26   ;;  %s2814_s25 = sphi %s2922_s25, %s3919_s25   ;;  %s2810_s24 = sphi %s2920_s24, %s3918_s24  }
  0x10   : > { %s2448_s29 = sadd.s32 4294967294, %s2822_s27   ;;  %s2945_s0 = sadd.s32 1, %s2822_s27  }
  0x11   : > { %3832 = sst [smem:[#allocation9_spill]] %s2945_s0  ;;  %s382_s30 = sadd.s32 1, %s2818_s26 }
  0x12   : > { %s379_s18 = ssub.s32 %s2822_s27, %s2945_s0  ;;  %p392_p0 = scmp.ne.s32.totalorder %s2818_s26, %s2814_s25 }
  0x13   : > { %p380_p1 = scmp.eq.s32.totalorder %s379_s18, 0  ;;  %p393_p2 = scmp.eq.s32.totalorder %s2941_s28, 1 }
  0x14   : > { %p398_p3 = scmp.ne.s32.totalorder %s2814_s25, %s2810_s24  ;;  %p399_p4 = scmp.eq.s32.totalorder %s2448_s29, 1 }
  0x15   : > { %s2956_s19 = scalar_select %p380_p1, %s2818_s26, %s382_s30  }
  0x16   : > { %p2958_p5 = por %p393_p2, %p392_p0  ;;  %p2962_p6 = por %p399_p4, %p398_p3 }
  0x17   : > { %3833 = sst [smem:[#allocation10_spill]] %s2956_s19  ;;  %p2451_p7 = scmp.ge.s32.totalorder %s2822_s27, 1 }
  0x18   : > { %s3835_s20 = scalar_select %p2962_p6, 1, 0 }
  0x19   : > { %p496_p8 = scmp.lt.s32.totalorder %s2822_s27, 3 }
  0x1a   : > { %3836 = sst [smem:[#allocation11_spill]] %s3835_s20 }
  0x1b   : > { %p497_p9 = pnand %p2451_p7, %p496_p8 }
  0x1c   : > { %p552_p10 = scmp.lt.s32.totalorder (!%p497_p9), %s2941_s28, 1  ;;  %s3837_s2 = sld [smem:[#allocation14_spill]] (!%p497_p9) }
  0x1d   : > { %500 = sbr.rel (%p497_p9) target bundleno = 4204 (0x106c), region = 84  ;;  %s3838_s0 = sld [smem:[#allocation12_spill]] (!%p497_p9) }
  0x1e   : > { %s3840_s3 = sld [smem:[#allocation15_spill]] (!%p497_p9)  ;;  %s3679_s22 = sand.u32 (!%p497_p9), 1, %s2814_s25  }
  0x1f   : > { %s3871_s4 = sld [smem:[#allocation16_spill]] (!%p497_p9)  ;;  %s2626_s29 = smul.u32 (!%p497_p9), 24, %s2941_s28 }
  0x20   : > { %s3881_s5 = sld [smem:[#allocation17_spill]] (!%p497_p9) }
  0x21   : > { %s3904_s8 = sld [smem:[#allocation20_spill]] (!%p497_p9) }
  0x22   : > { %v572_v0 = vld [vmem:[%s3837_s2] sm:$0xff]  ;;  %v2824_v1 = vmov 0   ;;  %s553_s23 = scalar_select %p552_p10, %s2941_s28, 1  ;;  %v577_v2 = vld [vmem:[%s3837_s2 + $0x28] sm:$0xff]  ;;  %vm3818_vm0 = vcmask 261120   ;;  %v574_v8 = vld [vmem:[%s3837_s2 + $0x10] sm:$0xff]  ;;  %v743_v23 = vlaneseq }
  0x23   : > { %2677 = vset.pattern.permute.xlu0 %v2824_v1  ;;  %2678 = vset.pattern.permute.xlu2 %v2824_v1  ;;  %v573_v4 = vld [vmem:[%s3837_s2 + $0x8] sm:$0xff]  ;;  %v576_v6 = vld [vmem:[%s3837_s2 + $0x20] sm:$0xff]  ;;  %vm3810_vm1 = vcmask 1040384   ;;  %v2825_v31 = vmov 0.0   ;;  %vm3811_vm4 = vcmask 130048   ;;  %v2826_v33 = vmov 1.0  }
  0x24   : > { %586 = vperm.xlu0 %2677, %v572_v0   ;;  %s2625_s18 = smul.u32 24, %s553_s23  ;;  %611 = vperm.xlu2 %2678, %v577_v2   ;;  %v751_v12 = vld [vmem:[%s3840_s3 + $0x8] sm:$0xff]  ;;  %v750_v13 = vld [vmem:[%s3840_s3] sm:$0xff]  ;;  %v3014_v24 = vshrl.u32 %v743_v23, 7  ;;  %v3022_v27 = vand.u32 127, %v743_v23  ;;  %vm841_vm6 = vcmask 138240  }
  0x25   : > { %808 = vmatpush.msra.mxu1 %v751_v12  ;;  %s3906_s6 = sld [smem:[#allocation18_spill]] }
  0x26   : > { %s2979_s20 = scalar_lea.vmem %s3838_s0, %s2625_s18  ;;  %s3839_s18 = sld [smem:[#allocation13_spill]]  ;;  %v3017_v25 = vadd.s32 16, %v3014_v24  ;;  %v3020_v26 = vadd.s32 8, %v3014_v24  ;;  %v3062_v37 = vadd.s32 1, %v3014_v24  ;;  %v3097_v50 = vadd.s32 2, %v3014_v24 }
  0x27   : > { %v559_v3 = vld [vmem:[%s2979_s20 + $0x10] sm:$0x1]  ;;  %v558_v5 = vld [vmem:[%s2979_s20 + $0x8] sm:$0xff]  ;;  %v557_v7 = vld [vmem:[%s2979_s20] sm:$0xff]  ;;  %809 = vmatpush.msra.mxu1 %v750_v13  ;;  %v881_v57 = vand.u32 1, %v3014_v24  ;;  %s3907_s7 = sld [smem:[#allocation19_spill]] }
  0x28   : > { %2453 = vmatpush.xpose.msk.msra.mxu0 %vm3818_vm0, %v559_v3  ;;  %v3025_v28 = vadd.s32 1, %v3017_v25  ;;  %v3028_v29 = vadd.s32 1, %v3020_v26  ;;  %vm3804_vm5 = vcmp.eq.s32.totalorder %v3062_v37, %v3022_v27  ;;  %v933_v41 = vadd.s32 2, %v3017_v25  ;;  %s2326_s0 = scalar_lea.sflag [#allocation3], %s3679_s22 }
  0x29   : > { %v932_v42 = vadd.s32 2, %v3020_v26  ;;  %vm3808_vm10 = vcmp.eq.s32.totalorder %v3097_v50, %v3022_v27  ;;  %v1001_v51 = vadd.s32 4, %v3017_v25  ;;  %v1000_v52 = vadd.s32 4, %v3020_v26 }
  0x2a   : > { %v2473_v30 = vadd.s32 4294967279, %v3025_v28  ;;  %vm3807_vm3 = vcmp.eq.s32.totalorder %v3028_v29, %v3022_v27  ;;  %v2491_v43 = vadd.s32 4294967279, %v933_v41  ;;  %vm3115_vm14 = vcmp.ne.s32.totalorder %v881_v57, 0 }
  0x2b   : > { %vm935_vm7 = vcmp.ge.s32.totalorder %v932_v42, 17  ;;  %v2490_v44 = vadd.s32 4294967279, %v932_v42  ;;  %v2503_v53 = vadd.s32 4294967279, %v1001_v51  ;;  %vm1003_vm11 = vcmp.ge.s32.totalorder %v1000_v52, 17 }
  0x2c   : > { %591 = vperm.xlu0 %2677, %v573_v4   ;;  %2454 = vmatpush.xpose.msk.msra.mxu0 %vm3818_vm0, %v558_v5  ;;  %v560_v9 = vld [vmem:[%s3839_s18] sm:$0xff]  ;;  %v561_v10 = vld [vmem:[%s3839_s18 + $0x8] sm:$0xff]  ;;  %v562_v11 = vld [vmem:[%s3839_s18 + $0x10] sm:$0xff]  ;;  %vm834_vm2 = vcmp.eq.s32.totalorder %v2473_v30, %v3022_v27  ;;  %vm945_vm8 = vcmp.eq.s32.totalorder %v2491_v43, %v3022_v27  ;;  %v2502_v54 = vadd.s32 4294967279, %v1000_v52  ;;  %v882_v61 = vand.u32 1, %v3020_v26 }
  0x2d   : > { %606 = vperm.xlu2 %2678, %v576_v6   ;;  %v3033_v32 = vsel %vm834_vm2, 1.0, %v2825_v31  ;;  %v3080_v45 = vsel %vm935_vm7, %v2490_v44, %v932_v42  ;;  %v3083_v46 = vsel %vm945_vm8, 1.0, %v2825_v31  ;;  %vm1013_vm12 = vcmp.eq.s32.totalorder %v2503_v53, %v3022_v27  ;;  %v563_v6 = vld [vmem:[%s3839_s18 + $0x18] sm:$0xff] }
  0x2e   : > { %2477 = vmatpush.msk.msra.mxu2 %vm3810_vm1, %v3033_v32  ;;  %2483 = vmatpush.msk.msra.mxu3 %vm3810_vm1, %v3033_v32  ;;  %vm3809_vm9 = vcmp.eq.s32.totalorder %v3080_v45, %v3022_v27  ;;  %v1009_v55 = vsel %vm1003_vm11, %v2502_v54, %v1000_v52  ;;  %v2506_v56 = vsel %vm1013_vm12, 1.0, %v2825_v31  ;;  %vm3123_vm15 = vcmp.ne.s32.totalorder %v882_v61, 0 }
  0x2f   : > { %2495 = vmatpush.msk.msrb.mxu1 %vm3810_vm1, %v3083_v46  ;;  %vm1012_vm13 = vcmp.eq.s32.totalorder %v1009_v55, %v3022_v27  ;;  %v999_v5 = vadd.s32 4, %v3014_v24  ;;  %v926_v30 = vand.u32 2, %v3020_v26  ;;  %v927_v41 = vand.u32 2, %v3017_v25 }
  0x30   : > { %2455 = vmatpush.xpose.msk.msra.mxu0 %vm3818_vm0, %v557_v7  ;;  %2478 = vmatpush.msk.msra.mxu2 %vm3807_vm3, %v2826_v33  ;;  %v564_v7 = vld [vmem:[%s3839_s18 + $0x20] sm:$0xff]  ;;  %v993_v57 = vand.u32 4, %v3014_v24 }
  0x31   : > { %2484 = vmatpush.msk.msra.mxu3 %vm3807_vm3, %v2826_v33  ;;  %2496 = vmatpush.msk.msrb.mxu1 %vm3809_vm9, %v2826_v33  ;;  %vm1011_vm7 = vcmp.eq.s32.totalorder %v999_v5, %v3022_v27  ;;  %v3857_v5 = vmov 0  ;;  %vm3817_vm3 = vcmp.eq.s32.totalorder %v3022_v27, %v3062_v37  ;;  %vm3815_vm9 = vcmp.eq.s32.totalorder %v3022_v27, %v3025_v28 }
  0x32   : > { %2479 = vmatpush.msk.msra.mxu2 %vm3804_vm5, %v2826_v33 }
  0x33   : > { %2456 = vmatmul.msk.f32.vlgmr.msra.gmra.mxu0 %vm3818_vm0, %v560_v9  ;;  %2485 = vmatpush.msk.msra.mxu3 %vm3804_vm5, %v2826_v33  ;;  %v1135_v9 = vadd.s32 16, %v3017_v25 }
  0x34   : > { %596 = vperm.xlu0 %2677, %v574_v8   ;;  %2497 = vmatpush.msk.msrb.mxu1 %vm3808_vm10, %v2826_v33  ;;  %v1068_v8 = vadd.s32 8, %v3017_v25  ;;  %vm3816_vm10 = vcmp.eq.s32.totalorder %v3022_v27, %v3028_v29 }
  0x35   : > { %2507 = vmatpush.msk.msrb.mxu2 %vm3810_vm1, %v2506_v56  ;;  %2578 = vmatpush.msk.msrb.mxu0 %vm3810_vm1, %v2506_v56  ;;  %v2527_v13 = vadd.s32 4294967279, %v1135_v9 }
  0x36   : > { %v2515_v12 = vadd.s32 4294967279, %v1068_v8  ;;  %v575_v8 = vld [vmem:[%s3837_s2 + $0x18] sm:$0xff] }
  0x37   : > { %2508 = vmatpush.msk.msrb.mxu2 %vm1012_vm13, %v2826_v33  ;;  %2579 = vmatpush.msk.msrb.mxu0 %vm1012_vm13, %v2826_v33  ;;  %vm1147_vm12 = vcmp.eq.s32.totalorder %v2527_v13, %v3022_v27 }
  0x38   : > { %vm1080_vm11 = vcmp.eq.s32.totalorder %v2515_v12, %v3022_v27 }
  0x39   : > { %2509 = vmatpush.msk.msrb.mxu2 %vm1011_vm7, %v2826_v33  ;;  %2580 = vmatpush.msk.msrb.mxu0 %vm1011_vm7, %v2826_v33 }
  0x3b   : > { %2457 = vmatmul.msk.f32.gmra.mxu0 %vm3818_vm0, %v561_v10  ;;  %v1067_v10 = vadd.s32 8, %v3020_v26 }
  0x3d   : > { %vm1070_vm8 = vcmp.ge.s32.totalorder %v1067_v10, 17 }
  0x43   : > { %2458 = vmatmul.msk.f32.gmra.mxu0 %vm3818_vm0, %v562_v11  ;;  %v1134_v11 = vadd.s32 16, %v3020_v26 }
  0x4b   : > { %2459 = vmatmul.msk.f32.gmra.mxu0 %vm3818_vm0, %v563_v6 }
  0x53   : > { %2460 = vmatmul.msk.f32.gmra.mxu0 %vm3818_vm0, %v564_v7 }
  0x7e   : > { %v612_v51 = vpop.permute.xlu2 %611 }
  0x87   : > { %v607_v53 = vpop.permute.xlu2 %606 }
  0x96   : > { %v587_v14 = vpop.permute.xlu0 %586 }
  0x9e   : > { %v592_v17 = vpop.permute.xlu0 %591 }
  0xa6   : > { %v597_v20 = vpop.permute.xlu0 %596 }
  0xb0   : > { %v707_v15 = vpop.f32.mrf.mxu0 }
  0xb1   : > { %v708_v16 = vadd.f32 %v707_v15, %v587_v14  ;;  %v2514_v14 = vadd.s32 4294967279, %v1067_v10  ;;  %v3154_v15 = vadd.s32 4294967279, %v1134_v11 }
  0xb3   : > { %752 = vxpose.xlu1.b32.start [1/2] (short) (narrow) %v708_v16, 24  ;;  %v3158_v16 = vsel %vm1070_vm8, %v2514_v14, %v1067_v10  ;;  %vm3802_vm7 = vcmp.eq.s32.totalorder %v3154_v15, %v3022_v27 }
  0xb4   : > { %vm3803_vm13 = vcmp.eq.s32.totalorder %v3158_v16, %v3022_v27 }
  0xb8   : > { %v710_v18 = vpop.f32.mrf.mxu0 }
  0xb9   : > { %v711_v19 = vadd.f32 %v710_v18, %v592_v17  ;;  %v3161_v17 = vsel %vm1080_vm11, 1.0, %v2825_v31  ;;  %v3164_v18 = vsel %vm1147_vm12, 1.0, %v2825_v31  ;;  %vm3195_vm11 = vcmp.ne.s32.totalorder %v926_v30, 0  ;;  %v568_v30 = vld [vmem:[%s3839_s18 + $0x40] sm:$0xff] }
  0xba   : > { %2519 = vmatpush.msk.msrb.mxu3 %vm3810_vm1, %v3161_v17  ;;  %vm3203_vm12 = vcmp.ne.s32.totalorder %v927_v41, 0 }
  0xbb   : > { %753 = vxpose.xlu1.b32.end [2/2] (short) (narrow) %v711_v19, 24  ;;  %v565_v19 = vld [vmem:[%s3839_s18 + $0x28] sm:$0xff] }
  0xbc   : > { %2520 = vmatpush.msk.msrb.mxu3 %vm3803_vm13, %v2826_v33  ;;  %2461 = vmatmul.msk.f32.gmra.mxu0 %vm3818_vm0, %v565_v19  ;;  %vm3806_vm13 = vcmp.eq.s32.totalorder %v3020_v26, %v3022_v27  ;;  %v3274_v19 = vsel %vm3817_vm3, 1.0, %v2825_v31 }
  0xbe   : > { %2521 = vmatpush.msk.msrb.mxu3 %vm3806_vm13, %v2826_v33 }
  0xc0   : > { %v713_v21 = vpop.f32.mrf.mxu0 }
  0xc1   : > { %v714_v22 = vadd.f32 %v713_v21, %v597_v20  ;;  %v925_v20 = vand.u32 2, %v3014_v24 }
  0xc3   : > { %1440 = vxpose.xlu2.b32.start [1/2] (short) (narrow) %v714_v22, 24  ;;  %vm3187_vm8 = vcmp.ne.s32.totalorder %v925_v20, 0  ;;  %v3284_v20 = vsel %vm3816_vm10, 1.0, %v2825_v31 }
 0x10e   : > { %2679 = vset.pattern.permute.xlu1 %v2824_v1  ;;  %v883_v1 = vand.u32 1, %v3017_v25 }
 0x110   : > { %vm3131_vm2 = vcmp.ne.s32.totalorder %v883_v1, 0 }
 0x11d   : > { %601 = vperm.xlu1 %2679, %v575_v8  }
 0x157   : > { %v3049_v34 = vpop.trf.xlu1 }
 0x158   : > { %2468 = vmatmul.msk.f32.vlgmr.msra.gmra.mxu1 %vm3811_vm4, %v3049_v34 }
 0x159   : > { %2531 = vmatpush.msk.msra.mxu1 %vm3810_vm1, %v3164_v18 }
 0x15b   : > { %2532 = vmatpush.msk.msra.mxu1 %vm3802_vm7, %v2826_v33  ;;  %vm1136_vm7 = vcmp.ge.s32.totalorder %v3017_v25, 17 }
 0x15f   : > { %v3053_v35 = vpop.trf.xlu1 }
 0x160   : > { %2469 = vmatmul.msk.f32.gmra.mxu1 %vm3811_vm4, %v3053_v35 }
 0x167   : > { %v3057_v36 = vpop.trf.xlu1 }
 0x168   : > { %2470 = vmatmul.msk.f32.gmra.mxu1 %vm3811_vm4, %v3057_v36 }
 0x1d5   : > { %v811_v38 = vpop.f32.mrf.mxu1 }
 0x1d6   : > { %2480 = vmatmul.msk.f32.vlgmr.msra.gmra.mxu2 %vm841_vm6, %v811_v38 }
 0x1dd   : > { %v814_v39 = vpop.f32.mrf.mxu1 }
 0x1de   : > { %2481 = vmatmul.msk.f32.gmra.mxu2 %vm841_vm6, %v814_v39 }
 0x1e5   : > { %v817_v40 = vpop.f32.mrf.mxu1 }
 0x1e6   : > { %2482 = vmatmul.msk.f32.gmra.mxu2 %vm841_vm6, %v817_v40 }
 0x259   : > { %v872_v47 = vpop.f32.mrf.mxu2 }
 0x25a   : > { %2486 = vmatmul.msk.f32.vlgmr.msra.gmra.mxu3 %vm841_vm6, %v872_v47 }
 0x261   : > { %v875_v48 = vpop.f32.mrf.mxu2 }
 0x262   : > { %2487 = vmatmul.msk.f32.gmra.mxu3 %vm841_vm6, %v875_v48 }
 0x269   : > { %v878_v49 = vpop.f32.mrf.mxu2 }
 0x26a   : > { %2488 = vmatmul.msk.f32.gmra.mxu3 %vm841_vm6, %v878_v49 }
 0x2dd   : > { %v913_v59 = vpop.f32.mrf.mxu3 }
 0x2de   : > { %v922_v60 = vsel %vm3115_vm14, %v913_v59, %v872_v47  ;;  %v2525_v47 = vadd.s32 4294967279, %v3017_v25 }
 0x2df   : > { %2498 = vmatmul.msk.f32.vlgmr.msrb.gmra.mxu1 %vm841_vm6, %v922_v60 }
 0x2e5   : > { %v916_v63 = vpop.f32.mrf.mxu3 }
 0x2e6   : > { %v923_v0 = vsel %vm3123_vm15, %v916_v63, %v875_v48  ;;  %v3213_v48 = vsel %vm1136_vm7, %v2525_v47, %v3017_v25  ;;  %vm3228_vm7 = vcmp.ne.s32.totalorder %v993_v57, 0  ;;  %v994_v63 = vand.u32 4, %v3020_v26 }
 0x2e7   : > { %2499 = vmatmul.msk.f32.gmra.mxu1 %vm841_vm6, %v923_v0  ;;  %vm3805_vm5 = vcmp.eq.s32.totalorder %v3213_v48, %v3022_v27 }
 0x2e8   : > { %2533 = vmatpush.msk.msra.mxu1 %vm3805_vm5, %v2826_v33  ;;  %vm3237_vm5 = vcmp.ne.s32.totalorder %v994_v63, 0 }
 0x2ed   : > { %v919_v3 = vpop.f32.mrf.mxu3 }
 0x2ee   : > { %v924_v4 = vsel %vm3131_vm2, %v919_v3, %v878_v49  ;;  %v716_v49 = vpop.f32.mrf.mxu0 }
 0x2ef   : > { %2500 = vmatmul.msk.f32.gmra.mxu1 %vm841_vm6, %v924_v4 }
 0x2f6   : > { %v719_v52 = vpop.f32.mrf.mxu0 }
 0x2f7   : > { %v720_v56 = vadd.f32 %v719_v52, %v607_v53 }
 0x2fe   : > { %v722_v54 = vpop.f32.mrf.mxu0 }
 0x2ff   : > { %v723_v55 = vadd.f32 %v722_v54, %v612_v51 }
 0x301   : > { %1265 = vmatpush.msra.mxu3 %v723_v55 }
 0x303   : > { %1266 = vmatpush.msra.mxu3 %v720_v56 }
 0x35c   : > { %v981_v22 = vpop.f32.mrf.mxu1 }
 0x35d   : > { %v990_v23 = vsel %vm3187_vm8, %v981_v22, %v922_v60  ;;  %v3294_v22 = vsel %vm3815_vm9, 1.0, %v2825_v31  ;;  %v569_v31 = vld [vmem:[%s3839_s18 + $0x48] sm:$0xff] }
 0x35e   : > { %2510 = vmatmul.msk.f32.vlgmr.msrb.gmra.mxu2 %vm841_vm6, %v990_v23 }
 0x364   : > { %v984_v39 = vpop.f32.mrf.mxu1 }
 0x365   : > { %v991_v40 = vsel %vm3195_vm11, %v984_v39, %v923_v0  ;;  %v3855_v0 = vmov 0 }
 0x366   : > { %2511 = vmatmul.msk.f32.gmra.mxu2 %vm841_vm6, %v991_v40  ;;  %v3856_v0 = vsel %vm3237_vm5, 4294967295, %v3855_v0 }
 0x36c   : > { %v987_v43 = vpop.f32.mrf.mxu1 }
 0x36d   : > { %v992_v44 = vsel %vm3203_vm12, %v987_v43, %v924_v4  ;;  %v995_v4 = vand.u32 4, %v3017_v25 }
 0x36e   : > { %2512 = vmatmul.msk.f32.gmra.mxu2 %vm841_vm6, %v992_v44 }
 0x36f   : > { %vm3245_vm13 = vcmp.ne.s32.totalorder %v995_v4, 0 }
 0x370   : > { %v3858_v5 = vsel %vm3245_vm13, 4294967295, %v3857_v5 }
 0x3e1   : > { %v1049_v60 = vpop.f32.mrf.mxu2 }
 0x3e2   : > { %v1058_v61 = vsel %vm3228_vm7, %v1049_v60, %v990_v23  ;;  %v567_v23 = vld [vmem:[%s3839_s18 + $0x38] sm:$0xff]  ;;  %v581_v60 = vld [vmem:[%s3837_s2 + $0x48] sm:$0xff] }
 0x3e3   : > { %2522 = vmatmul.msk.f32.vlgmr.msrb.gmra.mxu3 %vm841_vm6, %v1058_v61  ;;  %2534 = vmatmul.msk.f32.vlgmr.msra.gmra.mxu1 %vm841_vm6, %v1058_v61 }
 0x3e9   : > { %v1052_v1 = vpop.f32.mrf.mxu2 }
 0x3ea   : > { %v1059_v3 = vsel %vm3237_vm5, %v1052_v1, %v991_v40 }
 0x3eb   : > { %2523 = vmatmul.msk.f32.gmra.mxu3 %vm841_vm6, %v1059_v3 }
 0x3f1   : > { %v1055_v6 = vpop.f32.mrf.mxu2 }
 0x3f2   : > { %v1060_v7 = vsel %vm3245_vm13, %v1055_v6, %v992_v44  ;;  %vm3865_vm13 = vcmask 1040384  }
 0x3f3   : > { %2524 = vmatmul.msk.f32.gmra.mxu3 %vm841_vm6, %v1060_v7 }
 0x3fb   : > { %2544 = vmatmul.msk.f32.vlgmr.msra.gmra.mxu3 %vm3811_vm4, %v3049_v34  ;;  %v602_v34 = vpop.permute.xlu1 %601 }
 0x3fc   : > { %v717_v13 = vadd.f32 %v716_v49, %v602_v34 }
 0x3fe   : > { %1441 = vxpose.xlu2.b32.end [2/2] (short) (narrow) %v717_v13, 24 }
 0x403   : > { %2545 = vmatmul.msk.f32.gmra.mxu3 %vm3811_vm4, %v3053_v35  ;;  %v566_v35 = vld [vmem:[%s3839_s18 + $0x30] sm:$0xff] }
 0x404   : > { %2462 = vmatmul.msk.f32.gmra.mxu0 %vm3818_vm0, %v566_v35 }
 0x40b   : > { %2546 = vmatmul.msk.f32.gmra.mxu3 %vm3811_vm4, %v3057_v36  ;;  %vm3813_vm4 = vcmp.le.s32.totalorder %v3022_v27, %v3020_v26 }
 0x40c   : > { %2463 = vmatmul.msk.f32.gmra.mxu0 %vm3818_vm0, %v567_v23 }
 0x414   : > { %2464 = vmatmul.msk.f32.gmra.mxu0 %vm3818_vm0, %v568_v30 }
 0x41c   : > { %2465 = vmatmul.msk.f32.gmra.mxu0 %vm3818_vm0, %v569_v31 }
 0x460   : > { %v1183_v9 = vpop.f32.mrf.mxu1 }
 0x461   : > { %v2556_v9 = vld [vmem:[%s3840_s3 + $0x18] sm:$0xff] }
 0x462   : > { %1495 = vmatpush.msrb.mxu3 %v2556_v9 }
 0x466   : > { %v1116_v10 = vpop.f32.mrf.mxu3 }
 0x467   : > { %v2555_v10 = vld [vmem:[%s3840_s3 + $0x10] sm:$0xff]  ;;  %s2341_s3 = scalar_lea.hbm %s3795_s16, %s2626_s29 }
 0x468   : > { %1496 = vmatpush.msrb.mxu3 %v2555_v10 }
 0x46e   : > { %v1119_v11 = vpop.f32.mrf.mxu3 }
 0x46f   : > { %2535 = vmatmul.msk.f32.gmra.mxu1 %vm841_vm6, %v1119_v11 }
 0x476   : > { %v1122_v12 = vpop.f32.mrf.mxu3 }
 0x477   : > { %2536 = vmatmul.msk.f32.gmra.mxu1 %vm841_vm6, %v1060_v7 }
 0x47e   : > { %v1268_v39 = vpop.f32.mrf.mxu3 }
 0x486   : > { %v1271_v53 = vpop.f32.mrf.mxu3 }
 0x48e   : > { %v1274_v3 = vpop.f32.mrf.mxu3 }
 0x48f   : > { %v3340_v8 = vpop.trf.xlu2 }
 0x497   : > { %v3354_v12 = vpop.trf.xlu2 }
 0x4ec   : > { %v1186_v36 = vpop.f32.mrf.mxu1 }
 0x4f4   : > { %v1189_v14 = vpop.f32.mrf.mxu1 }
 0x4f5   : > { %2540 = vmatpush.msk.msra.mxu2 %vm3810_vm1, %v1189_v14  ;;  %vm3812_vm1 = vcmp.le.s32.totalorder %v3022_v27, %v3014_v24 }
 0x4f7   : > { %1230 = vmatpush.msra.mxu2 %v1119_v11 }
 0x4f9   : > { %1231 = vmatpush.msra.mxu2 %v1058_v61 }
 0x4fa   : > { %2541 = vmatmul.msk.f32.vlgmr.msra.gmra.mxu2 %vm841_vm6, %v3274_v19 }
 0x502   : > { %2542 = vmatmul.msk.f32.gmra.mxu2 %vm841_vm6, %v3284_v20 }
 0x50a   : > { %2543 = vmatmul.msk.f32.gmra.mxu2 %vm841_vm6, %v3294_v22 }
 0x57d   : > { %v1233_v40 = vpop.f32.mrf.mxu2 }
 0x57e   : > { %v1245_v41 = vsel %vm3817_vm3, 0.0, %v1233_v40  ;;  %vm3862_vm3 = vcmp.eq.s32.totalorder %v3097_v50, %v3022_v27 }
 0x57f   : > { %v1248_v43 = vsel %vm3812_vm1, %v1058_v61, %v1245_v41  ;;  %vm3814_vm1 = vcmp.le.s32.totalorder %v3022_v27, %v3017_v25 }
 0x580   : > { %v1269_v44 = vadd.f32 %v1268_v39, %v1248_v43 }
 0x582   : > { %v1277_v47 = vmul.f32 0.25, %v1269_v44 }
 0x584   : > { %v1280_v49 = vsel %vm841_vm6, %v1277_v47, -inf }
 0x585   : > { %v1236_v51 = vpop.f32.mrf.mxu2  ;;  %1281 = vmax.xlane.f32.xlu0 %v1280_v49  ;;  %v579_v49 = vld [vmem:[%s3837_s2 + $0x38] sm:$0xff] }
 0x586   : > { %v1246_v52 = vsel %vm3816_vm10, 0.0, %v1236_v51  ;;  %vm3861_vm10 = vcmp.eq.s32.totalorder %v3080_v45, %v3022_v27  ;;  %v578_v51 = vld [vmem:[%s3837_s2 + $0x30] sm:$0xff] }
 0x587   : > { %v1249_v54 = vsel %vm3813_vm4, %v1119_v11, %v1246_v52  ;;  %vm3819_vm4 = vcmask 131072   ;;  %v3352_v11 = vpop.f32.mrf.mxu0 }
 0x588   : > { %v1272_v55 = vadd.f32 %v1271_v53, %v1249_v54 }
 0x58a   : > { %v1278_v56 = vmul.f32 0.25, %v1272_v55 }
 0x58c   : > { %v1283_v57 = vsel %vm841_vm6, %v1278_v56, -inf }
 0x58d   : > { %1284 = vmax.xlane.f32.xlu2 %v1283_v57  ;;  %v1239_v61 = vpop.f32.mrf.mxu2 }
 0x58e   : > { %v1247_v63 = vsel %vm3815_vm9, 0.0, %v1239_v61  ;;  %vm3860_vm9 = vcmask 1040384  }
 0x58f   : > { %v1250_v1 = vsel %vm3814_vm1, %v1189_v14, %v1247_v63  ;;  %vm3859_vm1 = vcmask 130048   ;;  %2572 = vmatpush.msk.msra.mxu3 %vm3860_vm9, %v3083_v46  ;;  %v3366_v34 = vpop.f32.mrf.mxu0  ;;  %v3368_v46 = vpop.trf.xlu2 }
 0x590   : > { %v1275_v4 = vadd.f32 %v1274_v3, %v1250_v1  ;;  %2557 = vmatmul.msk.f32.vlgmr.msrb.gmra.mxu3 %vm3859_vm1, %v3340_v8  ;;  %vm3863_vm0 = vmmov %vm3859_vm1 }
 0x591   : > { %2573 = vmatpush.msk.msra.mxu3 %vm3861_vm10, %v2826_v33  ;;  %vm3864_vm1 = vmmov %vm3863_vm0 }
 0x592   : > { %v1279_v6 = vmul.f32 0.25, %v1275_v4 }
 0x593   : > { %2574 = vmatpush.msk.msra.mxu3 %vm3862_vm3, %v2826_v33 }
 0x594   : > { %v1287_v7 = vsel %vm3819_vm4, %v1279_v6, -inf }
 0x597   : > { %v731_v45 = vpop.f32.mrf.mxu0 }
 0x598   : > { %2558 = vmatmul.msk.f32.gmra.mxu3 %vm3863_vm0, %v3354_v12 }
 0x599   : > { %631 = vperm.xlu0 %2677, %v581_v60  }
 0x59f   : > { %v734_v39 = vpop.f32.mrf.mxu0 }
 0x5a0   : > { %2559 = vmatmul.msk.f32.gmra.mxu3 %vm3864_vm1, %v3368_v46 }
 0x5c3   : > { %1288 = vmax.xlane.f32.xlu0 %v1287_v7 }
 0x5f8   : > { %v1282_v13 = vpop.xlane.xlu0 %1281 }
 0x5f9   : > { %v1290_v35 = vsub.f32 %v1277_v47, %v1282_v13  ;;  %v580_v47 = vld [vmem:[%s3837_s2 + $0x40] sm:$0xff] }
 0x5fb   : > { %v1293_v36 = vmul.f32 1.442695, %v1290_v35 }
 0x5fd   : > { %2685 = vpow2.f32 %v1293_v36 }
 0x600   : > { %v1285_v14 = vpop.xlane.xlu2 %1284 }
 0x601   : > { %v1291_v23 = vsub.f32 %v1278_v56, %v1285_v14 }
 0x603   : > { %v2686_v30 = vpop.eup %2685  ;;  %v1295_v50 = vmul.f32 1.442695, %v1291_v23 }
 0x604   : > { %v1299_v31 = vsel %vm841_vm6, %v2686_v30, 0.0 }
 0x605   : > { %2687 = vpow2.f32 %v1295_v50  ;;  %1300 = vadd.xlane.f32.xlu0 %v1299_v31 }
 0x60b   : > { %v3373_v40 = vpop.eup %2687  ;;  %v632_v41 = vpop.permute.xlu0 %631 }
 0x60c   : > { %v735_v43 = vadd.f32 %v734_v39, %v632_v41  ;;  %v1302_v44 = vsel %vm841_vm6, %v3373_v40, 0.0 }
 0x60d   : > { %1303 = vadd.xlane.f32.xlu0 %v1302_v44 }
 0x60e   : > { %2547 = vmatpush.xpose.msk.msrb.mxu1 %vm841_vm6, %v735_v43 }
 0x621   : > { %626 = vperm.xlu0 %2677, %v580_v47  }
 0x629   : > { %621 = vperm.xlu0 %2677, %v579_v49  }
 0x631   : > { %616 = vperm.xlu0 %2677, %v578_v51  }
 0x636   : > { %v1289_v52 = vpop.xlane.xlu0 %1288 }
 0x637   : > { %v1292_v53 = vsub.f32 %v1279_v6, %v1289_v52 }
 0x639   : > { %v1297_v54 = vmul.f32 1.442695, %v1292_v53 }
 0x63b   : > { %2689 = vpow2.f32 %v1297_v54 }
 0x641   : > { %v3387_v55 = vpop.eup %2689 }
 0x642   : > { %v1305_v56 = vsel %vm3819_vm4, %v3387_v55, 0.0 }
 0x643   : > { %1306 = vadd.xlane.f32.xlu1 %v1305_v56 }
 0x678   : > { %v1301_v57 = vpop.xlane.xlu0 %1300 }
 0x679   : > { %2691 = vrcp.f32 %v1301_v57  ;;  %v1319_v10 = vand.u32 2147483648, %v1301_v57  ;;  %vm1313_vm3 = vweird.f32 %v1301_v57  ;;  %v1317_v13 = vand.u32 2147483647, %v1301_v57 }
 0x67b   : > { %v1320_v14 = vor.u32 1.1754944e-38, %v1319_v10  ;;  %vm1318_vm10 = vcmp.eq.f32.partialorder %v1317_v13, 8.507059e+37  ;;  %v1394_v10 = vld [vmem:[%s3871_s4] sm:$0xff] }
 0x67f   : > { %v2692_v60 = vpop.eup %2691 }
 0x680   : > { %v1304_v61 = vpop.xlane.xlu0 %1303  ;;  %v1309_v63 = vmul.f32 %v2692_v60, %v1301_v57  ;;  %vm1314_vm0 = vweird.f32 %v2692_v60 }
 0x681   : > { %2693 = vrcp.f32 %v1304_v61  ;;  %vm1315_vm9 = vmor %vm1313_vm3, %vm1314_vm0  ;;  %v1334_v41 = vand.u32 2147483648, %v1304_v61  ;;  %vm1328_vm4 = vweird.f32 %v1304_v61  ;;  %v1332_v44 = vand.u32 2147483647, %v1304_v61 }
 0x682   : > { %v1310_v1 = vsub.f32 1.0, %v1309_v63  ;;  %vm3866_vm0 = vcmp.eq.s32.totalorder %v3028_v29, %v3022_v27 }
 0x683   : > { %v1335_v49 = vor.u32 1.1754944e-38, %v1334_v41  ;;  %vm1333_vm3 = vcmp.eq.f32.partialorder %v1332_v44, 8.507059e+37 }
 0x684   : > { %v1311_v4 = vmul.f32 %v2692_v60, %v1310_v1 }
 0x686   : > { %v1312_v9 = vadd.f32 %v2692_v60, %v1311_v4 }
 0x687   : > { %v2694_v3 = vpop.eup %2693 }
 0x688   : > { %v1324_v7 = vmul.f32 %v2694_v3, %v1304_v61  ;;  %v1316_v35 = vsel %vm1315_vm9, %v2692_v60, %v1312_v9  ;;  %vm1329_vm1 = vweird.f32 %v2694_v3  ;;  %vm3867_vm9 = vcmp.eq.s32.totalorder %v3062_v37, %v3022_v27  ;;  %v1395_v61 = vld [vmem:[%s3871_s4 + $0x8] sm:$0xff] }
 0x689   : > { %v1321_v50 = vsel %vm1318_vm10, %v1320_v14, %v1316_v35  ;;  %vm1330_vm5 = vmor %vm1328_vm4, %vm1329_vm1  ;;  %1419 = vmatpush.msrb.mxu2 %v1395_v61 }
 0x68a   : > { %v1325_v6 = vsub.f32 1.0, %v1324_v7  ;;  %v1322_v43 = vmul.f32 %v2686_v30, %v1321_v50  ;;  %vm3868_vm4 = vmmov %vm3865_vm13  ;;  %v1498_v7 = vpop.f32.mrf.mxu3 }
 0x68b   : > { %1420 = vmatpush.msrb.mxu2 %v1394_v10 }
 0x68c   : > { %v1326_v36 = vmul.f32 %v2694_v3, %v1325_v6 }
 0x68e   : > { %v1327_v39 = vadd.f32 %v2694_v3, %v1326_v36 }
 0x690   : > { %v1331_v47 = vsel %vm1330_vm5, %v2694_v3, %v1327_v39  ;;  %vm3869_vm5 = vcmp.eq.s32.totalorder %v3158_v16, %v3022_v27 }
 0x691   : > { %v1336_v52 = vsel %vm1333_vm3, %v1335_v49, %v1331_v47 }
 0x692   : > { %v1337_v30 = vmul.f32 %v3373_v40, %v1336_v52  ;;  %v1501_v9 = vpop.f32.mrf.mxu3 }
 0x693   : > { %v627_v23 = vpop.permute.xlu0 %626 }
 0x694   : > { %v732_v31 = vadd.f32 %v731_v45, %v627_v23  ;;  %v570_v23 = vld [vmem:[%s3839_s18 + $0x50] sm:$0xff] }
 0x696   : > { %2548 = vmatpush.xpose.msk.msrb.mxu1 %vm841_vm6, %v732_v31  ;;  %v571_v31 = vld [vmem:[%s3839_s18 + $0x58] sm:$0xff] }
 0x699   : > { %2549 = vmatmul.msk.f32.vlgmr.msrb.gmra.mxu1 %vm841_vm6, %v1322_v43 }
 0x69a   : > { %2560 = vmatpush.msk.msra.mxu1 %vm3865_vm13, %v3033_v32  ;;  %vm3870_vm13 = vcmp.eq.s32.totalorder %v3020_v26, %v3022_v27  ;;  %v1504_v6 = vpop.f32.mrf.mxu3 }
 0x69b   : > { %v622_v45 = vpop.permute.xlu0 %621 }
 0x69c   : > { %2561 = vmatpush.msk.msra.mxu1 %vm3866_vm0, %v2826_v33  ;;  %v729_v51 = vadd.f32 %v3366_v34, %v622_v45 }
 0x69e   : > { %2562 = vmatpush.msk.msra.mxu1 %vm3867_vm9, %v2826_v33  ;;  %1781 = vmatpush.msra.mxu0 %v729_v51  ;;  %vm3872_vm9 = vmmov %vm3868_vm4 }
 0x69f   : > { %2566 = vmatpush.msk.msra.mxu2 %vm3872_vm9, %v3033_v32 }
 0x6a0   : > { %2584 = vmatpush.msk.msrb.mxu1 %vm3868_vm4, %v3161_v17  ;;  %vm3873_vm4 = vcmp.eq.s32.totalorder %v3028_v29, %v3022_v27 }
 0x6a1   : > { %2550 = vmatmul.msk.f32.gmra.mxu1 %vm841_vm6, %v1337_v30  ;;  %2567 = vmatpush.msk.msra.mxu2 %vm3873_vm4, %v2826_v33  ;;  %vm3882_vm4 = vcmask 261120  }
 0x6a2   : > { %2585 = vmatpush.msk.msrb.mxu1 %vm3869_vm5, %v2826_v33  ;;  %vm3874_vm5 = vcmp.eq.s32.totalorder %v3062_v37, %v3022_v27  ;;  %2466 = vmatmul.msk.f32.gmra.mxu0 %vm3882_vm4, %v570_v23 }
 0x6a3   : > { %v617_v34 = vpop.permute.xlu0 %616  ;;  %2568 = vmatpush.msk.msra.mxu2 %vm3874_vm5, %v2826_v33  ;;  %vm3883_vm5 = vmmov %vm3882_vm4 }
 0x6a4   : > { %2586 = vmatpush.msk.msrb.mxu1 %vm3870_vm13, %v2826_v33  ;;  %v726_v53 = vadd.f32 %v3352_v11, %v617_v34  ;;  %vm3875_vm13 = vcmask 130048  }
 0x6a6   : > { %1782 = vmatpush.msra.mxu0 %v726_v53 }
 0x6aa   : > { %2467 = vmatmul.msk.f32.gmra.mxu0 %vm3883_vm5, %v571_v31 }
 0x6b6   : > { %v1307_v17 = vpop.xlane.xlu1 %1306 }
 0x6b7   : > { %2695 = vrcp.f32 %v1307_v17  ;;  %v1349_v57 = vand.u32 2147483648, %v1307_v17  ;;  %v1347_v16 = vand.u32 2147483647, %v1307_v17  ;;  %vm1343_vm1 = vweird.f32 %v1307_v17 }
 0x6b9   : > { %v1350_v1 = vor.u32 1.1754944e-38, %v1349_v57  ;;  %vm1348_vm3 = vcmp.eq.f32.partialorder %v1347_v16, 8.507059e+37 }
 0x6bd   : > { %v2696_v54 = vpop.eup %2695 }
 0x6be   : > { %v1339_v40 = vmul.f32 %v2696_v54, %v1307_v17  ;;  %vm1344_vm10 = vweird.f32 %v2696_v54 }
 0x6bf   : > { %vm1345_vm0 = vmor %vm1343_vm1, %vm1344_vm10  ;;  %vm3877_vm1 = vcmp.eq.s32.totalorder %v3154_v15, %v3022_v27 }
 0x6c0   : > { %v1340_v56 = vsub.f32 1.0, %v1339_v40  ;;  %vm3876_vm10 = vmmov %vm3872_vm9 }
 0x6c2   : > { %v1341_v60 = vmul.f32 %v2696_v54, %v1340_v56 }
 0x6c4   : > { %v1342_v63 = vadd.f32 %v2696_v54, %v1341_v60 }
 0x6c6   : > { %v1346_v11 = vsel %vm1345_vm0, %v2696_v54, %v1342_v63  ;;  %vm3878_vm0 = vcmp.eq.s32.totalorder %v3213_v48, %v3022_v27 }
 0x6c7   : > { %v1351_v3 = vsel %vm1348_vm3, %v1350_v1, %v1346_v11  ;;  %vm3879_vm3 = vmmov %vm3875_vm13 }
 0x6c8   : > { %v1352_v4 = vmul.f32 %v3387_v55, %v1351_v3  ;;  %vm3880_vm9 = vmmov %vm3879_vm3 }
 0x6ca   : > { %2551 = vmatmul.msk.f32.gmra.mxu1 %vm841_vm6, %v1352_v4  ;;  %v582_v4 = vld [vmem:[%s3837_s2 + $0x50] sm:$0xff] }
 0x6d2   : > { %2563 = vmatmul.msk.f32.vlgmr.msra.gmra.mxu1 %vm841_vm6, %v1498_v7 }
 0x6da   : > { %2564 = vmatmul.msk.f32.gmra.mxu1 %vm841_vm6, %v1501_v9 }
 0x6e2   : > { %2565 = vmatmul.msk.f32.gmra.mxu1 %vm841_vm6, %v1504_v6 }
 0x716   : > { %v1385_v55 = vpop.f32.mrf.mxu1 }
 0x717   : > { %2552 = vmatmul.msk.f32.vlgmr.msrb.gmra.mxu2 %vm3875_vm13, %v1385_v55  ;;  %vm3891_vm13 = vcmp.le.s32.totalorder %v3022_v27, %v3014_v24 }
 0x718   : > { %2590 = vmatpush.msk.msrb.mxu2 %vm3876_vm10, %v3164_v18 }
 0x71a   : > { %2591 = vmatpush.msk.msrb.mxu2 %vm3877_vm1, %v2826_v33  ;;  %vm3893_vm1 = vcmp.le.s32.totalorder %v3022_v27, %v3020_v26 }
 0x71c   : > { %2592 = vmatpush.msk.msrb.mxu2 %vm3878_vm0, %v2826_v33  ;;  %v3459_v33 = vld [vmem:[%s3881_s5] ss:$0 sm:$0xff]  ;;  %vm3894_vm0 = vcmp.eq.s32.totalorder %v3022_v27, %v3025_v28  ;;  %s2748_s5 = scalar_lea.hbm %s3795_s16, 48 }
 0x71e   : > { %v1388_v32 = vpop.f32.mrf.mxu1 }
 0x71f   : > { %2553 = vmatmul.msk.f32.gmra.mxu2 %vm3879_vm3, %v1388_v32  ;;  %v3499_v2 = vpop.f32.mrf.mxu0 }
 0x727   : > { %v3501_v21 = vpop.f32.mrf.mxu0 }
 0x747   : > { %v1391_v13 = vpop.f32.mrf.mxu1 }
 0x748   : > { %2554 = vmatmul.msk.f32.gmra.mxu2 %vm3880_vm9, %v1391_v13  ;;  %vm3896_vm9 = vcmask 131072  }
 0x74f   : > { %v1533_v35 = vpop.f32.mrf.mxu1 }
 0x750   : > { %2569 = vmatmul.msk.f32.vlgmr.msra.gmra.mxu2 %vm841_vm6, %v1533_v35 }
 0x757   : > { %v1536_v18 = vpop.f32.mrf.mxu1 }
 0x758   : > { %2570 = vmatmul.msk.f32.gmra.mxu2 %vm841_vm6, %v1536_v18 }
 0x75f   : > { %v1539_v36 = vpop.f32.mrf.mxu1 }
 0x760   : > { %2571 = vmatmul.msk.f32.gmra.mxu2 %vm841_vm6, %v1539_v36 }
 0x79a   : > { %v3454_v15 = vpop.f32.mrf.mxu2 }
 0x7a2   : > { %v1425_v48 = vpop.f32.mrf.mxu2 }
 0x7a3   : > { %v3462_v14 = vadd.f32 %v3459_v33, %v1425_v48 }
 0x7cb   : > { %v1428_v50 = vpop.f32.mrf.mxu2 }
 0x7cc   : > { %v3472_v39 = vadd.f32 %v3459_v33, %v1428_v50 }
 0x7d3   : > { %v1568_v41 = vpop.f32.mrf.mxu2 }
 0x7d4   : > { %v1577_v43 = vsel %vm3115_vm14, %v1568_v41, %v1533_v35  ;;  %vm3884_vm14 = vmmov %vm3879_vm3 }
 0x7d5   : > { %2575 = vmatmul.msk.f32.vlgmr.msra.gmra.mxu3 %vm841_vm6, %v1577_v43 }
 0x7db   : > { %v1571_v44 = vpop.f32.mrf.mxu2 }
 0x7dc   : > { %v1578_v47 = vsel %vm3123_vm15, %v1571_v44, %v1536_v18  ;;  %vm3885_vm15 = vmmov %vm3879_vm3  ;;  %v583_v18 = vld [vmem:[%s3837_s2 + $0x58] sm:$0xff]  ;;  %s2344_s2 = sshll.u32 %s2341_s3, 4  ;;  %s2345_s2 = int_to_ptr.hbm [resolvable:$true] %s2344_s2 }
 0x7dd   : > { %2576 = vmatmul.msk.f32.gmra.mxu3 %vm841_vm6, %v1578_v47 }
 0x7e3   : > { %v1574_v49 = vpop.f32.mrf.mxu2 }
 0x7e4   : > { %v1579_v45 = vsel %vm3131_vm2, %v1574_v49, %v1539_v36  ;;  %vm3886_vm2 = vmmov %vm3879_vm3  ;;  %vm3895_vm3 = vcmp.le.s32.totalorder %v3022_v27, %v3017_v25 }
 0x7e5   : > { %2577 = vmatmul.msk.f32.gmra.mxu3 %vm841_vm6, %v1579_v45 }
 0x858   : > { %v1606_v51 = vpop.f32.mrf.mxu3 }
 0x859   : > { %v1615_v52 = vsel %vm3187_vm8, %v1606_v51, %v1577_v43  ;;  %vm3887_vm8 = vnez %v3856_v0 }
 0x85a   : > { %2581 = vmatmul.msk.f32.vlgmr.msrb.gmra.mxu0 %vm841_vm6, %v1615_v52 }
 0x860   : > { %v1609_v58 = vpop.f32.mrf.mxu3 }
 0x861   : > { %v1616_v30 = vsel %vm3195_vm11, %v1609_v58, %v1578_v47  ;;  %vm3888_vm11 = vnez %v3858_v5 }
 0x862   : > { %2582 = vmatmul.msk.f32.gmra.mxu0 %vm841_vm6, %v1616_v30 }
 0x868   : > { %v1612_v62 = vpop.f32.mrf.mxu3 }
 0x869   : > { %v1617_v34 = vsel %vm3203_vm12, %v1612_v62, %v1579_v45  ;;  %vm3889_vm12 = vmmov %vm3876_vm10  ;;  %vm3892_vm10 = vcmp.eq.s32.totalorder %v3022_v27, %v3028_v29 }
 0x86a   : > { %2583 = vmatmul.msk.f32.gmra.mxu0 %vm841_vm6, %v1617_v34 }
 0x872   : > { %2600 = vmatmul.msk.f32.vlgmr.msra.gmra.mxu0 %vm3884_vm14, %v3340_v8 }
 0x87a   : > { %2601 = vmatmul.msk.f32.gmra.mxu0 %vm3885_vm15, %v3354_v12 }
 0x882   : > { %2602 = vmatmul.msk.f32.gmra.mxu0 %vm3886_vm2, %v3368_v46 }
 0x8d7   : > { %v1644_v38 = vpop.f32.mrf.mxu0 }
 0x8d8   : > { %v1653_v42 = vsel %vm3228_vm7, %v1644_v38, %v1615_v52  ;;  %vm3890_vm7 = vcmp.eq.s32.totalorder %v3022_v27, %v3062_v37 }
 0x8d9   : > { %2587 = vmatmul.msk.f32.vlgmr.msrb.gmra.mxu1 %vm841_vm6, %v1653_v42  ;;  %2593 = vmatmul.msk.f32.vlgmr.msrb.gmra.mxu2 %vm841_vm6, %v1653_v42 }
 0x8df   : > { %v1647_v53 = vpop.f32.mrf.mxu0 }
 0x8e0   : > { %v1654_v8 = vsel %vm3887_vm8, %v1647_v53, %v1616_v30 }
 0x8e1   : > { %2588 = vmatmul.msk.f32.gmra.mxu1 %vm841_vm6, %v1654_v8 }
 0x8e7   : > { %v1650_v12 = vpop.f32.mrf.mxu0 }
 0x8e8   : > { %v1655_v46 = vsel %vm3888_vm11, %v1650_v12, %v1617_v34 }
 0x8e9   : > { %2589 = vmatmul.msk.f32.gmra.mxu1 %vm841_vm6, %v1655_v46 }
 0x8ef   : > { %v1784_v0 = vpop.f32.mrf.mxu0 }
 0x956   : > { %v1682_v17 = vpop.f32.mrf.mxu1 }
 0x95c   : > { %v1720_v54 = vpop.f32.mrf.mxu2 }
 0x95e   : > { %v1685_v59 = vpop.f32.mrf.mxu1 }
 0x95f   : > { %2594 = vmatmul.msk.f32.gmra.mxu2 %vm841_vm6, %v1685_v59 }
 0x966   : > { %v1688_v40 = vpop.f32.mrf.mxu1 }
 0x967   : > { %2595 = vmatmul.msk.f32.gmra.mxu2 %vm841_vm6, %v1655_v46 }
 0x9e2   : > { %v1723_v56 = vpop.f32.mrf.mxu2 }
 0x9ea   : > { %v1726_v57 = vpop.f32.mrf.mxu2 }
 0x9eb   : > { %2596 = vmatpush.msk.msrb.mxu3 %vm3889_vm12, %v1726_v57 }
 0x9ed   : > { %1749 = vmatpush.msrb.mxu3 %v1685_v59 }
 0x9ef   : > { %1750 = vmatpush.msrb.mxu3 %v1653_v42 }
 0x9f0   : > { %2597 = vmatmul.msk.f32.vlgmr.msrb.gmra.mxu3 %vm841_vm6, %v3274_v19 }
 0x9f8   : > { %2598 = vmatmul.msk.f32.gmra.mxu3 %vm841_vm6, %v3284_v20 }
 0xa00   : > { %2599 = vmatmul.msk.f32.gmra.mxu3 %vm841_vm6, %v3294_v22  ;;  %v1787_v22 = vpop.f32.mrf.mxu0 }
 0xa08   : > { %v1790_v50 = vpop.f32.mrf.mxu0 }
 0xa73   : > { %v1752_v5 = vpop.f32.mrf.mxu3 }
 0xa74   : > { %v1761_v60 = vsel %vm3890_vm7, 0.0, %v1752_v5  ;;  %vm3897_vm7 = vmmov %vm3896_vm9 }
 0xa75   : > { %v1764_v16 = vsel %vm3891_vm13, %v1653_v42, %v1761_v60  ;;  %vm3898_vm13 = vcmask 130048  }
 0xa76   : > { %v1785_v61 = vadd.f32 %v1784_v0, %v1764_v16 }
 0xa78   : > { %v1793_v63 = vmul.f32 0.25, %v1785_v61 }
 0xa7a   : > { %v1796_v19 = vsel %vm841_vm6, %v1793_v63, -inf }
 0xa7b   : > { %1797 = vmax.xlane.f32.xlu0 %v1796_v19  ;;  %v1755_v1 = vpop.f32.mrf.mxu3 }
 0xa7c   : > { %v1762_v20 = vsel %vm3892_vm10, 0.0, %v1755_v1  ;;  %v1909_v1 = vld [vmem:[%s3871_s4 + $0x10] sm:$0xff]  ;;  %vm3899_vm10 = vmmov %vm3898_vm13 }
 0xa7d   : > { %v1765_v37 = vsel %vm3893_vm1, %v1685_v59, %v1762_v20 }
 0xa7e   : > { %v1788_v11 = vadd.f32 %v1787_v22, %v1765_v37 }
 0xa80   : > { %v1794_v3 = vmul.f32 0.25, %v1788_v11 }
 0xa82   : > { %v1799_v24 = vsel %vm841_vm6, %v1794_v3, -inf }
 0xa83   : > { %1800 = vmax.xlane.f32.xlu2 %v1799_v24  ;;  %v1758_v36 = vpop.f32.mrf.mxu3 }
 0xa84   : > { %v1763_v48 = vsel %vm3894_vm0, 0.0, %v1758_v36 }
 0xa85   : > { %v1766_v23 = vsel %vm3895_vm3, %v1726_v57, %v1763_v48 }
 0xa86   : > { %v1791_v31 = vadd.f32 %v1790_v50, %v1766_v23  ;;  %v2827_v50 = vmov 32.0  }
 0xa88   : > { %v1795_v41 = vmul.f32 0.25, %v1791_v31 }
 0xa8a   : > { %v1802_v43 = vsel %vm3896_vm9, %v1795_v41, -inf }
 0xa8f   : > { %636 = vperm.xlu0 %2677, %v582_v4  }
 0xaee   : > { %v1798_v7 = vpop.xlane.xlu0 %1797 }
 0xaef   : > { %v1805_v9 = vsub.f32 %v1793_v63, %v1798_v7 }
 0xaf1   : > { %v1808_v6 = vmul.f32 1.442695, %v1805_v9 }
 0xaf3   : > { %2697 = vpow2.f32 %v1808_v6 }
 0xaf6   : > { %v1801_v29 = vpop.xlane.xlu2 %1800 }
 0xaf7   : > { %v1806_v10 = vsub.f32 %v1794_v3, %v1801_v29 }
 0xaf9   : > { %v2698_v55 = vpop.eup %2697  ;;  %v1810_v32 = vmul.f32 1.442695, %v1806_v10 }
 0xafa   : > { %v1814_v26 = vsel %vm841_vm6, %v2698_v55, 0.0 }
 0xafb   : > { %2699 = vpow2.f32 %v1810_v32  ;;  %1815 = vadd.xlane.f32.xlu1 %v1814_v26  ;;  %v1434_v26 = vadd.f32 %v3459_v33, %v3454_v15 }
 0xb01   : > { %v2700_v13 = vpop.eup %2699  ;;  %v637_v42 = vpop.permute.xlu0 %636 }
 0xb02   : > { %v1817_v35 = vsel %vm841_vm6, %v2700_v13, 0.0  ;;  %v738_v46 = vadd.f32 %v3499_v2, %v637_v42  ;;  %v1910_v2 = vld [vmem:[%s3871_s4 + $0x18] sm:$0xff] }
 0xb03   : > { %1818 = vadd.xlane.f32.xlu2 %v1817_v35  ;;  %1934 = vmatpush.msra.mxu2 %v1910_v2 }
 0xb05   : > { %1935 = vmatpush.msra.mxu2 %v1909_v1 }
 0xb14   : > { %641 = vperm.xlu1 %2679, %v583_v18   ;;  %v2725_v18 = vld [vmem:[%s2979_s20] sm:$0xff] }
 0xb3e   : > { %1803 = vmax.xlane.f32.xlu1 %v1802_v43 }
 0xb6e   : > { %v1816_v44 = vpop.xlane.xlu1 %1815 }
 0xb6f   : > { %2701 = vrcp.f32 %v1816_v44  ;;  %v1834_v27 = vand.u32 2147483648, %v1816_v44  ;;  %vm1828_vm5 = vweird.f32 %v1816_v44  ;;  %v1832_v62 = vand.u32 2147483647, %v1816_v44 }
 0xb71   : > { %v1835_v12 = vor.u32 1.1754944e-38, %v1834_v27  ;;  %vm1833_vm15 = vcmp.eq.f32.partialorder %v1832_v62, 8.507059e+37 }
 0xb75   : > { %v2702_v47 = vpop.eup %2701 }
 0xb76   : > { %v1819_v49 = vpop.xlane.xlu2 %1818  ;;  %v1824_v45 = vmul.f32 %v2702_v47, %v1816_v44  ;;  %vm1829_vm4 = vweird.f32 %v2702_v47 }
 0xb77   : > { %2703 = vrcp.f32 %v1819_v49  ;;  %vm1830_vm14 = vmor %vm1828_vm5, %vm1829_vm4  ;;  %v1849_v59 = vand.u32 2147483648, %v1819_v49  ;;  %vm1843_vm8 = vweird.f32 %v1819_v49  ;;  %v1847_v56 = vand.u32 2147483647, %v1819_v49 }
 0xb78   : > { %v1825_v51 = vsub.f32 1.0, %v1824_v45  ;;  %vm3900_vm4 = vcmask 261120   ;;  %vm3901_vm5 = vmmov %vm3899_vm10 }
 0xb79   : > { %v1850_v57 = vor.u32 1.1754944e-38, %v1849_v59  ;;  %vm1848_vm12 = vcmp.eq.f32.partialorder %v1847_v56, 8.507059e+37 }
 0xb7a   : > { %v1826_v28 = vmul.f32 %v2702_v47, %v1825_v51 }
 0xb7c   : > { %v1827_v30 = vadd.f32 %v2702_v47, %v1826_v28 }
 0xb7d   : > { %v2704_v52 = vpop.eup %2703 }
 0xb7e   : > { %v1839_v58 = vmul.f32 %v2704_v52, %v1819_v49  ;;  %v1831_v53 = vsel %vm1830_vm14, %v2702_v47, %v1827_v30  ;;  %vm1844_vm2 = vweird.f32 %v2704_v52  ;;  %vm3902_vm14 = vmmov %vm3900_vm4  ;;  %v2726_v30 = vld [vmem:[%s2979_s20 + $0x8] sm:$0xff] }
 0xb7f   : > { %v1836_v17 = vsel %vm1833_vm15, %v1835_v12, %v1831_v53  ;;  %vm1845_vm11 = vmor %vm1843_vm8, %vm1844_vm2  ;;  %vm1958_vm2 = vcmask 253952   ;;  %v2043_v53 = vld [vmem:[%s3904_s8 + $0x18] sm:$0xff]  ;;  %v2040_v12 = vld [vmem:[%s3904_s8] sm:$0xff] }
 0xb80   : > { %v1840_v25 = vsub.f32 1.0, %v1839_v58  ;;  %v1837_v40 = vmul.f32 %v2698_v55, %v1836_v17  ;;  %vm3903_vm15 = vmmov %vm3900_vm4  ;;  %2069 = vmatpush.msra.mxu3 %v2043_v53 }
 0xb81   : > { %vm3905_vm8 = vmmov %vm3900_vm4 }
 0xb82   : > { %v1841_v8 = vmul.f32 %v2704_v52, %v1840_v25 }
 0xb84   : > { %v1842_v54 = vadd.f32 %v2704_v52, %v1841_v8  ;;  %v2042_v8 = vld [vmem:[%s3904_s8 + $0x10] sm:$0xff] }
 0xb85   : > { %2070 = vmatpush.msra.mxu3 %v2042_v8 }
 0xb86   : > { %v642_v34 = vpop.permute.xlu1 %641 }
 0xb87   : > { %v741_v38 = vadd.f32 %v3501_v21, %v642_v34  ;;  %v1846_v21 = vsel %vm1845_vm11, %v2704_v52, %v1842_v54 }
 0xb88   : > { %v1851_v0 = vsel %vm1848_vm12, %v1850_v57, %v1846_v21 }
 0xb89   : > { %2603 = vmatpush.xpose.msk.msra.mxu1 %vm841_vm6, %v741_v38  ;;  %v1852_v5 = vmul.f32 %v2700_v13, %v1851_v0  ;;  %v2727_v38 = vld [vmem:[%s2979_s20 + $0x10] sm:$0x1]  ;;  %s2624_s20 = smul.u32 24, %s3679_s22 }
 0xb8b   : > { %s3690_s26 = scalar_lea.vmem [#allocation2], %s2624_s20 }
 0xb8c   : > { %s2342_s19 = sshll.u32 %s3690_s26, 4  ;;  %s2343_s19 = int_to_ptr.vmem [resolvable:$true] %s2342_s19 }
 0xb8d   : > { %2604 = vmatpush.xpose.msk.msra.mxu1 %vm841_vm6, %v738_v46 }
 0xb90   : > { %2605 = vmatmul.msk.f32.vlgmr.msra.gmra.mxu1 %vm841_vm6, %v1837_v40 }
 0xb98   : > { %2606 = vmatmul.msk.f32.gmra.mxu1 %vm841_vm6, %v1852_v5 }
 0xbb1   : > { %v1804_v60 = vpop.xlane.xlu1 %1803 }
 0xbb2   : > { %v1807_v16 = vsub.f32 %v1795_v41, %v1804_v60 }
 0xbb4   : > { %v1812_v61 = vmul.f32 1.442695, %v1807_v16 }
 0xbb6   : > { %2705 = vpow2.f32 %v1812_v61 }
 0xbbc   : > { %v2706_v63 = vpop.eup %2705 }
 0xbbd   : > { %v1820_v19 = vsel %vm3897_vm7, %v2706_v63, 0.0 }
 0xbbe   : > { %1821 = vadd.xlane.f32.xlu0 %v1820_v19 }
 0xc0d   : > { %v1900_v20 = vpop.f32.mrf.mxu1 }
 0xc0e   : > { %2608 = vmatmul.msk.f32.vlgmr.msra.gmra.mxu2 %vm3898_vm13, %v1900_v20  ;;  %v3616_v20 = vld [vmem:[%s3907_s7] ss:$0 sm:$0xff]  ;;  %vm3908_vm13 = vmmov %vm3900_vm4 }
 0xc15   : > { %v1903_v22 = vpop.f32.mrf.mxu1 }
 0xc16   : > { %2609 = vmatmul.msk.f32.gmra.mxu2 %vm3899_vm10, %v1903_v22 }
 0xc31   : > { %v1822_v37 = vpop.xlane.xlu0 %1821 }
 0xc32   : > { %2707 = vrcp.f32 %v1822_v37  ;;  %v1864_v4 = vand.u32 2147483648, %v1822_v37  ;;  %v1862_v9 = vand.u32 2147483647, %v1822_v37  ;;  %vm1858_vm0 = vweird.f32 %v1822_v37 }
 0xc33   : > { %2709 = vrcp.f32 %v2827_v50  ;;  %v3633_v50 = vld [vmem:[%s3788_s9] ss:$0 sm:$0xff] }
 0xc34   : > { %v1865_v29 = vor.u32 1.1754944e-38, %v1864_v4  ;;  %vm1863_vm9 = vcmp.eq.f32.partialorder %v1862_v9, 8.507059e+37 }
 0xc38   : > { %v2708_v11 = vpop.eup %2707 }
 0xc39   : > { %v1854_v3 = vmul.f32 %v2708_v11, %v1822_v37  ;;  %vm1859_vm1 = vweird.f32 %v2708_v11  ;;  %v2710_v31 = vpop.eup %2709 }
 0xc3a   : > { %vm1860_vm3 = vmor %vm1858_vm0, %vm1859_vm1  ;;  %v1963_v41 = vmul.f32 32.0, %v2710_v31 }
 0xc3b   : > { %v1855_v24 = vsub.f32 1.0, %v1854_v3 }
 0xc3c   : > { %v1964_v43 = vsub.f32 1.0, %v1963_v41 }
 0xc3d   : > { %v1856_v7 = vmul.f32 %v2708_v11, %v1855_v24 }
 0xc3e   : > { %v1965_v44 = vmul.f32 %v2710_v31, %v1964_v43 }
 0xc3f   : > { %v1857_v6 = vadd.f32 %v2708_v11, %v1856_v7 }
 0xc40   : > { %v1966_v15 = vadd.f32 %v2710_v31, %v1965_v44 }
 0xc41   : > { %v1861_v10 = vsel %vm1860_vm3, %v2708_v11, %v1857_v6  ;;  %vm3909_vm3 = vmmov %vm3900_vm4 }
 0xc42   : > { %v1866_v55 = vsel %vm1863_vm9, %v1865_v29, %v1861_v10 }
 0xc43   : > { %v1867_v32 = vmul.f32 %v2706_v63, %v1866_v55  ;;  %v3611_v63 = vld [vmem:[%s3906_s6] ss:$0 sm:$0xff] }
 0xc45   : > { %2607 = vmatmul.msk.f32.gmra.mxu1 %vm841_vm6, %v1867_v32  ;;  %vm1967_vm6 = vweird.f32 %v2710_v31 }
 0xc46   : > { %v3575_v33 = vsel %vm1967_vm6, %v2710_v31, %v1966_v15 }
 0xc91   : > { %v1937_v13 = vpop.f32.mrf.mxu2 }
 0xc92   : > { %v1946_v35 = vadd.f32 %v1937_v13, %v1434_v26 }
 0xc94   : > { %v3570_v36 = vadd.f32 %v2725_v18, %v1946_v35 }
 0xc96   : > { %v1952_v48 = vsel %vm3900_vm4, %v3570_v36, 0.0 }
 0xc97   : > { %1953 = vadd.xlane.f32.xlu2 %v1952_v48 }
 0xc99   : > { %v1940_v51 = vpop.f32.mrf.mxu2 }
 0xc9a   : > { %v1947_v28 = vadd.f32 %v1940_v51, %v3462_v14 }
 0xc9c   : > { %v3582_v25 = vadd.f32 %v2726_v30, %v1947_v28  ;;  %v2220_v30 = vld [vmem:[%s3789_s10 + $0x28] sm:$0xff] }
 0xc9e   : > { %v1955_v27 = vsel %vm3903_vm15, %v3582_v25, 0.0 }
 0xcc2   : > { %v1906_v23 = vpop.f32.mrf.mxu1 }
 0xcc3   : > { %2610 = vmatmul.msk.f32.gmra.mxu2 %vm3901_vm5, %v1906_v23 }
 0xd0a   : > { %v1954_v47 = vpop.xlane.xlu2 %1953 }
 0xd0b   : > { %v1969_v49 = vmul.f32 %v3575_v33, %v1954_v47 }
 0xd0d   : > { %v1972_v45 = vsub.f32 %v3570_v36, %v1969_v49  ;;  %v2222_v49 = vld [vmem:[%s3789_s10 + $0x38] sm:$0xff] }
 0xd0e   : > { %2245 = vmatpush.msrb.mxu0 %v2222_v49 }
 0xd0f   : > { %v1975_v52 = vmul.f32 %v1972_v45, %v1972_v45 }
 0xd11   : > { %v1978_v58 = vsel %vm3902_vm14, %v1975_v52, 0.0  ;;  %v2221_v52 = vld [vmem:[%s3789_s10 + $0x30] sm:$0xff] }
 0xd12   : > { %1979 = vadd.xlane.f32.xlu2 %v1978_v58  ;;  %2246 = vmatpush.msrb.mxu0 %v2221_v52 }
 0xd14   : > { %2247 = vmatpush.msrb.mxu0 %v2220_v30 }
 0xd1a   : > { %1956 = vadd.xlane.f32.xlu2 %v1955_v27 }
 0xd46   : > { %v1943_v62 = vpop.f32.mrf.mxu2 }
 0xd47   : > { %v1948_v34 = vadd.f32 %v1943_v62, %v3472_v39  ;;  %v2041_v39 = vld [vmem:[%s3904_s8 + $0x8] sm:$0xff] }
 0xd48   : > { %2071 = vmatpush.msra.mxu3 %v2041_v39  ;;  %v2217_v39 = vld [vmem:[%s3789_s10 + $0x10] sm:$0xff] }
 0xd49   : > { %v3588_v42 = vadd.f32 %v2727_v38, %v1948_v34  ;;  %v2219_v34 = vld [vmem:[%s3789_s10 + $0x20] sm:$0xff] }
 0xd4a   : > { %2072 = vmatpush.msra.mxu3 %v2040_v12  ;;  %2248 = vmatpush.msrb.mxu0 %v2219_v34 }
 0xd4b   : > { %v1959_v14 = vsel %vm1958_vm2, %v3588_v42, 0.0 }
 0xd4c   : > { %1960 = vadd.xlane.f32.xlu2 %v1959_v14  ;;  %v2218_v14 = vld [vmem:[%s3789_s10 + $0x18] sm:$0xff] }
 0xd4d   : > { %2249 = vmatpush.msrb.mxu0 %v2218_v14 }
 0xd4f   : > { %2250 = vmatpush.msrb.mxu0 %v2217_v39 }
 0xd85   : > { %v1980_v46 = vpop.xlane.xlu2 %1979 }
 0xd86   : > { %v1987_v17 = vmul.f32 %v1980_v46, %v3575_v33  ;;  %v2216_v46 = vld [vmem:[%s3789_s10 + $0x8] sm:$0xff] }
 0xd87   : > { %2251 = vmatpush.msrb.mxu0 %v2216_v46 }
 0xd88   : > { %v1990_v54 = vadd.f32 1e-05, %v1987_v17 }
 0xd8a   : > { %2711 = vrsqrt.f32 %v1990_v54  ;;  %vm1999_vm12 = vweird.f32 %v1990_v54 }
 0xd8d   : > { %v1957_v59 = vpop.xlane.xlu2 %1956 }
 0xd8e   : > { %v1970_v40 = vmul.f32 %v3575_v33, %v1957_v59 }
 0xd90   : > { %v2712_v56 = vpop.eup %2711  ;;  %v1973_v21 = vsub.f32 %v3582_v25, %v1970_v40 }
 0xd91   : > { %v1994_v57 = vmul.f32 %v2712_v56, %v1990_v54  ;;  %vm2000_vm11 = vweird.f32 %v2712_v56  ;;  %v2215_v54 = vld [vmem:[%s3789_s10] sm:$0xff] }
 0xd92   : > { %v1976_v0 = vmul.f32 %v1973_v21, %v1973_v21  ;;  %vm2001_vm7 = vmor %vm1999_vm12, %vm2000_vm11  ;;  %2252 = vmatpush.msrb.mxu0 %v2215_v54  ;;  %vm2227_vm12 = vcmask 523264  }
 0xd93   : > { %v1995_v5 = vmul.f32 %v2712_v56, %v1994_v57  ;;  %vm3910_vm11 = vmmov %vm3909_vm3 }
 0xd94   : > { %v1981_v2 = vsel %vm3905_vm8, %v1976_v0, 0.0 }
 0xd95   : > { %v1996_v60 = vmul.f32 0.5, %v1995_v5  ;;  %1982 = vadd.xlane.f32.xlu1 %v1981_v2 }
 0xd97   : > { %v1997_v16 = vsub.f32 1.5, %v1996_v60 }
 0xd99   : > { %v1998_v61 = vmul.f32 %v2712_v56, %v1997_v16 }
 0xd9b   : > { %v2002_v19 = vsel %vm2001_vm7, %v2712_v56, %v1998_v61 }
 0xd9c   : > { %v2023_v1 = vmul.f32 %v2002_v19, %v1972_v45 }
 0xd9e   : > { %v2030_v22 = vmul.f32 %v3611_v63, %v2023_v1 }
 0xda0   : > { %v2037_v37 = vadd.f32 %v3616_v20, %v2030_v22 }
 0xda2   : > { %2611 = vmatmul.msk.f32.vlgmr.msra.gmra.mxu3 %vm3908_vm13, %v2037_v37 }
 0xdbf   : > { %v1961_v11 = vpop.xlane.xlu2 %1960 }
 0xdc0   : > { %v1971_v3 = vmul.f32 %v3575_v33, %v1961_v11 }
 0xdc2   : > { %v3623_v24 = vsub.f32 %v3588_v42, %v1971_v3 }
 0xdc4   : > { %v1977_v4 = vmul.f32 %v3623_v24, %v3623_v24 }
 0xdc6   : > { %v1984_v7 = vsel %vm1958_vm2, %v1977_v4, 0.0 }
 0xdc7   : > { %1985 = vadd.xlane.f32.xlu2 %v1984_v7 }
 0xe08   : > { %v1983_v9 = vpop.xlane.xlu1 %1982 }
 0xe09   : > { %v1988_v6 = vmul.f32 %v1983_v9, %v3575_v33 }
 0xe0b   : > { %v1991_v29 = vadd.f32 1e-05, %v1988_v6 }
 0xe0d   : > { %2713 = vrsqrt.f32 %v1991_v29  ;;  %vm2009_vm1 = vweird.f32 %v1991_v29 }
 0xe13   : > { %v2714_v10 = vpop.eup %2713 }
 0xe14   : > { %v2004_v55 = vmul.f32 %v2714_v10, %v1991_v29  ;;  %vm2010_vm10 = vweird.f32 %v2714_v10 }
 0xe15   : > { %vm2011_vm0 = vmor %vm2009_vm1, %vm2010_vm10 }
 0xe16   : > { %v2005_v32 = vmul.f32 %v2714_v10, %v2004_v55 }
 0xe18   : > { %v2006_v26 = vmul.f32 0.5, %v2005_v32 }
 0xe1a   : > { %v2007_v13 = vsub.f32 1.5, %v2006_v26 }
 0xe1c   : > { %v2008_v35 = vmul.f32 %v2714_v10, %v2007_v13 }
 0xe1e   : > { %v2012_v18 = vsel %vm2011_vm0, %v2714_v10, %v2008_v35  ;;  %vm3911_vm0 = vmmov %vm3909_vm3 }
 0xe1f   : > { %v2024_v48 = vmul.f32 %v2012_v18, %v1973_v21 }
 0xe21   : > { %v2031_v23 = vmul.f32 %v3611_v63, %v2024_v48 }
 0xe23   : > { %v2038_v31 = vadd.f32 %v3616_v20, %v2031_v23 }
 0xe25   : > { %v2074_v41 = vpop.f32.mrf.mxu3  ;;  %2612 = vmatmul.msk.f32.gmra.mxu3 %vm3909_vm3, %v2038_v31 }
 0xe26   : > { %v3638_v43 = vadd.f32 %v3633_v50, %v2074_v41 }
 0xe28   : > { %v3641_v44 = vmul.f32 0.70710677, %v3638_v43  ;;  %v2083_v49 = vmul.f32 0.5, %v3638_v43 }
 0xe2a   : > { %v2089_v15 = vmul.f32 %v3641_v44, %v3641_v44 }
 0xe2c   : > { %v2090_v47 = vmin.f32 %v2089_v15, 16.0 }
 0xe2e   : > { %v2091_v45 = vmul.f32 2.1237322e-06, %v2090_v47  ;;  %v2102_v51 = vmul.f32 3.8918573e-05, %v2090_v47 }
 0xe30   : > { %v2092_v28 = vadd.f32 0.00028619796, %v2091_v45  ;;  %v2103_v58 = vadd.f32 0.001143296, %v2102_v51 }
 0xe32   : > { %v2093_v27 = vmul.f32 %v2092_v28, %v2090_v47  ;;  %v2104_v62 = vmul.f32 %v2103_v58, %v2090_v47 }
 0xe34   : > { %v2105_v38 = vadd.f32 0.014752088, %v2104_v62  ;;  %v2094_v53 = vadd.f32 0.0036580483, %v2093_v27 }
 0xe36   : > { %v2106_v8 = vmul.f32 %v2105_v38, %v2090_v47  ;;  %v2095_v17 = vmul.f32 %v2094_v53, %v2090_v47 }
 0xe38   : > { %v2107_v12 = vadd.f32 0.112945676, %v2106_v8  ;;  %v2096_v57 = vadd.f32 0.05243302, %v2095_v17 }
 0xe3a   : > { %v2108_v59 = vmul.f32 %v2107_v12, %v2090_v47  ;;  %v1986_v40 = vpop.xlane.xlu2 %1985  ;;  %v2097_v60 = vmul.f32 %v2096_v57, %v2090_v47 }
 0xe3b   : > { %v1989_v56 = vmul.f32 %v1986_v40, %v3575_v33 }
 0xe3c   : > { %v2109_v21 = vadd.f32 0.4994258, %v2108_v59  ;;  %v2098_v61 = vadd.f32 0.18741608, %v2097_v60 }
 0xe3d   : > { %v1992_v0 = vadd.f32 1e-05, %v1989_v56 }
 0xe3e   : > { %v2110_v5 = vmul.f32 %v2109_v21, %v2090_v47  ;;  %v2099_v37 = vmul.f32 %v2098_v61, %v2090_v47 }
 0xe3f   : > { %2715 = vrsqrt.f32 %v1992_v0  ;;  %vm2019_vm5 = vweird.f32 %v1992_v0 }
 0xe40   : > { %v2111_v2 = vadd.f32 1.0, %v2110_v5  ;;  %v2100_v6 = vadd.f32 1.1283791, %v2099_v37 }
 0xe42   : > { %2717 = vrcp.f32 %v2111_v2  ;;  %v2123_v7 = vand.u32 2147483648, %v2111_v2  ;;  %v2121_v10 = vand.u32 2147483647, %v2111_v2  ;;  %vm2117_vm6 = vweird.f32 %v2111_v2 }
 0xe43   : > { %v2101_v35 = vmul.f32 %v2100_v6, %v3641_v44 }
 0xe44   : > { %v2124_v26 = vor.u32 1.1754944e-38, %v2123_v7  ;;  %vm2122_vm8 = vcmp.eq.f32.partialorder %v2121_v10, 8.507059e+37 }
 0xe45   : > { %v2716_v16 = vpop.eup %2715 }
 0xe46   : > { %v2014_v19 = vmul.f32 %v2716_v16, %v1992_v0  ;;  %vm2020_vm9 = vweird.f32 %v2716_v16 }
 0xe47   : > { %vm2021_vm14 = vmor %vm2019_vm5, %vm2020_vm9 }
 0xe48   : > { %v2718_v1 = vpop.eup %2717  ;;  %v2015_v22 = vmul.f32 %v2716_v16, %v2014_v19 }
 0xe49   : > { %v2113_v11 = vmul.f32 %v2718_v1, %v2111_v2  ;;  %vm2118_vm4 = vweird.f32 %v2718_v1 }
 0xe4a   : > { %v2016_v3 = vmul.f32 0.5, %v2015_v22  ;;  %vm2119_vm15 = vmor %vm2117_vm6, %vm2118_vm4 }
 0xe4b   : > { %v2114_v4 = vsub.f32 1.0, %v2113_v11  ;;  %v3684_v11 = vld [vmem:[%s3790_s11] ss:$0 sm:$0xff]  ;;  %vm3912_vm6 = vmmov %vm3911_vm0 }
 0xe4c   : > { %v2017_v9 = vsub.f32 1.5, %v2016_v3 }
 0xe4d   : > { %v2115_v29 = vmul.f32 %v2718_v1, %v2114_v4 }
 0xe4e   : > { %v2018_v55 = vmul.f32 %v2716_v16, %v2017_v9 }
 0xe4f   : > { %v2116_v32 = vadd.f32 %v2718_v1, %v2115_v29 }
 0xe50   : > { %v2022_v13 = vsel %vm2021_vm14, %v2716_v16, %v2018_v55 }
 0xe51   : > { %v2120_v18 = vsel %vm2119_vm15, %v2718_v1, %v2116_v32  ;;  %v2025_v48 = vmul.f32 %v2022_v13, %v3623_v24 }
 0xe52   : > { %v2125_v23 = vsel %vm2122_vm8, %v2124_v26, %v2120_v18  ;;  %vm3913_vm8 = vmmov %vm3911_vm0 }
 0xe53   : > { %v2126_v31 = vmul.f32 %v2125_v23, %v2101_v35  ;;  %v2032_v41 = vmul.f32 %v3611_v63, %v2025_v48 }
 0xe55   : > { %v2614_v15 = vclamps-f32 %v2126_v31, 1.0  ;;  %v2039_v47 = vadd.f32 %v3616_v20, %v2032_v41 }
 0xe57   : > { %v2209_v45 = vadd.f32 1.0, %v2614_v15  ;;  %2613 = vmatmul.msk.f32.gmra.mxu3 %vm3910_vm11, %v2039_v47 }
 0xe59   : > { %v2212_v51 = vmul.f32 %v2209_v45, %v2083_v49 }
 0xe5b   : > { %2617 = vmatmul.msk.f32.vlgmr.msrb.gmra.mxu0 %vm2227_vm12, %v2212_v51 }
 0xea8   : > { %v2077_v44 = vpop.f32.mrf.mxu3 }
 0xea9   : > { %v2078_v52 = vadd.f32 %v3633_v50, %v2077_v44 }
 0xeab   : > { %v2087_v24 = vmul.f32 0.70710677, %v2078_v52  ;;  %v2084_v6 = vmul.f32 0.5, %v2078_v52 }
 0xead   : > { %v2129_v28 = vmul.f32 %v2087_v24, %v2087_v24 }
 0xeaf   : > { %v2130_v58 = vmin.f32 %v2129_v28, 16.0 }
 0xeb1   : > { %v2131_v30 = vmul.f32 2.1237322e-06, %v2130_v58  ;;  %v2142_v63 = vmul.f32 3.8918573e-05, %v2130_v58 }
 0xeb3   : > { %v2132_v27 = vadd.f32 0.00028619796, %v2131_v30  ;;  %v2143_v62 = vadd.f32 0.001143296, %v2142_v63 }
 0xeb5   : > { %v2133_v20 = vmul.f32 %v2132_v27, %v2130_v58  ;;  %v2144_v34 = vmul.f32 %v2143_v62, %v2130_v58 }
 0xeb7   : > { %v2145_v43 = vadd.f32 0.014752088, %v2144_v34  ;;  %v2134_v38 = vadd.f32 0.0036580483, %v2133_v20 }
 0xeb9   : > { %v2146_v14 = vmul.f32 %v2145_v43, %v2130_v58  ;;  %v2135_v8 = vmul.f32 %v2134_v38, %v2130_v58 }
 0xebb   : > { %v2147_v53 = vadd.f32 0.112945676, %v2146_v14  ;;  %v2136_v46 = vadd.f32 0.05243302, %v2135_v8 }
 0xebd   : > { %v2148_v39 = vmul.f32 %v2147_v53, %v2130_v58  ;;  %v2137_v59 = vmul.f32 %v2136_v46, %v2130_v58 }
 0xebf   : > { %v2149_v12 = vadd.f32 0.4994258, %v2148_v39  ;;  %v2138_v40 = vadd.f32 0.18741608, %v2137_v59 }
 0xec1   : > { %v2150_v17 = vmul.f32 %v2149_v12, %v2130_v58  ;;  %v2139_v21 = vmul.f32 %v2138_v40, %v2130_v58 }
 0xec3   : > { %v2151_v54 = vadd.f32 1.0, %v2150_v17  ;;  %v2140_v2 = vadd.f32 1.1283791, %v2139_v21 }
 0xec5   : > { %2719 = vrcp.f32 %v2151_v54  ;;  %v2163_v5 = vand.u32 2147483648, %v2151_v54  ;;  %v2161_v16 = vand.u32 2147483647, %v2151_v54  ;;  %vm2157_vm13 = vweird.f32 %v2151_v54 }
 0xec6   : > { %v2141_v1 = vmul.f32 %v2140_v2, %v2087_v24 }
 0xec7   : > { %v2164_v19 = vor.u32 1.1754944e-38, %v2163_v5  ;;  %vm2162_vm1 = vcmp.eq.f32.partialorder %v2161_v16, 8.507059e+37 }
 0xecb   : > { %v2720_v56 = vpop.eup %2719 }
 0xecc   : > { %v2153_v57 = vmul.f32 %v2720_v56, %v2151_v54  ;;  %vm2158_vm7 = vweird.f32 %v2720_v56 }
 0xecd   : > { %vm2159_vm10 = vmor %vm2157_vm13, %vm2158_vm7 }
 0xece   : > { %v2154_v0 = vsub.f32 1.0, %v2153_v57 }
 0xed0   : > { %v2155_v60 = vmul.f32 %v2720_v56, %v2154_v0 }
 0xed2   : > { %v2156_v61 = vadd.f32 %v2720_v56, %v2155_v60 }
 0xed4   : > { %v2160_v22 = vsel %vm2159_vm10, %v2720_v56, %v2156_v61 }
 0xed5   : > { %v2165_v37 = vsel %vm2162_vm1, %v2164_v19, %v2160_v22 }
 0xed6   : > { %v2166_v3 = vmul.f32 %v2165_v37, %v2141_v1 }
 0xed8   : > { %v2254_v4 = vpop.f32.mrf.mxu0  ;;  %v2615_v7 = vclamps-f32 %v2166_v3, 1.0 }
 0xed9   : > { %v2255_v9 = vadd.f32 %v3684_v11, %v2254_v4  ;;  %v2298_v4 = vld [vmem:[%s3793_s14 + $0x18] sm:$0xff] }
 0xeda   : > { %v2080_v29 = vpop.f32.mrf.mxu3  ;;  %v2210_v10 = vadd.f32 1.0, %v2615_v7  ;;  %2315 = vmatpush.msrb.mxu1 %v2298_v4  ;;  %v2297_v7 = vld [vmem:[%s3793_s14 + $0x10] sm:$0xff] }
 0xedb   : > { %v2263_v55 = vadd.f32 %v2255_v9, %v3570_v36  ;;  %v2081_v32 = vadd.f32 %v3633_v50, %v2080_v29 }
 0xedc   : > { %v2213_v26 = vmul.f32 %v2210_v10, %v2084_v6  ;;  %2316 = vmatpush.msrb.mxu1 %v2297_v7 }
 0xedd   : > { %2266 = vst.msk [vmem:[%s3690_s26] sm:$0xff] %vm3911_vm0, %v2263_v55  ;;  %v2088_v13 = vmul.f32 0.70710677, %v2081_v32  ;;  %v2269_v35 = vsel %vm1958_vm2, %v2263_v55, 0.0  ;;  %v2085_v56 = vmul.f32 0.5, %v2081_v32 }
 0xede   : > { %2270 = vadd.xlane.f32.xlu0 %v2269_v35  ;;  %2618 = vmatmul.msk.f32.gmra.mxu0 %vm2227_vm12, %v2213_v26  ;;  %v2291_v35 = vld [vmem:[%s3791_s12] sm:$0x1] }
 0xedf   : > { %v2169_v18 = vmul.f32 %v2088_v13, %v2088_v13 }
 0xee1   : > { %v2170_v48 = vmin.f32 %v2169_v18, 16.0 }
 0xee3   : > { %v2171_v23 = vmul.f32 2.1237322e-06, %v2170_v48  ;;  %v2182_v31 = vmul.f32 3.8918573e-05, %v2170_v48 }
 0xee5   : > { %v2172_v41 = vadd.f32 0.00028619796, %v2171_v23  ;;  %v2183_v36 = vadd.f32 0.001143296, %v2182_v31 }
 0xee7   : > { %v2173_v15 = vmul.f32 %v2172_v41, %v2170_v48  ;;  %v2184_v50 = vmul.f32 %v2183_v36, %v2170_v48 }
 0xee9   : > { %v2185_v47 = vadd.f32 0.014752088, %v2184_v50  ;;  %v2174_v49 = vadd.f32 0.0036580483, %v2173_v15 }
 0xeeb   : > { %v2186_v45 = vmul.f32 %v2185_v47, %v2170_v48  ;;  %v2175_v44 = vmul.f32 %v2174_v49, %v2170_v48 }
 0xeed   : > { %v2187_v51 = vadd.f32 0.112945676, %v2186_v45  ;;  %v2176_v28 = vadd.f32 0.05243302, %v2175_v44 }
 0xeef   : > { %v2188_v52 = vmul.f32 %v2187_v51, %v2170_v48  ;;  %v2177_v63 = vmul.f32 %v2176_v28, %v2170_v48 }
 0xef1   : > { %v2189_v24 = vadd.f32 0.4994258, %v2188_v52  ;;  %v2178_v27 = vadd.f32 0.18741608, %v2177_v63 }
 0xef3   : > { %v2190_v58 = vmul.f32 %v2189_v24, %v2170_v48  ;;  %v2179_v20 = vmul.f32 %v2178_v27, %v2170_v48  ;;  %v2293_v48 = vld [vmem:[%s3792_s13] sm:$0x1] }
 0xef5   : > { %v2191_v30 = vadd.f32 1.0, %v2190_v58  ;;  %v2180_v14 = vadd.f32 1.1283791, %v2179_v20 }
 0xef7   : > { %2721 = vrcp.f32 %v2191_v30  ;;  %v2203_v38 = vand.u32 2147483648, %v2191_v30  ;;  %v2201_v8 = vand.u32 2147483647, %v2191_v30  ;;  %vm2197_vm9 = vweird.f32 %v2191_v30 }
 0xef8   : > { %v2181_v46 = vmul.f32 %v2180_v14, %v2088_v13 }
 0xef9   : > { %v2204_v12 = vor.u32 1.1754944e-38, %v2203_v38  ;;  %vm2202_vm5 = vcmp.eq.f32.partialorder %v2201_v8, 8.507059e+37 }
 0xefd   : > { %v2722_v62 = vpop.eup %2721 }
 0xefe   : > { %v2193_v34 = vmul.f32 %v2722_v62, %v2191_v30  ;;  %vm2198_vm3 = vweird.f32 %v2722_v62 }
 0xeff   : > { %vm2199_vm4 = vmor %vm2197_vm9, %vm2198_vm3 }
 0xf00   : > { %v2194_v43 = vsub.f32 1.0, %v2193_v34 }
 0xf02   : > { %v2195_v53 = vmul.f32 %v2722_v62, %v2194_v43 }
 0xf04   : > { %v2196_v39 = vadd.f32 %v2722_v62, %v2195_v53 }
 0xf06   : > { %v2200_v17 = vsel %vm2199_vm4, %v2722_v62, %v2196_v39 }
 0xf07   : > { %v2205_v54 = vsel %vm2202_vm5, %v2204_v12, %v2200_v17 }
 0xf08   : > { %v2206_v59 = vmul.f32 %v2205_v54, %v2181_v46 }
 0xf0a   : > { %v2616_v40 = vclamps-f32 %v2206_v59, 1.0 }
 0xf0c   : > { %v2211_v21 = vadd.f32 1.0, %v2616_v40 }
 0xf0e   : > { %v2214_v57 = vmul.f32 %v2211_v21, %v2085_v56 }
 0xf10   : > { %2619 = vmatmul.msk.f32.gmra.mxu0 %vm2227_vm12, %v2214_v57 }
 0xf51   : > { %v2271_v0 = vpop.xlane.xlu0 %2270 }
 0xf52   : > { %v2272_v5 = vmul.f32 %v2271_v0, %v3575_v33 }
 0xf54   : > { %v2273_v2 = vsub.f32 %v2263_v55, %v2272_v5 }
 0xf56   : > { %v2274_v60 = vmul.f32 %v2273_v2, %v2273_v2 }
 0xf58   : > { %v2275_v16 = vsel %vm1958_vm2, %v2274_v60, 0.0 }
 0xf59   : > { %2276 = vadd.xlane.f32.xlu1 %v2275_v16 }
 0xf5b   : > { %v2257_v61 = vpop.f32.mrf.mxu0 }
 0xf5c   : > { %v2258_v19 = vadd.f32 %v3684_v11, %v2257_v61 }
 0xf5e   : > { %v2264_v1 = vadd.f32 %v2258_v19, %v3582_v25  ;;  %v2296_v25 = vld [vmem:[%s3793_s14 + $0x8] sm:$0xff] }
 0xf5f   : > { %2317 = vmatpush.msrb.mxu1 %v2296_v25 }
 0xf60   : > { %2267 = vst.msk [vmem:[%s3690_s26 + $0x8] sm:$0xff] %vm3912_vm6, %v2264_v1 }
 0xf8d   : > { %v2260_v22 = vpop.f32.mrf.mxu0 }
 0xf8e   : > { %v2261_v37 = vadd.f32 %v3684_v11, %v2260_v22 }
 0xf90   : > { %v2265_v3 = vadd.f32 %v2261_v37, %v3588_v42  ;;  %v2295_v42 = vld [vmem:[%s3793_s14] sm:$0xff] }
 0xf91   : > { %2318 = vmatpush.msrb.mxu1 %v2295_v42 }
 0xf92   : > { %2268 = vst.msk [vmem:[%s3690_s26 + $0x10] sm:$0x1] %vm1958_vm2, %v2265_v3  ;;  %s2742_s26 = sshra.s32 %s2345_s2, 4  ;;  %s2743_s26 = int_to_ptr.hbm [resolvable:$true] %s2742_s26 }
 0xf93   : > { %s2744_s4 = scalar_lea.hbm %s2743_s26, 24  ;;  %p2749_p0 = scmp.lt.s32.totalorder %s2743_s26, %s3795_s16 }
 0xf94   : > { %p2745_p11 = scmp.ne.s32.totalorder %s2743_s26, %s2744_s4  ;;  %p2750_p1 = scmp.lt.s32.totalorder %s2748_s5, %s2744_s4 }
 0xf96   : > { %p2746_p12 = pnand %p2745_p11, %p2958_p5  ;;  %p2751_p2 = por %p2750_p1, %p2749_p0 }
 0xf98   : > { %p2747_p13 = pneg %p2746_p12 }
 0xf9a   : > { %p2752_p3 = pnand %p2751_p2, %p2747_p13 }
 0xfcc   : > { %v2277_v11 = vpop.xlane.xlu1 %2276 }
 0xfcd   : > { %v2278_v9 = vmul.f32 %v2277_v11, %v3575_v33 }
 0xfcf   : > { %v2279_v6 = vadd.f32 1e-05, %v2278_v9 }
 0xfd1   : > { %2723 = vrsqrt.f32 %v2279_v6  ;;  %vm2286_vm14 = vweird.f32 %v2279_v6 }
 0xfd7   : > { %v2724_v29 = vpop.eup %2723 }
 0xfd8   : > { %v2281_v10 = vmul.f32 %v2724_v29, %v2279_v6  ;;  %vm2287_vm2 = vweird.f32 %v2724_v29 }
 0xfd9   : > { %vm2288_vm15 = vmor %vm2286_vm14, %vm2287_vm2 }
 0xfda   : > { %v2282_v55 = vmul.f32 %v2724_v29, %v2281_v10 }
 0xfdc   : > { %v2283_v32 = vmul.f32 0.5, %v2282_v55 }
 0xfde   : > { %v2284_v26 = vsub.f32 1.5, %v2283_v32 }
 0xfe0   : > { %v2285_v13 = vmul.f32 %v2724_v29, %v2284_v26 }
 0xfe2   : > { %v2289_v18 = vsel %vm2288_vm15, %v2724_v29, %v2285_v13 }
 0xfe3   : > { %v2290_v33 = vmul.f32 %v2289_v18, %v2273_v2 }
 0xfe5   : > { %v2292_v23 = vmul.f32 %v2291_v35, %v2290_v33 }
 0xfe7   : > { %v2294_v31 = vadd.f32 %v2293_v48, %v2292_v23 }
 0xfe9   : > { %2620 = vmatmul.msk.f32.vlgmr.msrb.gmra.mxu1 %vm3913_vm8, %v2294_v31 }
 0xfea   : > { %2755 = shalt.err (!%p2752_p3)
}
 0xfeb   : > { %s2828_s3 = smov 128   ;;  %s2829_s29 = smov 8   ;;  %v2299_v41 = vld [vmem:[%s3794_s15] sm:$0x1]  ;;  %vm2323_vm11 = vcmask 73728  }
 0xfec   : > { %2627 = dma.vmem_to_hbm [thread:$0]  (%p2958_p5), %s2343_s19, 384, %s2345_s2, %s2326_s0, %s2828_s3, %s2828_s3, %s2829_s29  }
 0xfed   : > { %s2356_s30 = scalar_lea.hbm %s3796_s17, %s2941_s28  ;;  %s551_s4 = scalar_lea.vmem [#allocation4], %s3679_s22 }
 0xfee   : > { %s2358_s5 = sshll.u32 %s551_s4, 4  ;;  %s2360_s6 = sshll.u32 %s2356_s30, 4  ;;  %s2359_s5 = int_to_ptr.vmem [resolvable:$true] %s2358_s5  ;;  %s2361_s6 = int_to_ptr.hbm [resolvable:$true] %s2360_s6 }
 0xfef   : > { %s2331_s7 = scalar_lea.sflag [#allocation5], %s3679_s22  ;;  %s2770_s19 = sshra.s32 %s2361_s6, 4  ;;  %s2771_s19 = int_to_ptr.hbm [resolvable:$true] %s2770_s19 }
 0xff0   : > { %s2772_s2 = scalar_lea.hbm %s2771_s19, 1  ;;  %s2776_s0 = scalar_lea.hbm %s3796_s17, 2 }
 0xff1   : > { %p2773_p4 = scmp.ne.s32.totalorder %s2771_s19, %s2772_s2  ;;  %p2777_p9 = scmp.lt.s32.totalorder %s2771_s19, %s3796_s17 }
 0xff2   : > { %p2778_p10 = scmp.lt.s32.totalorder %s2776_s0, %s2772_s2 }
 0xff3   : > { %p2774_p7 = pnand %p2773_p4, %p2958_p5 }
 0xff4   : > { %p2779_p11 = por %p2778_p10, %p2777_p9 }
 0xff5   : > { %p2775_p8 = pneg %p2774_p7 }
 0xff7   : > { %p2780_p12 = pnand %p2779_p11, %p2775_p8 }
0x1066   : > { %v2320_v36 = vpop.f32.mrf.mxu1 }
0x1067   : > { %v2321_v15 = vadd.f32 %v2320_v36, %v2299_v41 }
0x1069   : > { %2324 = vst.msk [vmem:[%s551_s4] sm:$0x1] %vm2323_vm11, %v2321_v15 }
0x106a   : > { %2783 = shalt.err (!%p2780_p12)
}
0x106b   : > { %2628 = dma.vmem_to_hbm [thread:$0]  (%p2958_p5), %s2359_s5, 16, %s2361_s6, %s2331_s7  }
0x106c PF: > { %p2638_p13 = scmp.ge.s32.totalorder %s2822_s27, 2  ;;  %s2372_s29 = sand.u32 1, %s2810_s24  }
0x106d   : > { %s2373_s23 = scalar_lea.sflag [#allocation3], %s2372_s29 }
0x106e   : > { %p2632_p0 = pnand %p2638_p13, %p2962_p6 }
0x1070   : > { %p2633_p1 = pneg %p2632_p0 }
0x1072   : > { %2801 = dma.done.wait (%p2633_p1), %s2373_s23, 384  }
0x1073   : > { %2803 = vsyncadd (%p2633_p1), %s2373_s23, 4294966912  ;;  %s2383_s20 = scalar_lea.sflag [#allocation5], %s2372_s29 }
0x1074   : > { %2805 = dma.done.wait (%p2633_p1), %s2383_s20, 16  }
0x1075   : > { %2807 = vsyncadd (%p2633_p1), %s2383_s20, 4294967280  ;;  %s3915_s27 = sld [smem:[#allocation9_spill]]  ;;  %s3918_s24 = smov %s2814_s25 }
0x1076   : > { %s3916_s30 = sld [smem:[#allocation8_spill]] }
0x1077   : > { %s3917_s26 = sld [smem:[#allocation10_spill]] }
0x107b   : > { %p31_p5 = scmp.ge.s32.totalorder %s3915_s27, 4  }
0x107c   : > { %s3919_s25 = smov %s3916_s30 }
0x107d   :  { %33 = sbr.rel (!%p31_p5) target bundleno = 15 (0xf), region = 137 }
0x1082   :  { %2388 = vsyncpa [#allocation3], 1 }
0x1083   :  { %2390 = vsyncpa [#allocation3 + $0x1], 1 }
0x1084   :  { %2391 = vsyncpa [#allocation5], 1 }
0x1085   :  { %2393 = vsyncpa [#allocation5 + $0x1], 1 }

// kernel: vit_forward.4
= control target key start
LH: loop header
LB: loop body
LE: loop exit
PB: predicated region body
PF: predicated region fallthrough
CT: control target
= control target key end

     0   :  { %s2496_s21 = smov 0   ;;  %s3267_s0 = inlined_call_operand.vmem [shape: f32[2,17,32], index: 0, kind: input, shape index: {}]   ;;  %s3268_s1 = inlined_call_operand.vmem [shape: f32[96,32], index: 1, kind: input, shape index: {}]   ;;  %s3269_s2 = inlined_call_operand.vmem [shape: f32[96,1], index: 2, kind: input, shape index: {}]   ;;  %s3270_s3 = inlined_call_operand.vmem [shape: f32[2,16,17], index: 3, kind: input, shape index: {}]   ;;  %s3271_s4 = inlined_call_operand.vmem [shape: f32[32,32], index: 4, kind: input, shape index: {}]   ;;  %s3272_s5 = inlined_call_operand.vmem [shape: f32[1,32], index: 5, kind: input, shape index: {}]   ;;  %s3273_s6 = inlined_call_operand.vmem [shape: f32[1,32], index: 6, kind: input, shape index: {}]   ;;  %s3274_s7 = inlined_call_operand.vmem [shape: f32[1,32], index: 7, kind: input, shape index: {}]   ;;  %s3275_s8 = inlined_call_operand.vmem [shape: f32[32,64], index: 8, kind: input, shape index: {}]   ;;  %s3276_s9 = inlined_call_operand.vmem [shape: f32[1,64], index: 9, kind: input, shape index: {}]   ;;  %s3277_s10 = inlined_call_operand.vmem [shape: f32[64,32], index: 10, kind: input, shape index: {}]   ;;  %s3278_s11 = inlined_call_operand.vmem [shape: f32[1,32], index: 11, kind: input, shape index: {}]   ;;  %s3279_s12 = inlined_call_operand.vmem [shape: f32[2,17,32], index: 12, kind: output, shape index: {}]  }
   0x1 LB: > { %s2181_s22 = sadd.s32 4294967295, %s2425_s21   ;;  %p2185_p0 = scmp.ge.s32.totalorder %s2425_s21, 1  ;;  %s2425_s21 = sphi %s2496_s21, %s22_s21  }
   0x2   : > { %p362_p1 = scmp.lt.s32.totalorder %s2425_s21, 3 }
   0x4   : > { %p363_p2 = pnand %p2185_p0, %p362_p1 }
   0x5   : > { %p404_p3 = scmp.lt.s32.totalorder (!%p363_p2), %s2181_s22, 1 }
   0x6   : > { %366 = sbr.rel (%p363_p2) target bundleno = 3799 (0xed7), region = 68 }
   0xb   : > { %v429_v0 = vld [vmem:[%s3269_s2] sm:$0xff]  ;;  %v2427_v1 = vmov 0   ;;  %s3366_s22 = smov (!%p404_p3, %s2181_s22), 1  ;;  %v434_v2 = vld [vmem:[%s3269_s2 + $0x28] sm:$0xff]  ;;  %vm3296_vm0 = vcmask 261120   ;;  %v431_v8 = vld [vmem:[%s3269_s2 + $0x10] sm:$0xff]  ;;  %v600_v23 = vlaneseq }
   0xc   : > { %2370 = vset.pattern.permute.xlu0 %v2427_v1  ;;  %2371 = vset.pattern.permute.xlu2 %v2427_v1  ;;  %s2357_s27 = smul.u32 24, %s3366_s22  ;;  %v430_v4 = vld [vmem:[%s3269_s2 + $0x8] sm:$0xff]  ;;  %v433_v6 = vld [vmem:[%s3269_s2 + $0x20] sm:$0xff]  ;;  %v419_v11 = vld [vmem:[%s3268_s1 + $0x10] sm:$0xff]  ;;  %vm3288_vm1 = vcmask 1040384   ;;  %v2428_v31 = vmov 0.0  }
   0xd   : > { %443 = vperm.xlu0 %2370, %v429_v0   ;;  %468 = vperm.xlu2 %2371, %v434_v2   ;;  %v417_v9 = vld [vmem:[%s3268_s1] sm:$0xff]  ;;  %v418_v10 = vld [vmem:[%s3268_s1 + $0x8] sm:$0xff]  ;;  %v2553_v24 = vshrl.u32 %v600_v23, 7  ;;  %v2561_v27 = vand.u32 127, %v600_v23  ;;  %vm3289_vm4 = vcmask 130048   ;;  %v2429_v33 = vmov 1.0  }
   0xe   : > { %s2518_s30 = scalar_lea.vmem %s3267_s0, %s2357_s27  ;;  %v608_v12 = vld [vmem:[%s3270_s3 + $0x8] sm:$0xff]  ;;  %v607_v13 = vld [vmem:[%s3270_s3] sm:$0xff]  ;;  %vm698_vm6 = vcmask 138240   ;;  %s413_s24 = scalar_lea.vmem %s3279_s12, %s2357_s27 }
   0xf   : > { %v416_v3 = vld [vmem:[%s2518_s30 + $0x10] sm:$0x1]  ;;  %v415_v5 = vld [vmem:[%s2518_s30 + $0x8] sm:$0xff]  ;;  %v414_v7 = vld [vmem:[%s2518_s30] sm:$0xff]  ;;  %665 = vmatpush.msra.mxu1 %v608_v12  ;;  %v2556_v25 = vadd.s32 16, %v2553_v24  ;;  %v2559_v26 = vadd.s32 8, %v2553_v24 }
  0x10   : > { %2188 = vmatpush.xpose.msk.msra.mxu0 %vm3296_vm0, %v416_v3  ;;  %v2601_v37 = vadd.s32 1, %v2553_v24  ;;  %v2636_v50 = vadd.s32 2, %v2553_v24  ;;  %v738_v57 = vand.u32 1, %v2553_v24 }
  0x11   : > { %666 = vmatpush.msra.mxu1 %v607_v13  ;;  %v2564_v28 = vadd.s32 1, %v2556_v25  ;;  %v2567_v29 = vadd.s32 1, %v2559_v26  ;;  %v790_v41 = vadd.s32 2, %v2556_v25  ;;  %v789_v42 = vadd.s32 2, %v2559_v26 }
  0x12   : > { %vm3282_vm5 = vcmp.eq.s32.totalorder %v2601_v37, %v2561_v27  ;;  %vm3286_vm10 = vcmp.eq.s32.totalorder %v2636_v50, %v2561_v27  ;;  %v858_v51 = vadd.s32 4, %v2556_v25  ;;  %v857_v52 = vadd.s32 4, %v2559_v26 }
  0x13   : > { %v2208_v30 = vadd.s32 4294967279, %v2564_v28  ;;  %vm3285_vm3 = vcmp.eq.s32.totalorder %v2567_v29, %v2561_v27  ;;  %v2226_v43 = vadd.s32 4294967279, %v790_v41  ;;  %vm792_vm7 = vcmp.ge.s32.totalorder %v789_v42, 17 }
  0x14   : > { %2189 = vmatpush.xpose.msk.msra.mxu0 %vm3296_vm0, %v415_v5  ;;  %v2225_v44 = vadd.s32 4294967279, %v789_v42  ;;  %v2238_v53 = vadd.s32 4294967279, %v858_v51  ;;  %vm860_vm11 = vcmp.ge.s32.totalorder %v857_v52, 17  ;;  %v2237_v54 = vadd.s32 4294967279, %v857_v52 }
  0x15   : > { %448 = vperm.xlu0 %2370, %v430_v4   ;;  %463 = vperm.xlu2 %2371, %v433_v6   ;;  %vm691_vm2 = vcmp.eq.s32.totalorder %v2208_v30, %v2561_v27  ;;  %vm802_vm8 = vcmp.eq.s32.totalorder %v2226_v43, %v2561_v27  ;;  %vm2654_vm14 = vcmp.ne.s32.totalorder %v738_v57, 0  ;;  %v739_v61 = vand.u32 1, %v2559_v26  ;;  %v420_v6 = vld [vmem:[%s3268_s1 + $0x18] sm:$0xff] }
  0x16   : > { %v2572_v32 = vsel %vm691_vm2, 1.0, %v2428_v31  ;;  %v2619_v45 = vsel %vm792_vm7, %v2225_v44, %v789_v42  ;;  %v2622_v46 = vsel %vm802_vm8, 1.0, %v2428_v31  ;;  %vm870_vm12 = vcmp.eq.s32.totalorder %v2238_v53, %v2561_v27 }
  0x17   : > { %2212 = vmatpush.msk.msra.mxu2 %vm3288_vm1, %v2572_v32  ;;  %2218 = vmatpush.msk.msra.mxu3 %vm3288_vm1, %v2572_v32  ;;  %vm3287_vm9 = vcmp.eq.s32.totalorder %v2619_v45, %v2561_v27  ;;  %v866_v55 = vsel %vm860_vm11, %v2237_v54, %v857_v52  ;;  %v2241_v56 = vsel %vm870_vm12, 1.0, %v2428_v31  ;;  %vm2662_vm15 = vcmp.ne.s32.totalorder %v739_v61, 0 }
  0x18   : > { %2190 = vmatpush.xpose.msk.msra.mxu0 %vm3296_vm0, %v414_v7  ;;  %2230 = vmatpush.msk.msrb.mxu1 %vm3288_vm1, %v2622_v46  ;;  %vm869_vm13 = vcmp.eq.s32.totalorder %v866_v55, %v2561_v27  ;;  %v856_v5 = vadd.s32 4, %v2553_v24  ;;  %v421_v7 = vld [vmem:[%s3268_s1 + $0x20] sm:$0xff]  ;;  %v783_v30 = vand.u32 2, %v2559_v26  ;;  %v784_v41 = vand.u32 2, %v2556_v25 }
  0x19   : > { %2213 = vmatpush.msk.msra.mxu2 %vm3285_vm3, %v2429_v33  ;;  %2219 = vmatpush.msk.msra.mxu3 %vm3285_vm3, %v2429_v33  ;;  %v850_v57 = vand.u32 4, %v2553_v24  ;;  %vm3295_vm3 = vcmp.eq.s32.totalorder %v2561_v27, %v2601_v37 }
  0x1a   : > { %2231 = vmatpush.msk.msrb.mxu1 %vm3287_vm9, %v2429_v33  ;;  %vm868_vm7 = vcmp.eq.s32.totalorder %v856_v5, %v2561_v27  ;;  %v3316_v5 = vmov 0  ;;  %vm3293_vm9 = vcmp.eq.s32.totalorder %v2561_v27, %v2564_v28 }
  0x1b   : > { %2191 = vmatmul.msk.f32.vlgmr.msra.gmra.mxu0 %vm3296_vm0, %v417_v9  ;;  %2214 = vmatpush.msk.msra.mxu2 %vm3282_vm5, %v2429_v33  ;;  %v992_v9 = vadd.s32 16, %v2556_v25 }
  0x1c   : > { %2220 = vmatpush.msk.msra.mxu3 %vm3282_vm5, %v2429_v33  ;;  %2232 = vmatpush.msk.msrb.mxu1 %vm3286_vm10, %v2429_v33  ;;  %vm3290_vm10 = vcmp.eq.s32.totalorder %v2561_v27, %v2567_v29 }
  0x1d   : > { %453 = vperm.xlu0 %2370, %v431_v8   ;;  %2242 = vmatpush.msk.msrb.mxu2 %vm3288_vm1, %v2241_v56  ;;  %v925_v8 = vadd.s32 8, %v2556_v25  ;;  %v2262_v13 = vadd.s32 4294967279, %v992_v9 }
  0x1e   : > { %2313 = vmatpush.msk.msrb.mxu0 %vm3288_vm1, %v2241_v56 }
  0x1f   : > { %2243 = vmatpush.msk.msrb.mxu2 %vm869_vm13, %v2429_v33  ;;  %v2250_v12 = vadd.s32 4294967279, %v925_v8  ;;  %vm1004_vm12 = vcmp.eq.s32.totalorder %v2262_v13, %v2561_v27  ;;  %v432_v8 = vld [vmem:[%s3269_s2 + $0x18] sm:$0xff] }
  0x20   : > { %2314 = vmatpush.msk.msrb.mxu0 %vm869_vm13, %v2429_v33 }
  0x21   : > { %2244 = vmatpush.msk.msrb.mxu2 %vm868_vm7, %v2429_v33  ;;  %vm937_vm11 = vcmp.eq.s32.totalorder %v2250_v12, %v2561_v27 }
  0x22   : > { %2315 = vmatpush.msk.msrb.mxu0 %vm868_vm7, %v2429_v33 }
  0x23   : > { %2192 = vmatmul.msk.f32.gmra.mxu0 %vm3296_vm0, %v418_v10  ;;  %v924_v10 = vadd.s32 8, %v2559_v26 }
  0x25   : > { %vm927_vm8 = vcmp.ge.s32.totalorder %v924_v10, 17 }
  0x2b   : > { %2193 = vmatmul.msk.f32.gmra.mxu0 %vm3296_vm0, %v419_v11  ;;  %v991_v11 = vadd.s32 16, %v2559_v26 }
  0x33   : > { %2194 = vmatmul.msk.f32.gmra.mxu0 %vm3296_vm0, %v420_v6 }
  0x3b   : > { %2195 = vmatmul.msk.f32.gmra.mxu0 %vm3296_vm0, %v421_v7 }
  0x67   : > { %v469_v51 = vpop.permute.xlu2 %468 }
  0x6f   : > { %v464_v53 = vpop.permute.xlu2 %463 }
  0x7f   : > { %v444_v14 = vpop.permute.xlu0 %443 }
  0x87   : > { %v449_v17 = vpop.permute.xlu0 %448 }
  0x8f   : > { %v454_v20 = vpop.permute.xlu0 %453 }
  0x98   : > { %v564_v15 = vpop.f32.mrf.mxu0 }
  0x99   : > { %v565_v16 = vadd.f32 %v564_v15, %v444_v14  ;;  %v2249_v14 = vadd.s32 4294967279, %v924_v10  ;;  %v2693_v15 = vadd.s32 4294967279, %v991_v11 }
  0x9b   : > { %609 = vxpose.xlu1.b32.start [1/2] (short) (narrow) %v565_v16, 24  ;;  %v2697_v16 = vsel %vm927_vm8, %v2249_v14, %v924_v10  ;;  %vm3280_vm7 = vcmp.eq.s32.totalorder %v2693_v15, %v2561_v27  ;;  %v424_v14 = vld [vmem:[%s3268_s1 + $0x38] sm:$0xff] }
  0x9c   : > { %vm3281_vm13 = vcmp.eq.s32.totalorder %v2697_v16, %v2561_v27 }
  0xa0   : > { %v567_v18 = vpop.f32.mrf.mxu0 }
  0xa1   : > { %v568_v19 = vadd.f32 %v567_v18, %v449_v17  ;;  %v2700_v17 = vsel %vm937_vm11, 1.0, %v2428_v31  ;;  %v2703_v18 = vsel %vm1004_vm12, 1.0, %v2428_v31  ;;  %vm2734_vm11 = vcmp.ne.s32.totalorder %v783_v30, 0 }
  0xa2   : > { %2254 = vmatpush.msk.msrb.mxu3 %vm3288_vm1, %v2700_v17  ;;  %vm2742_vm12 = vcmp.ne.s32.totalorder %v784_v41, 0  ;;  %v2841_v30 = vsel %vm3293_vm9, 1.0, %v2428_v31 }
  0xa3   : > { %610 = vxpose.xlu1.b32.end [2/2] (short) (narrow) %v568_v19, 24  ;;  %v422_v19 = vld [vmem:[%s3268_s1 + $0x28] sm:$0xff] }
  0xa4   : > { %2255 = vmatpush.msk.msrb.mxu3 %vm3281_vm13, %v2429_v33  ;;  %2196 = vmatmul.msk.f32.gmra.mxu0 %vm3296_vm0, %v422_v19  ;;  %vm3284_vm13 = vcmp.eq.s32.totalorder %v2559_v26, %v2561_v27 }
  0xa6   : > { %2256 = vmatpush.msk.msrb.mxu3 %vm3284_vm13, %v2429_v33 }
  0xa8   : > { %v570_v21 = vpop.f32.mrf.mxu0 }
  0xa9   : > { %v571_v22 = vadd.f32 %v570_v21, %v454_v20  ;;  %v782_v20 = vand.u32 2, %v2553_v24 }
  0xab   : > { %1297 = vxpose.xlu2.b32.start [1/2] (short) (narrow) %v571_v22, 24  ;;  %vm2726_vm8 = vcmp.ne.s32.totalorder %v782_v20, 0  ;;  %v2817_v20 = vsel %vm3295_vm3, 1.0, %v2428_v31 }
  0xf6   : > { %2372 = vset.pattern.permute.xlu1 %v2427_v1  ;;  %v740_v1 = vand.u32 1, %v2556_v25 }
  0xf8   : > { %vm2670_vm2 = vcmp.ne.s32.totalorder %v740_v1, 0 }
 0x105   : > { %458 = vperm.xlu1 %2372, %v432_v8  }
 0x13f   : > { %v2588_v34 = vpop.trf.xlu1 }
 0x140   : > { %2203 = vmatmul.msk.f32.vlgmr.msra.gmra.mxu1 %vm3289_vm4, %v2588_v34 }
 0x141   : > { %2266 = vmatpush.msk.msra.mxu1 %vm3288_vm1, %v2703_v18 }
 0x143   : > { %2267 = vmatpush.msk.msra.mxu1 %vm3280_vm7, %v2429_v33  ;;  %vm993_vm7 = vcmp.ge.s32.totalorder %v2556_v25, 17 }
 0x147   : > { %v2592_v35 = vpop.trf.xlu1 }
 0x148   : > { %2204 = vmatmul.msk.f32.gmra.mxu1 %vm3289_vm4, %v2592_v35 }
 0x14f   : > { %v2596_v36 = vpop.trf.xlu1 }
 0x150   : > { %2205 = vmatmul.msk.f32.gmra.mxu1 %vm3289_vm4, %v2596_v36 }
 0x1bd   : > { %v668_v38 = vpop.f32.mrf.mxu1 }
 0x1be   : > { %2215 = vmatmul.msk.f32.vlgmr.msra.gmra.mxu2 %vm698_vm6, %v668_v38 }
 0x1c5   : > { %v671_v39 = vpop.f32.mrf.mxu1 }
 0x1c6   : > { %2216 = vmatmul.msk.f32.gmra.mxu2 %vm698_vm6, %v671_v39 }
 0x1cd   : > { %v674_v40 = vpop.f32.mrf.mxu1 }
 0x1ce   : > { %2217 = vmatmul.msk.f32.gmra.mxu2 %vm698_vm6, %v674_v40 }
 0x241   : > { %v729_v47 = vpop.f32.mrf.mxu2 }
 0x242   : > { %2221 = vmatmul.msk.f32.vlgmr.msra.gmra.mxu3 %vm698_vm6, %v729_v47 }
 0x249   : > { %v732_v48 = vpop.f32.mrf.mxu2 }
 0x24a   : > { %2222 = vmatmul.msk.f32.gmra.mxu3 %vm698_vm6, %v732_v48 }
 0x251   : > { %v735_v49 = vpop.f32.mrf.mxu2 }
 0x252   : > { %2223 = vmatmul.msk.f32.gmra.mxu3 %vm698_vm6, %v735_v49 }
 0x2c5   : > { %v770_v59 = vpop.f32.mrf.mxu3 }
 0x2c6   : > { %v779_v60 = vsel %vm2654_vm14, %v770_v59, %v729_v47  ;;  %v2260_v47 = vadd.s32 4294967279, %v2556_v25 }
 0x2c7   : > { %2233 = vmatmul.msk.f32.vlgmr.msrb.gmra.mxu1 %vm698_vm6, %v779_v60 }
 0x2cd   : > { %v773_v63 = vpop.f32.mrf.mxu3 }
 0x2ce   : > { %v780_v0 = vsel %vm2662_vm15, %v773_v63, %v732_v48  ;;  %v2752_v48 = vsel %vm993_vm7, %v2260_v47, %v2556_v25  ;;  %vm2767_vm7 = vcmp.ne.s32.totalorder %v850_v57, 0  ;;  %v851_v63 = vand.u32 4, %v2559_v26 }
 0x2cf   : > { %2234 = vmatmul.msk.f32.gmra.mxu1 %vm698_vm6, %v780_v0  ;;  %vm3283_vm5 = vcmp.eq.s32.totalorder %v2752_v48, %v2561_v27 }
 0x2d0   : > { %2268 = vmatpush.msk.msra.mxu1 %vm3283_vm5, %v2429_v33  ;;  %vm2776_vm5 = vcmp.ne.s32.totalorder %v851_v63, 0  ;;  %v439_v63 = vld [vmem:[%s3269_s2 + $0x50] sm:$0xff] }
 0x2d5   : > { %v776_v3 = vpop.f32.mrf.mxu3 }
 0x2d6   : > { %v781_v4 = vsel %vm2670_vm2, %v776_v3, %v735_v49  ;;  %v573_v49 = vpop.f32.mrf.mxu0 }
 0x2d7   : > { %2235 = vmatmul.msk.f32.gmra.mxu1 %vm698_vm6, %v781_v4 }
 0x2de   : > { %v576_v52 = vpop.f32.mrf.mxu0 }
 0x2df   : > { %v577_v56 = vadd.f32 %v576_v52, %v464_v53 }
 0x2e6   : > { %v579_v54 = vpop.f32.mrf.mxu0 }
 0x2e7   : > { %v580_v55 = vadd.f32 %v579_v54, %v469_v51 }
 0x2e9   : > { %1122 = vmatpush.msra.mxu3 %v580_v55 }
 0x2eb   : > { %1123 = vmatpush.msra.mxu3 %v577_v56 }
 0x344   : > { %v838_v22 = vpop.f32.mrf.mxu1 }
 0x345   : > { %v847_v23 = vsel %vm2726_vm8, %v838_v22, %v779_v60  ;;  %v425_v22 = vld [vmem:[%s3268_s1 + $0x40] sm:$0xff] }
 0x346   : > { %2245 = vmatmul.msk.f32.vlgmr.msrb.gmra.mxu2 %vm698_vm6, %v847_v23 }
 0x34c   : > { %v841_v39 = vpop.f32.mrf.mxu1 }
 0x34d   : > { %v848_v40 = vsel %vm2734_vm11, %v841_v39, %v780_v0  ;;  %v3314_v0 = vmov 0  ;;  %v426_v39 = vld [vmem:[%s3268_s1 + $0x48] sm:$0xff] }
 0x34e   : > { %2246 = vmatmul.msk.f32.gmra.mxu2 %vm698_vm6, %v848_v40  ;;  %v3315_v0 = vsel %vm2776_vm5, 4294967295, %v3314_v0 }
 0x354   : > { %v844_v43 = vpop.f32.mrf.mxu1 }
 0x355   : > { %v849_v44 = vsel %vm2742_vm12, %v844_v43, %v781_v4  ;;  %v852_v4 = vand.u32 4, %v2556_v25 }
 0x356   : > { %2247 = vmatmul.msk.f32.gmra.mxu2 %vm698_vm6, %v849_v44 }
 0x357   : > { %vm2784_vm13 = vcmp.ne.s32.totalorder %v852_v4, 0 }
 0x358   : > { %v3317_v5 = vsel %vm2784_vm13, 4294967295, %v3316_v5 }
 0x3c9   : > { %v906_v60 = vpop.f32.mrf.mxu2 }
 0x3ca   : > { %v915_v61 = vsel %vm2767_vm7, %v906_v60, %v847_v23  ;;  %v2831_v23 = vsel %vm3290_vm10, 1.0, %v2428_v31 }
 0x3cb   : > { %2257 = vmatmul.msk.f32.vlgmr.msrb.gmra.mxu3 %vm698_vm6, %v915_v61  ;;  %2269 = vmatmul.msk.f32.vlgmr.msra.gmra.mxu1 %vm698_vm6, %v915_v61 }
 0x3d1   : > { %v909_v1 = vpop.f32.mrf.mxu2 }
 0x3d2   : > { %v916_v3 = vsel %vm2776_vm5, %v909_v1, %v848_v40  ;;  %v427_v40 = vld [vmem:[%s3268_s1 + $0x50] sm:$0xff] }
 0x3d3   : > { %2258 = vmatmul.msk.f32.gmra.mxu3 %vm698_vm6, %v916_v3 }
 0x3d9   : > { %v912_v6 = vpop.f32.mrf.mxu2 }
 0x3da   : > { %v917_v7 = vsel %vm2784_vm13, %v912_v6, %v849_v44  ;;  %vm3324_vm13 = vcmask 1040384  }
 0x3db   : > { %2259 = vmatmul.msk.f32.gmra.mxu3 %vm698_vm6, %v917_v7 }
 0x3e3   : > { %2279 = vmatmul.msk.f32.vlgmr.msra.gmra.mxu3 %vm3289_vm4, %v2588_v34  ;;  %v459_v34 = vpop.permute.xlu1 %458 }
 0x3e4   : > { %v574_v13 = vadd.f32 %v573_v49, %v459_v34 }
 0x3e6   : > { %1298 = vxpose.xlu2.b32.end [2/2] (short) (narrow) %v574_v13, 24 }
 0x3eb   : > { %2280 = vmatmul.msk.f32.gmra.mxu3 %vm3289_vm4, %v2592_v35  ;;  %v423_v35 = vld [vmem:[%s3268_s1 + $0x30] sm:$0xff] }
 0x3ec   : > { %2197 = vmatmul.msk.f32.gmra.mxu0 %vm3296_vm0, %v423_v35 }
 0x3f3   : > { %2281 = vmatmul.msk.f32.gmra.mxu3 %vm3289_vm4, %v2596_v36  ;;  %vm3291_vm4 = vcmp.le.s32.totalorder %v2561_v27, %v2559_v26 }
 0x3f4   : > { %2198 = vmatmul.msk.f32.gmra.mxu0 %vm3296_vm0, %v424_v14 }
 0x3fc   : > { %2199 = vmatmul.msk.f32.gmra.mxu0 %vm3296_vm0, %v425_v22 }
 0x404   : > { %2200 = vmatmul.msk.f32.gmra.mxu0 %vm3296_vm0, %v426_v39 }
 0x40c   : > { %2201 = vmatmul.msk.f32.gmra.mxu0 %vm3296_vm0, %v427_v40 }
 0x448   : > { %v1040_v9 = vpop.f32.mrf.mxu1 }
 0x44e   : > { %v973_v10 = vpop.f32.mrf.mxu3 }
 0x456   : > { %v976_v11 = vpop.f32.mrf.mxu3 }
 0x457   : > { %2270 = vmatmul.msk.f32.gmra.mxu1 %vm698_vm6, %v976_v11 }
 0x45e   : > { %v979_v12 = vpop.f32.mrf.mxu3 }
 0x45f   : > { %2271 = vmatmul.msk.f32.gmra.mxu1 %vm698_vm6, %v917_v7  ;;  %v2290_v12 = vld [vmem:[%s3270_s3 + $0x10] sm:$0xff] }
 0x466   : > { %v1125_v31 = vpop.f32.mrf.mxu3 }
 0x469   : > { %v2900_v13 = vpop.f32.mrf.mxu0 }
 0x46e   : > { %v1128_v54 = vpop.f32.mrf.mxu3 }
 0x476   : > { %v1131_v6 = vpop.f32.mrf.mxu3 }
 0x477   : > { %v2886_v10 = vpop.trf.xlu2 }
 0x47f   : > { %v2898_v34 = vpop.trf.xlu2 }
 0x487   : > { %v2912_v35 = vpop.trf.xlu2 }
 0x4d4   : > { %v1043_v36 = vpop.f32.mrf.mxu1 }
 0x4dc   : > { %v1046_v19 = vpop.f32.mrf.mxu1 }
 0x4dd   : > { %2275 = vmatpush.msk.msra.mxu2 %vm3288_vm1, %v1046_v19  ;;  %vm3294_vm1 = vcmp.le.s32.totalorder %v2561_v27, %v2553_v24 }
 0x4df   : > { %1087 = vmatpush.msra.mxu2 %v976_v11 }
 0x4e1   : > { %1088 = vmatpush.msra.mxu2 %v915_v61 }
 0x4e2   : > { %2276 = vmatmul.msk.f32.vlgmr.msra.gmra.mxu2 %vm698_vm6, %v2817_v20 }
 0x4ea   : > { %2277 = vmatmul.msk.f32.gmra.mxu2 %vm698_vm6, %v2831_v23 }
 0x4f2   : > { %2278 = vmatmul.msk.f32.gmra.mxu2 %vm698_vm6, %v2841_v30 }
 0x565   : > { %v1090_v41 = vpop.f32.mrf.mxu2 }
 0x566   : > { %v1102_v43 = vsel %vm3295_vm3, 0.0, %v1090_v41  ;;  %vm3321_vm3 = vcmp.eq.s32.totalorder %v2636_v50, %v2561_v27 }
 0x567   : > { %v1105_v44 = vsel %vm3294_vm1, %v915_v61, %v1102_v43  ;;  %v438_v61 = vld [vmem:[%s3269_s2 + $0x48] sm:$0xff]  ;;  %vm3320_vm1 = vcmp.eq.s32.totalorder %v2619_v45, %v2561_v27 }
 0x568   : > { %v1126_v47 = vadd.f32 %v1125_v31, %v1105_v44 }
 0x56a   : > { %v1134_v49 = vmul.f32 0.25, %v1126_v47 }
 0x56c   : > { %v1137_v51 = vsel %vm698_vm6, %v1134_v49, -inf }
 0x56d   : > { %v1093_v52 = vpop.f32.mrf.mxu2  ;;  %1138 = vmax.xlane.f32.xlu0 %v1137_v51  ;;  %v437_v51 = vld [vmem:[%s3269_s2 + $0x40] sm:$0xff] }
 0x56e   : > { %v1103_v53 = vsel %vm3290_vm10, 0.0, %v1093_v52  ;;  %vm3292_vm10 = vcmp.le.s32.totalorder %v2561_v27, %v2556_v25  ;;  %v436_v52 = vld [vmem:[%s3269_s2 + $0x38] sm:$0xff] }
 0x56f   : > { %v1106_v55 = vsel %vm3291_vm4, %v976_v11, %v1103_v53  ;;  %vm3297_vm4 = vcmask 131072   ;;  %v2291_v11 = vld [vmem:[%s3270_s3 + $0x18] sm:$0xff]  ;;  %v435_v53 = vld [vmem:[%s3269_s2 + $0x30] sm:$0xff] }
 0x570   : > { %v1129_v56 = vadd.f32 %v1128_v54, %v1106_v55  ;;  %1352 = vmatpush.msrb.mxu3 %v2291_v11 }
 0x572   : > { %v1135_v57 = vmul.f32 0.25, %v1129_v56  ;;  %1353 = vmatpush.msrb.mxu3 %v2290_v12 }
 0x574   : > { %v1140_v60 = vsel %vm698_vm6, %v1135_v57, -inf }
 0x575   : > { %1141 = vmax.xlane.f32.xlu2 %v1140_v60  ;;  %v1096_v1 = vpop.f32.mrf.mxu2 }
 0x576   : > { %v1104_v3 = vsel %vm3293_vm9, 0.0, %v1096_v1  ;;  %vm3319_vm9 = vcmask 1040384  }
 0x577   : > { %v1107_v4 = vsel %vm3292_vm10, %v1046_v19, %v1104_v3  ;;  %vm3318_vm10 = vcmask 130048   ;;  %2307 = vmatpush.msk.msra.mxu3 %vm3319_vm9, %v2622_v46  ;;  %v2914_v46 = vpop.f32.mrf.mxu0 }
 0x578   : > { %v1132_v7 = vadd.f32 %v1131_v6, %v1107_v4  ;;  %2292 = vmatmul.msk.f32.vlgmr.msrb.gmra.mxu3 %vm3318_vm10, %v2886_v10  ;;  %vm3322_vm0 = vmmov %vm3318_vm10 }
 0x579   : > { %2308 = vmatpush.msk.msra.mxu3 %vm3320_vm1, %v2429_v33  ;;  %vm3323_vm9 = vmmov %vm3322_vm0 }
 0x57a   : > { %v1136_v8 = vmul.f32 0.25, %v1132_v7 }
 0x57b   : > { %2309 = vmatpush.msk.msra.mxu3 %vm3321_vm3, %v2429_v33 }
 0x57c   : > { %v1144_v9 = vsel %vm3297_vm4, %v1136_v8, -inf }
 0x57f   : > { %v588_v22 = vpop.f32.mrf.mxu0 }
 0x580   : > { %2293 = vmatmul.msk.f32.gmra.mxu3 %vm3322_vm0, %v2898_v34 }
 0x581   : > { %488 = vperm.xlu0 %2370, %v438_v61  }
 0x587   : > { %v591_v43 = vpop.f32.mrf.mxu0 }
 0x588   : > { %2294 = vmatmul.msk.f32.gmra.mxu3 %vm3323_vm9, %v2912_v35 }
 0x58d   : > { %493 = vperm.xlu2 %2371, %v439_v63  }
 0x58f   : > { %v3034_v2 = vpop.f32.mrf.mxu0 }
 0x5ab   : > { %1145 = vmax.xlane.f32.xlu0 %v1144_v9 }
 0x5e0   : > { %v1139_v36 = vpop.xlane.xlu0 %1138 }
 0x5e1   : > { %v1147_v14 = vsub.f32 %v1134_v49, %v1139_v36 }
 0x5e3   : > { %v1150_v19 = vmul.f32 1.442695, %v1147_v14 }
 0x5e5   : > { %2378 = vpow2.f32 %v1150_v19 }
 0x5e8   : > { %v1142_v45 = vpop.xlane.xlu2 %1141 }
 0x5e9   : > { %v1148_v39 = vsub.f32 %v1135_v57, %v1142_v45 }
 0x5eb   : > { %v2379_v40 = vpop.eup %2378  ;;  %v1152_v50 = vmul.f32 1.442695, %v1148_v39 }
 0x5ec   : > { %v1156_v31 = vsel %vm698_vm6, %v2379_v40, 0.0 }
 0x5ed   : > { %2380 = vpow2.f32 %v1152_v50  ;;  %1157 = vadd.xlane.f32.xlu0 %v1156_v31 }
 0x5f3   : > { %v2919_v41 = vpop.eup %2380  ;;  %v489_v44 = vpop.permute.xlu0 %488 }
 0x5f4   : > { %v592_v47 = vadd.f32 %v591_v43, %v489_v44  ;;  %v1159_v49 = vsel %vm698_vm6, %v2919_v41, 0.0 }
 0x5f5   : > { %1160 = vadd.xlane.f32.xlu0 %v1159_v49 }
 0x5f6   : > { %2282 = vmatpush.xpose.msk.msrb.mxu1 %vm698_vm6, %v592_v47 }
 0x609   : > { %483 = vperm.xlu0 %2370, %v437_v51  }
 0x611   : > { %478 = vperm.xlu0 %2370, %v436_v52  }
 0x619   : > { %473 = vperm.xlu0 %2370, %v435_v53  }
 0x61e   : > { %v1146_v54 = vpop.xlane.xlu0 %1145 }
 0x61f   : > { %v1149_v55 = vsub.f32 %v1136_v8, %v1146_v54 }
 0x621   : > { %v1154_v56 = vmul.f32 1.442695, %v1149_v55 }
 0x623   : > { %2382 = vpow2.f32 %v1154_v56 }
 0x629   : > { %v2933_v57 = vpop.eup %2382 }
 0x62a   : > { %v1162_v60 = vsel %vm3297_vm4, %v2933_v57, 0.0 }
 0x62b   : > { %1163 = vadd.xlane.f32.xlu1 %v1162_v60 }
 0x660   : > { %v1158_v61 = vpop.xlane.xlu0 %1157 }
 0x661   : > { %2384 = vrcp.f32 %v1158_v61  ;;  %v1176_v12 = vand.u32 2147483648, %v1158_v61  ;;  %vm1170_vm1 = vweird.f32 %v1158_v61  ;;  %v1174_v36 = vand.u32 2147483647, %v1158_v61 }
 0x663   : > { %v1177_v45 = vor.u32 1.1754944e-38, %v1176_v12  ;;  %vm1175_vm10 = vcmp.eq.f32.partialorder %v1174_v36, 8.507059e+37  ;;  %v1251_v12 = vld [vmem:[%s3271_s4] sm:$0xff] }
 0x667   : > { %v2385_v63 = vpop.eup %2384 }
 0x668   : > { %v1161_v1 = vpop.xlane.xlu0 %1160  ;;  %v1166_v3 = vmul.f32 %v2385_v63, %v1158_v61  ;;  %vm1171_vm0 = vweird.f32 %v2385_v63 }
 0x669   : > { %2386 = vrcp.f32 %v1161_v1  ;;  %vm1172_vm3 = vmor %vm1170_vm1, %vm1171_vm0  ;;  %v1191_v44 = vand.u32 2147483648, %v1161_v1  ;;  %vm1185_vm4 = vweird.f32 %v1161_v1  ;;  %v1189_v49 = vand.u32 2147483647, %v1161_v1 }
 0x66a   : > { %v1167_v4 = vsub.f32 1.0, %v1166_v3  ;;  %vm3325_vm0 = vcmp.eq.s32.totalorder %v2567_v29, %v2561_v27 }
 0x66b   : > { %v1192_v52 = vor.u32 1.1754944e-38, %v1191_v44  ;;  %vm1190_vm1 = vcmp.eq.f32.partialorder %v1189_v49, 8.507059e+37 }
 0x66c   : > { %v1168_v7 = vmul.f32 %v2385_v63, %v1167_v4 }
 0x66e   : > { %v1169_v11 = vadd.f32 %v2385_v63, %v1168_v7 }
 0x66f   : > { %v2387_v6 = vpop.eup %2386 }
 0x670   : > { %v1181_v9 = vmul.f32 %v2387_v6, %v1161_v1  ;;  %v1173_v14 = vsel %vm1172_vm3, %v2385_v63, %v1169_v11  ;;  %vm1186_vm9 = vweird.f32 %v2387_v6  ;;  %vm3326_vm3 = vcmp.eq.s32.totalorder %v2601_v37, %v2561_v27  ;;  %v1252_v1 = vld [vmem:[%s3271_s4 + $0x8] sm:$0xff] }
 0x671   : > { %v1178_v50 = vsel %vm1175_vm10, %v1177_v45, %v1173_v14  ;;  %vm1187_vm5 = vmor %vm1185_vm4, %vm1186_vm9  ;;  %1276 = vmatpush.msrb.mxu2 %v1252_v1 }
 0x672   : > { %v1182_v8 = vsub.f32 1.0, %v1181_v9  ;;  %v1179_v47 = vmul.f32 %v2379_v40, %v1178_v50  ;;  %vm3327_vm4 = vmmov %vm3324_vm13  ;;  %v1355_v9 = vpop.f32.mrf.mxu3 }
 0x673   : > { %1277 = vmatpush.msrb.mxu2 %v1251_v12 }
 0x674   : > { %v1183_v19 = vmul.f32 %v2387_v6, %v1182_v8 }
 0x676   : > { %v1184_v43 = vadd.f32 %v2387_v6, %v1183_v19 }
 0x678   : > { %v1188_v51 = vsel %vm1187_vm5, %v2387_v6, %v1184_v43  ;;  %vm3328_vm5 = vcmp.eq.s32.totalorder %v2697_v16, %v2561_v27 }
 0x679   : > { %v1193_v54 = vsel %vm1190_vm1, %v1192_v52, %v1188_v51 }
 0x67a   : > { %v1194_v40 = vmul.f32 %v2919_v41, %v1193_v54  ;;  %v1358_v11 = vpop.f32.mrf.mxu3 }
 0x67b   : > { %v484_v39 = vpop.permute.xlu0 %483 }
 0x67c   : > { %v589_v31 = vadd.f32 %v588_v22, %v484_v39 }
 0x67e   : > { %2283 = vmatpush.xpose.msk.msrb.mxu1 %vm698_vm6, %v589_v31 }
 0x681   : > { %2284 = vmatmul.msk.f32.vlgmr.msrb.gmra.mxu1 %vm698_vm6, %v1179_v47 }
 0x682   : > { %2295 = vmatpush.msk.msra.mxu1 %vm3324_vm13, %v2572_v32  ;;  %vm3329_vm13 = vcmp.eq.s32.totalorder %v2559_v26, %v2561_v27  ;;  %v1361_v8 = vpop.f32.mrf.mxu3 }
 0x683   : > { %v479_v22 = vpop.permute.xlu0 %478 }
 0x684   : > { %2296 = vmatpush.msk.msra.mxu1 %vm3325_vm0, %v2429_v33  ;;  %v586_v53 = vadd.f32 %v2914_v46, %v479_v22 }
 0x686   : > { %2297 = vmatpush.msk.msra.mxu1 %vm3326_vm3, %v2429_v33  ;;  %1638 = vmatpush.msra.mxu0 %v586_v53  ;;  %vm3330_vm3 = vmmov %vm3327_vm4 }
 0x687   : > { %2301 = vmatpush.msk.msra.mxu2 %vm3330_vm3, %v2572_v32 }
 0x688   : > { %2319 = vmatpush.msk.msrb.mxu1 %vm3327_vm4, %v2700_v17  ;;  %vm3331_vm4 = vcmp.eq.s32.totalorder %v2567_v29, %v2561_v27 }
 0x689   : > { %2285 = vmatmul.msk.f32.gmra.mxu1 %vm698_vm6, %v1194_v40  ;;  %2302 = vmatpush.msk.msra.mxu2 %vm3331_vm4, %v2429_v33  ;;  %vm3339_vm4 = vcmask 261120  }
 0x68a   : > { %2320 = vmatpush.msk.msrb.mxu1 %vm3328_vm5, %v2429_v33  ;;  %vm3332_vm5 = vcmp.eq.s32.totalorder %v2601_v37, %v2561_v27 }
 0x68b   : > { %v474_v46 = vpop.permute.xlu0 %473  ;;  %2303 = vmatpush.msk.msra.mxu2 %vm3332_vm5, %v2429_v33  ;;  %vm3347_vm5 = vcmp.le.s32.totalorder %v2561_v27, %v2553_v24 }
 0x68c   : > { %2321 = vmatpush.msk.msrb.mxu1 %vm3329_vm13, %v2429_v33  ;;  %v583_v55 = vadd.f32 %v2900_v13, %v474_v46  ;;  %vm3333_vm13 = vcmask 130048  }
 0x68e   : > { %1639 = vmatpush.msra.mxu0 %v583_v55 }
 0x69e   : > { %v1164_v17 = vpop.xlane.xlu1 %1163 }
 0x69f   : > { %2388 = vrcp.f32 %v1164_v17  ;;  %v1206_v61 = vand.u32 2147483648, %v1164_v17  ;;  %v1204_v16 = vand.u32 2147483647, %v1164_v17  ;;  %vm1200_vm9 = vweird.f32 %v1164_v17 }
 0x6a1   : > { %v1207_v4 = vor.u32 1.1754944e-38, %v1206_v61  ;;  %vm1205_vm1 = vcmp.eq.f32.partialorder %v1204_v16, 8.507059e+37 }
 0x6a5   : > { %v2389_v56 = vpop.eup %2388 }
 0x6a6   : > { %v1196_v41 = vmul.f32 %v2389_v56, %v1164_v17  ;;  %vm1201_vm10 = vweird.f32 %v2389_v56 }
 0x6a7   : > { %vm1202_vm0 = vmor %vm1200_vm9, %vm1201_vm10  ;;  %vm3335_vm9 = vcmp.eq.s32.totalorder %v2693_v15, %v2561_v27 }
 0x6a8   : > { %v1197_v60 = vsub.f32 1.0, %v1196_v41  ;;  %vm3334_vm10 = vmmov %vm3330_vm3 }
 0x6aa   : > { %v1198_v63 = vmul.f32 %v2389_v56, %v1197_v60 }
 0x6ac   : > { %v1199_v3 = vadd.f32 %v2389_v56, %v1198_v63 }
 0x6ae   : > { %v1203_v13 = vsel %vm1202_vm0, %v2389_v56, %v1199_v3  ;;  %vm3336_vm0 = vcmp.eq.s32.totalorder %v2752_v48, %v2561_v27 }
 0x6af   : > { %v1208_v6 = vsel %vm1205_vm1, %v1207_v4, %v1203_v13  ;;  %vm3337_vm1 = vmmov %vm3333_vm13 }
 0x6b0   : > { %v1209_v7 = vmul.f32 %v2933_v57, %v1208_v6  ;;  %vm3338_vm3 = vmmov %vm3337_vm1 }
 0x6b2   : > { %2286 = vmatmul.msk.f32.gmra.mxu1 %vm698_vm6, %v1209_v7 }
 0x6ba   : > { %2298 = vmatmul.msk.f32.vlgmr.msra.gmra.mxu1 %vm698_vm6, %v1355_v9 }
 0x6c2   : > { %2299 = vmatmul.msk.f32.gmra.mxu1 %vm698_vm6, %v1358_v11 }
 0x6ca   : > { %2300 = vmatmul.msk.f32.gmra.mxu1 %vm698_vm6, %v1361_v8 }
 0x6fe   : > { %v1242_v57 = vpop.f32.mrf.mxu1 }
 0x6ff   : > { %2287 = vmatmul.msk.f32.vlgmr.msrb.gmra.mxu2 %vm3333_vm13, %v1242_v57  ;;  %vm3348_vm13 = vcmp.eq.s32.totalorder %v2561_v27, %v2567_v29 }
 0x700   : > { %2325 = vmatpush.msk.msrb.mxu2 %vm3334_vm10, %v2703_v18 }
 0x702   : > { %2326 = vmatpush.msk.msrb.mxu2 %vm3335_vm9, %v2429_v33  ;;  %vm3350_vm9 = vcmp.eq.s32.totalorder %v2561_v27, %v2564_v28 }
 0x704   : > { %2327 = vmatpush.msk.msrb.mxu2 %vm3336_vm0, %v2429_v33  ;;  %v428_v33 = vld [vmem:[%s3268_s1 + $0x58] sm:$0xff]  ;;  %vm3351_vm0 = vcmp.le.s32.totalorder %v2561_v27, %v2556_v25 }
 0x705   : > { %2202 = vmatmul.msk.f32.gmra.mxu0 %vm3339_vm4, %v428_v33 }
 0x706   : > { %v1245_v32 = vpop.f32.mrf.mxu1 }
 0x707   : > { %2288 = vmatmul.msk.f32.gmra.mxu2 %vm3337_vm1, %v1245_v32 }
 0x72f   : > { %v1248_v36 = vpop.f32.mrf.mxu1 }
 0x730   : > { %2289 = vmatmul.msk.f32.gmra.mxu2 %vm3338_vm3, %v1248_v36 }
 0x737   : > { %v1390_v14 = vpop.f32.mrf.mxu1 }
 0x738   : > { %2304 = vmatmul.msk.f32.vlgmr.msra.gmra.mxu2 %vm698_vm6, %v1390_v14 }
 0x73f   : > { %v1393_v18 = vpop.f32.mrf.mxu1 }
 0x740   : > { %2305 = vmatmul.msk.f32.gmra.mxu2 %vm698_vm6, %v1393_v18 }
 0x747   : > { %v1396_v19 = vpop.f32.mrf.mxu1 }
 0x748   : > { %2306 = vmatmul.msk.f32.gmra.mxu2 %vm698_vm6, %v1396_v19 }
 0x782   : > { %v3000_v15 = vpop.f32.mrf.mxu2  ;;  %v3036_v21 = vpop.f32.mrf.mxu0 }
 0x78a   : > { %v3002_v45 = vpop.f32.mrf.mxu2 }
 0x7b3   : > { %v3008_v48 = vpop.f32.mrf.mxu2 }
 0x7bb   : > { %v1425_v39 = vpop.f32.mrf.mxu2 }
 0x7bc   : > { %v1434_v50 = vsel %vm2654_vm14, %v1425_v39, %v1390_v14  ;;  %vm3340_vm14 = vmmov %vm3337_vm1 }
 0x7bd   : > { %2310 = vmatmul.msk.f32.vlgmr.msra.gmra.mxu3 %vm698_vm6, %v1434_v50 }
 0x7c3   : > { %v1428_v31 = vpop.f32.mrf.mxu2 }
 0x7c4   : > { %v1435_v43 = vsel %vm2662_vm15, %v1428_v31, %v1393_v18  ;;  %vm3341_vm15 = vmmov %vm3337_vm1 }
 0x7c5   : > { %2311 = vmatmul.msk.f32.gmra.mxu3 %vm698_vm6, %v1435_v43 }
 0x7cb   : > { %v1431_v44 = vpop.f32.mrf.mxu2 }
 0x7cc   : > { %v1436_v47 = vsel %vm2670_vm2, %v1431_v44, %v1396_v19  ;;  %vm3342_vm2 = vmmov %vm3337_vm1  ;;  %vm3352_vm1 = vcmask 131072  }
 0x7cd   : > { %2312 = vmatmul.msk.f32.gmra.mxu3 %vm698_vm6, %v1436_v47  ;;  %vm3353_vm3 = vmmov %vm3352_vm1 }
 0x840   : > { %v1463_v49 = vpop.f32.mrf.mxu3 }
 0x841   : > { %v1472_v51 = vsel %vm2726_vm8, %v1463_v49, %v1434_v50  ;;  %vm3343_vm8 = vnez %v3315_v0  ;;  %v440_v50 = vld [vmem:[%s3269_s2 + $0x58] sm:$0xff] }
 0x842   : > { %2316 = vmatmul.msk.f32.vlgmr.msrb.gmra.mxu0 %vm698_vm6, %v1472_v51 }
 0x848   : > { %v1466_v58 = vpop.f32.mrf.mxu3 }
 0x849   : > { %v1473_v52 = vsel %vm2734_vm11, %v1466_v58, %v1435_v43  ;;  %vm3344_vm11 = vnez %v3317_v5 }
 0x84a   : > { %2317 = vmatmul.msk.f32.gmra.mxu0 %vm698_vm6, %v1473_v52 }
 0x850   : > { %v1469_v62 = vpop.f32.mrf.mxu3 }
 0x851   : > { %v1474_v22 = vsel %vm2742_vm12, %v1469_v62, %v1436_v47  ;;  %vm3345_vm12 = vmmov %vm3334_vm10  ;;  %vm3349_vm10 = vcmp.le.s32.totalorder %v2561_v27, %v2559_v26 }
 0x852   : > { %2318 = vmatmul.msk.f32.gmra.mxu0 %vm698_vm6, %v1474_v22 }
 0x85a   : > { %2335 = vmatmul.msk.f32.vlgmr.msra.gmra.mxu0 %vm3340_vm14, %v2886_v10 }
 0x862   : > { %2336 = vmatmul.msk.f32.gmra.mxu0 %vm3341_vm15, %v2898_v34 }
 0x86a   : > { %2337 = vmatmul.msk.f32.gmra.mxu0 %vm3342_vm2, %v2912_v35 }
 0x8bf   : > { %v1501_v38 = vpop.f32.mrf.mxu0 }
 0x8c0   : > { %v1510_v42 = vsel %vm2767_vm7, %v1501_v38, %v1472_v51  ;;  %vm3346_vm7 = vcmp.eq.s32.totalorder %v2561_v27, %v2601_v37 }
 0x8c1   : > { %2322 = vmatmul.msk.f32.vlgmr.msrb.gmra.mxu1 %vm698_vm6, %v1510_v42  ;;  %2328 = vmatmul.msk.f32.vlgmr.msrb.gmra.mxu2 %vm698_vm6, %v1510_v42 }
 0x8c7   : > { %v1504_v53 = vpop.f32.mrf.mxu0 }
 0x8c8   : > { %v1511_v10 = vsel %vm3343_vm8, %v1504_v53, %v1473_v52 }
 0x8c9   : > { %2323 = vmatmul.msk.f32.gmra.mxu1 %vm698_vm6, %v1511_v10 }
 0x8cf   : > { %v1507_v34 = vpop.f32.mrf.mxu0 }
 0x8d0   : > { %v1512_v35 = vsel %vm3344_vm11, %v1507_v34, %v1474_v22  ;;  %v1767_v22 = vld [vmem:[%s3271_s4 + $0x18] sm:$0xff] }
 0x8d1   : > { %2324 = vmatmul.msk.f32.gmra.mxu1 %vm698_vm6, %v1512_v35  ;;  %1791 = vmatpush.msra.mxu2 %v1767_v22 }
 0x8d7   : > { %v1641_v0 = vpop.f32.mrf.mxu0 }
 0x8df   : > { %v1644_v63 = vpop.f32.mrf.mxu0 }
 0x8e7   : > { %v1647_v13 = vpop.f32.mrf.mxu0 }
 0x93e   : > { %v1539_v54 = vpop.f32.mrf.mxu1 }
 0x944   : > { %v1577_v40 = vpop.f32.mrf.mxu2 }
 0x945   : > { %v494_v40 = vpop.permute.xlu2 %493 }
 0x946   : > { %v1542_v59 = vpop.f32.mrf.mxu1 }
 0x947   : > { %2329 = vmatmul.msk.f32.gmra.mxu2 %vm698_vm6, %v1542_v59 }
 0x94e   : > { %v1545_v46 = vpop.f32.mrf.mxu1 }
 0x94f   : > { %2330 = vmatmul.msk.f32.gmra.mxu2 %vm698_vm6, %v1512_v35 }
 0x9ca   : > { %v1580_v55 = vpop.f32.mrf.mxu2 }
 0x9d2   : > { %v1583_v17 = vpop.f32.mrf.mxu2 }
 0x9d3   : > { %2331 = vmatpush.msk.msrb.mxu3 %vm3345_vm12, %v1583_v17 }
 0x9d5   : > { %1606 = vmatpush.msrb.mxu3 %v1542_v59 }
 0x9d7   : > { %1607 = vmatpush.msrb.mxu3 %v1510_v42 }
 0x9d8   : > { %2332 = vmatmul.msk.f32.vlgmr.msrb.gmra.mxu3 %vm698_vm6, %v2817_v20 }
 0x9e0   : > { %2333 = vmatmul.msk.f32.gmra.mxu3 %vm698_vm6, %v2831_v23 }
 0x9e8   : > { %2334 = vmatmul.msk.f32.gmra.mxu3 %vm698_vm6, %v2841_v30 }
 0xa5b   : > { %v1609_v5 = vpop.f32.mrf.mxu3 }
 0xa5c   : > { %v1618_v56 = vsel %vm3346_vm7, 0.0, %v1609_v5 }
 0xa5d   : > { %v1621_v41 = vsel %vm3347_vm5, %v1510_v42, %v1618_v56 }
 0xa5e   : > { %v1642_v60 = vadd.f32 %v1641_v0, %v1621_v41  ;;  %v595_v0 = vadd.f32 %v3034_v2, %v494_v40 }
 0xa60   : > { %v1650_v61 = vmul.f32 0.25, %v1642_v60 }
 0xa62   : > { %v1653_v20 = vsel %vm698_vm6, %v1650_v61, -inf }
 0xa63   : > { %1654 = vmax.xlane.f32.xlu0 %v1653_v20  ;;  %v1612_v23 = vpop.f32.mrf.mxu3 }
 0xa64   : > { %v1619_v30 = vsel %vm3348_vm13, 0.0, %v1612_v23 }
 0xa65   : > { %v1622_v37 = vsel %vm3349_vm10, %v1542_v59, %v1619_v30 }
 0xa66   : > { %v1645_v16 = vadd.f32 %v1644_v63, %v1622_v37 }
 0xa68   : > { %v1651_v1 = vmul.f32 0.25, %v1645_v16 }
 0xa6a   : > { %v1656_v24 = vsel %vm698_vm6, %v1651_v1, -inf }
 0xa6b   : > { %1657 = vmax.xlane.f32.xlu1 %v1656_v24  ;;  %v1615_v3 = vpop.f32.mrf.mxu3 }
 0xa6c   : > { %v1620_v4 = vsel %vm3350_vm9, 0.0, %v1615_v3 }
 0xa6d   : > { %v1623_v29 = vsel %vm3351_vm0, %v1583_v17, %v1620_v4  ;;  %vm3354_vm0 = vcmask 130048  }
 0xa6e   : > { %v1648_v6 = vadd.f32 %v1647_v13, %v1623_v29  ;;  %v1766_v29 = vld [vmem:[%s3271_s4 + $0x10] sm:$0xff] }
 0xa6f   : > { %1792 = vmatpush.msra.mxu2 %v1766_v29 }
 0xa70   : > { %v1652_v7 = vmul.f32 0.25, %v1648_v6 }
 0xa72   : > { %v1659_v26 = vsel %vm3352_vm1, %v1652_v7, -inf  ;;  %vm3355_vm1 = vmmov %vm3354_vm0 }
 0xa73   : > { %1660 = vmax.xlane.f32.xlu1 %v1659_v26 }
 0xad6   : > { %v1655_v9 = vpop.xlane.xlu0 %1654 }
 0xad7   : > { %v1662_v11 = vsub.f32 %v1650_v61, %v1655_v9  ;;  %v2373_v9 = vld [vmem:[%s3272_s5] ss:$0 sm:$0xff] }
 0xad9   : > { %v1665_v8 = vmul.f32 1.442695, %v1662_v11  ;;  %v1291_v11 = vadd.f32 %v2373_v9, %v3000_v15 }
 0xadb   : > { %2390 = vpow2.f32 %v1665_v8 }
 0xade   : > { %v1658_v12 = vpop.xlane.xlu1 %1657 }
 0xadf   : > { %v1663_v57 = vsub.f32 %v1651_v1, %v1658_v12 }
 0xae1   : > { %v2391_v32 = vpop.eup %2390  ;;  %v1667_v36 = vmul.f32 1.442695, %v1663_v57  ;;  %v2416_v57 = vld [vmem:[%s2518_s30] sm:$0xff] }
 0xae2   : > { %v1671_v28 = vsel %vm698_vm6, %v2391_v32, 0.0 }
 0xae3   : > { %2392 = vpow2.f32 %v1667_v36  ;;  %1672 = vadd.xlane.f32.xlu1 %v1671_v28  ;;  %v1292_v28 = vadd.f32 %v2373_v9, %v3002_v45 }
 0xae6   : > { %v1661_v14 = vpop.xlane.xlu1 %1660 }
 0xae7   : > { %v1664_v25 = vsub.f32 %v1652_v7, %v1661_v14 }
 0xae9   : > { %v2393_v27 = vpop.eup %2392  ;;  %v1669_v18 = vmul.f32 1.442695, %v1664_v25 }
 0xaea   : > { %v1674_v19 = vsel %vm698_vm6, %v2393_v27, 0.0 }
 0xaeb   : > { %2394 = vpow2.f32 %v1669_v18  ;;  %1675 = vadd.xlane.f32.xlu0 %v1674_v19  ;;  %v1293_v19 = vadd.f32 %v2373_v9, %v3008_v48 }
 0xaf1   : > { %v3080_v33 = vpop.eup %2394 }
 0xaf2   : > { %v1677_v39 = vsel %vm3353_vm3, %v3080_v33, 0.0  ;;  %vm3356_vm3 = vmmov %vm3354_vm0 }
 0xaf3   : > { %1678 = vadd.xlane.f32.xlu0 %v1677_v39 }
 0xafc   : > { %498 = vperm.xlu1 %2372, %v440_v50   ;;  %v2418_v50 = vld [vmem:[%s2518_s30 + $0x10] sm:$0x1] }
 0xb56   : > { %v1673_v31 = vpop.xlane.xlu1 %1672 }
 0xb57   : > { %2396 = vrcp.f32 %v1673_v31  ;;  %v1691_v10 = vand.u32 2147483648, %v1673_v31  ;;  %vm1685_vm14 = vweird.f32 %v1673_v31  ;;  %v1689_v34 = vand.u32 2147483647, %v1673_v31 }
 0xb59   : > { %v1692_v17 = vor.u32 1.1754944e-38, %v1691_v10  ;;  %vm1690_vm2 = vcmp.eq.f32.partialorder %v1689_v34, 8.507059e+37 }
 0xb5d   : > { %v2397_v43 = vpop.eup %2396 }
 0xb5e   : > { %v1676_v44 = vpop.xlane.xlu0 %1675  ;;  %v1681_v47 = vmul.f32 %v2397_v43, %v1673_v31  ;;  %vm1686_vm4 = vweird.f32 %v2397_v43 }
 0xb5f   : > { %2398 = vrcp.f32 %v1676_v44  ;;  %vm1687_vm15 = vmor %vm1685_vm14, %vm1686_vm4  ;;  %v1706_v60 = vand.u32 2147483648, %v1676_v44  ;;  %vm1700_vm11 = vweird.f32 %v1676_v44  ;;  %vm1815_vm14 = vcmask 253952  }
 0xb60   : > { %v1682_v49 = vsub.f32 1.0, %v1681_v47 }
 0xb61   : > { %v1707_v23 = vor.u32 1.1754944e-38, %v1706_v60 }
 0xb62   : > { %v1683_v52 = vmul.f32 %v2397_v43, %v1682_v49 }
 0xb64   : > { %v1684_v38 = vadd.f32 %v2397_v43, %v1683_v52 }
 0xb65   : > { %v2399_v51 = vpop.eup %2398 }
 0xb66   : > { %v1679_v58 = vpop.xlane.xlu0 %1678  ;;  %v1696_v62 = vmul.f32 %v2399_v51, %v1676_v44  ;;  %v1688_v59 = vsel %vm1687_vm15, %v2397_v43, %v1684_v38  ;;  %vm1701_vm8 = vweird.f32 %v2399_v51  ;;  %v2430_v43 = vmov 32.0  }
 0xb67   : > { %2400 = vrcp.f32 %v1679_v58  ;;  %v1693_v5 = vsel %vm1690_vm2, %v1692_v17, %v1688_v59  ;;  %vm1702_vm12 = vmor %vm1700_vm11, %vm1701_vm8  ;;  %v1721_v2 = vand.u32 2147483648, %v1679_v58  ;;  %vm1715_vm13 = vweird.f32 %v1679_v58 }
 0xb68   : > { %v1697_v42 = vsub.f32 1.0, %v1696_v62  ;;  %v1694_v61 = vmul.f32 %v2391_v32, %v1693_v5  ;;  %v1719_v1 = vand.u32 2147483647, %v1679_v58  ;;  %2402 = vrcp.f32 %v2430_v43  ;;  %v1899_v5 = vld [vmem:[%s3275_s8 + $0x10] sm:$0xff] }
 0xb69   : > { %v1722_v3 = vor.u32 1.1754944e-38, %v1721_v2 }
 0xb6a   : > { %v1698_v46 = vmul.f32 %v2399_v51, %v1697_v42  ;;  %vm1720_vm9 = vcmp.eq.f32.partialorder %v1719_v1, 8.507059e+37 }
 0xb6c   : > { %v1699_v41 = vadd.f32 %v2399_v51, %v1698_v46 }
 0xb6d   : > { %v2401_v53 = vpop.eup %2400 }
 0xb6e   : > { %v499_v35 = vpop.permute.xlu1 %498  ;;  %v1711_v55 = vmul.f32 %v2401_v53, %v1679_v58  ;;  %v1703_v63 = vsel %vm1702_vm12, %v2399_v51, %v1699_v41  ;;  %vm1716_vm5 = vweird.f32 %v2401_v53  ;;  %v1897_v41 = vld [vmem:[%s3275_s8] sm:$0xff] }
 0xb6f   : > { %v598_v54 = vadd.f32 %v3036_v21, %v499_v35  ;;  %v1704_v21 = vand.u32 2147483647, %v1676_v44  ;;  %vm1717_vm10 = vmor %vm1715_vm13, %vm1716_vm5  ;;  %v2403_v44 = vpop.eup %2402 }
 0xb70   : > { %v1712_v56 = vsub.f32 1.0, %v1711_v55  ;;  %v1820_v47 = vmul.f32 32.0, %v2403_v44  ;;  %vm1824_vm15 = vweird.f32 %v2403_v44 }
 0xb71   : > { %2338 = vmatpush.xpose.msk.msra.mxu1 %vm698_vm6, %v598_v54  ;;  %vm1705_vm7 = vcmp.eq.f32.partialorder %v1704_v21, 8.507059e+37 }
 0xb72   : > { %v1713_v20 = vmul.f32 %v2401_v53, %v1712_v56  ;;  %v1708_v30 = vsel %vm1705_vm7, %v1707_v23, %v1703_v63  ;;  %v1821_v49 = vsub.f32 1.0, %v1820_v47  ;;  %v1898_v56 = vld [vmem:[%s3275_s8 + $0x8] sm:$0xff] }
 0xb73   : > { %v1709_v16 = vmul.f32 %v2393_v27, %v1708_v30  ;;  %v2417_v27 = vld [vmem:[%s2518_s30 + $0x8] sm:$0xff] }
 0xb74   : > { %v1714_v37 = vadd.f32 %v2401_v53, %v1713_v20  ;;  %v1822_v51 = vmul.f32 %v2403_v44, %v1821_v49 }
 0xb75   : > { %2339 = vmatpush.xpose.msk.msra.mxu1 %vm698_vm6, %v595_v0  ;;  %v1900_v0 = vld [vmem:[%s3275_s8 + $0x18] sm:$0xff] }
 0xb76   : > { %v1718_v24 = vsel %vm1717_vm10, %v2401_v53, %v1714_v37  ;;  %v1823_v58 = vadd.f32 %v2403_v44, %v1822_v51  ;;  %1926 = vmatpush.msra.mxu3 %v1900_v0 }
 0xb77   : > { %v1723_v4 = vsel %vm1720_vm9, %v1722_v3, %v1718_v24 }
 0xb78   : > { %2340 = vmatmul.msk.f32.vlgmr.msra.gmra.mxu1 %vm698_vm6, %v1694_v61  ;;  %v1724_v13 = vmul.f32 %v3080_v33, %v1723_v4  ;;  %v1825_v52 = vsel %vm1824_vm15, %v2403_v44, %v1823_v58  ;;  %1927 = vmatpush.msra.mxu3 %v1899_v5  ;;  %v2078_v5 = vld [vmem:[%s3277_s10 + $0x30] sm:$0xff] }
 0xb7a   : > { %1928 = vmatpush.msra.mxu3 %v1898_v56 }
 0xb7c   : > { %1929 = vmatpush.msra.mxu3 %v1897_v41 }
 0xb80   : > { %2341 = vmatmul.msk.f32.gmra.mxu1 %vm698_vm6, %v1709_v16 }
 0xb88   : > { %2342 = vmatmul.msk.f32.gmra.mxu1 %vm698_vm6, %v1724_v13  ;;  %vm3357_vm6 = vcmask 261120  }
 0xb89   : > { %vm3358_vm4 = vmmov %vm3357_vm6 }
 0xb8a   : > { %vm3359_vm2 = vmmov %vm3358_vm4 }
 0xb8b   : > { %vm3360_vm8 = vmmov %vm3359_vm2 }
 0xb8c   : > { %vm3361_vm9 = vmmov %vm3359_vm2 }
 0xbf5   : > { %v1757_v6 = vpop.f32.mrf.mxu1 }
 0xbf6   : > { %2343 = vmatmul.msk.f32.vlgmr.msra.gmra.mxu2 %vm3354_vm0, %v1757_v6 }
 0xbfd   : > { %v1760_v7 = vpop.f32.mrf.mxu1 }
 0xbfe   : > { %2344 = vmatmul.msk.f32.gmra.mxu2 %vm3355_vm1, %v1760_v7  ;;  %v2374_v7 = vld [vmem:[%s3273_s6] ss:$0 sm:$0xff] }
 0xc05   : > { %v1763_v26 = vpop.f32.mrf.mxu1 }
 0xc06   : > { %2345 = vmatmul.msk.f32.gmra.mxu2 %vm3356_vm3, %v1763_v26 }
 0xc79   : > { %v1794_v8 = vpop.f32.mrf.mxu2 }
 0xc7a   : > { %v1803_v12 = vadd.f32 %v1794_v8, %v1291_v11  ;;  %v2375_v8 = vld [vmem:[%s3274_s7] ss:$0 sm:$0xff] }
 0xc7c   : > { %v3109_v32 = vadd.f32 %v2416_v57, %v1803_v12 }
 0xc7e   : > { %v1809_v36 = vsel %vm3357_vm6, %v3109_v32, 0.0  ;;  %vm3362_vm6 = vmmov %vm3359_vm2 }
 0xc7f   : > { %1810 = vadd.xlane.f32.xlu0 %v1809_v36 }
 0xc81   : > { %v1797_v14 = vpop.f32.mrf.mxu2 }
 0xc82   : > { %v1804_v25 = vadd.f32 %v1797_v14, %v1292_v28 }
 0xc84   : > { %v3115_v18 = vadd.f32 %v2417_v27, %v1804_v25 }
 0xc86   : > { %v1812_v15 = vsel %vm3358_vm4, %v3115_v18, 0.0  ;;  %vm3363_vm4 = vmmov %vm3359_vm2 }
 0xc87   : > { %1813 = vadd.xlane.f32.xlu0 %v1812_v15 }
 0xc89   : > { %v1800_v33 = vpop.f32.mrf.mxu2 }
 0xc8a   : > { %v1805_v39 = vadd.f32 %v1800_v33, %v1293_v19 }
 0xc8c   : > { %v3121_v31 = vadd.f32 %v2418_v50, %v1805_v39 }
 0xc8e   : > { %v1816_v45 = vsel %vm1815_vm14, %v3121_v31, 0.0 }
 0xc8f   : > { %1817 = vadd.xlane.f32.xlu1 %v1816_v45 }
 0xcf2   : > { %v1811_v48 = vpop.xlane.xlu0 %1810 }
 0xcf3   : > { %v1826_v62 = vmul.f32 %v1825_v52, %v1811_v48 }
 0xcf5   : > { %v1829_v22 = vsub.f32 %v3109_v32, %v1826_v62 }
 0xcf7   : > { %v1832_v38 = vmul.f32 %v1829_v22, %v1829_v22 }
 0xcf9   : > { %v1835_v42 = vsel %vm3359_vm2, %v1832_v38, 0.0 }
 0xcfa   : > { %1836 = vadd.xlane.f32.xlu2 %v1835_v42  ;;  %v1814_v53 = vpop.xlane.xlu0 %1813 }
 0xcfb   : > { %v1827_v10 = vmul.f32 %v1825_v52, %v1814_v53 }
 0xcfd   : > { %v1830_v34 = vsub.f32 %v3115_v18, %v1827_v10 }
 0xcff   : > { %v1833_v35 = vmul.f32 %v1830_v34, %v1830_v34 }
 0xd01   : > { %v1838_v54 = vsel %vm3360_vm8, %v1833_v35, 0.0 }
 0xd02   : > { %1839 = vadd.xlane.f32.xlu0 %v1838_v54  ;;  %v1818_v40 = vpop.xlane.xlu1 %1817 }
 0xd03   : > { %v1828_v59 = vmul.f32 %v1825_v52, %v1818_v40 }
 0xd05   : > { %v3130_v46 = vsub.f32 %v3121_v31, %v1828_v59 }
 0xd07   : > { %v1834_v55 = vmul.f32 %v3130_v46, %v3130_v46 }
 0xd09   : > { %v1841_v17 = vsel %vm1815_vm14, %v1834_v55, 0.0 }
 0xd0a   : > { %1842 = vadd.xlane.f32.xlu0 %v1841_v17 }
 0xd6d   : > { %v1837_v60 = vpop.xlane.xlu2 %1836 }
 0xd6e   : > { %v1844_v61 = vmul.f32 %v1837_v60, %v1825_v52 }
 0xd70   : > { %v1847_v21 = vadd.f32 1e-05, %v1844_v61 }
 0xd72   : > { %2404 = vrsqrt.f32 %v1847_v21  ;;  %vm1856_vm12 = vweird.f32 %v1847_v21 }
 0xd75   : > { %v1840_v20 = vpop.xlane.xlu0 %1839 }
 0xd76   : > { %v1845_v63 = vmul.f32 %v1840_v20, %v1825_v52 }
 0xd78   : > { %v2405_v23 = vpop.eup %2404  ;;  %v1848_v30 = vadd.f32 1e-05, %v1845_v63 }
 0xd79   : > { %v1851_v37 = vmul.f32 %v2405_v23, %v1847_v21  ;;  %vm1857_vm11 = vweird.f32 %v2405_v23  ;;  %v2077_v21 = vld [vmem:[%s3277_s10 + $0x28] sm:$0xff] }
 0xd7a   : > { %2406 = vrsqrt.f32 %v1848_v30  ;;  %vm1858_vm7 = vmor %vm1856_vm12, %vm1857_vm11  ;;  %vm1866_vm13 = vweird.f32 %v1848_v30 }
 0xd7b   : > { %v1852_v2 = vmul.f32 %v2405_v23, %v1851_v37  ;;  %v2076_v37 = vld [vmem:[%s3277_s10 + $0x20] sm:$0xff] }
 0xd7d   : > { %v1853_v16 = vmul.f32 0.5, %v1852_v2  ;;  %v1843_v1 = vpop.xlane.xlu0 %1842 }
 0xd7e   : > { %v1846_v24 = vmul.f32 %v1843_v1, %v1825_v52  ;;  %v2376_v52 = vld [vmem:[%s3276_s9] ss:$0 sm:$0xff] }
 0xd7f   : > { %v1854_v3 = vsub.f32 1.5, %v1853_v16 }
 0xd80   : > { %v2407_v4 = vpop.eup %2406  ;;  %v1849_v13 = vadd.f32 1e-05, %v1846_v24 }
 0xd81   : > { %v1855_v29 = vmul.f32 %v2405_v23, %v1854_v3  ;;  %v1861_v6 = vmul.f32 %v2407_v4, %v1848_v30  ;;  %vm1867_vm5 = vweird.f32 %v2407_v4 }
 0xd82   : > { %2408 = vrsqrt.f32 %v1849_v13  ;;  %vm1868_vm10 = vmor %vm1866_vm13, %vm1867_vm5  ;;  %vm1876_vm1 = vweird.f32 %v1849_v13  ;;  %vm2084_vm5 = vcmask 523264  }
 0xd83   : > { %v1859_v26 = vsel %vm1858_vm7, %v2405_v23, %v1855_v29  ;;  %v1862_v9 = vmul.f32 %v2407_v4, %v1861_v6 }
 0xd84   : > { %v1880_v11 = vmul.f32 %v1859_v26, %v1829_v22  ;;  %v2074_v26 = vld [vmem:[%s3277_s10 + $0x10] sm:$0xff] }
 0xd85   : > { %v1863_v12 = vmul.f32 0.5, %v1862_v9 }
 0xd86   : > { %v1887_v57 = vmul.f32 %v2374_v7, %v1880_v11 }
 0xd87   : > { %v1864_v36 = vsub.f32 1.5, %v1863_v12 }
 0xd88   : > { %v2409_v28 = vpop.eup %2408  ;;  %v1894_v14 = vadd.f32 %v2375_v8, %v1887_v57  ;;  %v2073_v57 = vld [vmem:[%s3277_s10 + $0x8] sm:$0xff] }
 0xd89   : > { %v1865_v25 = vmul.f32 %v2407_v4, %v1864_v36  ;;  %v1871_v27 = vmul.f32 %v2409_v28, %v1849_v13  ;;  %vm1877_vm0 = vweird.f32 %v2409_v28  ;;  %v2075_v13 = vld [vmem:[%s3277_s10 + $0x18] sm:$0xff] }
 0xd8a   : > { %2346 = vmatmul.msk.f32.vlgmr.msra.gmra.mxu3 %vm3361_vm9, %v1894_v14  ;;  %vm1878_vm3 = vmor %vm1876_vm1, %vm1877_vm0 }
 0xd8b   : > { %v1869_v15 = vsel %vm1868_vm10, %v2407_v4, %v1865_v25  ;;  %v1872_v19 = vmul.f32 %v2409_v28, %v1871_v27  ;;  %v2072_v27 = vld [vmem:[%s3277_s10] sm:$0xff] }
 0xd8c   : > { %v1881_v33 = vmul.f32 %v1869_v15, %v1830_v34 }
 0xd8d   : > { %v1873_v39 = vmul.f32 0.5, %v1872_v19 }
 0xd8e   : > { %v1888_v50 = vmul.f32 %v2374_v7, %v1881_v33 }
 0xd8f   : > { %v1874_v45 = vsub.f32 1.5, %v1873_v39 }
 0xd90   : > { %v1895_v43 = vadd.f32 %v2375_v8, %v1888_v50 }
 0xd91   : > { %v1875_v44 = vmul.f32 %v2409_v28, %v1874_v45 }
 0xd92   : > { %2347 = vmatmul.msk.f32.gmra.mxu3 %vm3362_vm6, %v1895_v43  ;;  %vm3364_vm6 = vmmov %vm3363_vm4 }
 0xd93   : > { %v1879_v47 = vsel %vm1878_vm3, %v2409_v28, %v1875_v44 }
 0xd94   : > { %v1882_v49 = vmul.f32 %v1879_v47, %v3130_v46  ;;  %v2079_v46 = vld [vmem:[%s3277_s10 + $0x38] sm:$0xff] }
 0xd95   : > { %2102 = vmatpush.msrb.mxu0 %v2079_v46 }
 0xd96   : > { %v1889_v51 = vmul.f32 %v2374_v7, %v1882_v49 }
 0xd97   : > { %2103 = vmatpush.msrb.mxu0 %v2078_v5 }
 0xd98   : > { %v1896_v58 = vadd.f32 %v2375_v8, %v1889_v51 }
 0xd99   : > { %2104 = vmatpush.msrb.mxu0 %v2077_v21 }
 0xd9a   : > { %2348 = vmatmul.msk.f32.gmra.mxu3 %vm3363_vm4, %v1896_v58 }
 0xd9b   : > { %2105 = vmatpush.msrb.mxu0 %v2076_v37 }
 0xd9d   : > { %2106 = vmatpush.msrb.mxu0 %v2075_v13 }
 0xd9f   : > { %2107 = vmatpush.msrb.mxu0 %v2074_v26 }
 0xda1   : > { %2108 = vmatpush.msrb.mxu0 %v2073_v57 }
 0xda3   : > { %2109 = vmatpush.msrb.mxu0 %v2072_v27 }
 0xe0d   : > { %v1931_v48 = vpop.f32.mrf.mxu3 }
 0xe0e   : > { %v3160_v62 = vadd.f32 %v2376_v52, %v1931_v48 }
 0xe10   : > { %v3163_v22 = vmul.f32 0.70710677, %v3160_v62 }
 0xe12   : > { %v1946_v38 = vmul.f32 %v3163_v22, %v3163_v22 }
 0xe14   : > { %v3167_v42 = vmin.f32 %v1946_v38, 16.0 }
 0xe15   : > { %v1934_v53 = vpop.f32.mrf.mxu3 }
 0xe16   : > { %v1948_v10 = vmul.f32 2.1237322e-06, %v3167_v42  ;;  %v1959_v34 = vmul.f32 3.8918573e-05, %v3167_v42  ;;  %v3171_v35 = vadd.f32 %v2376_v52, %v1934_v53 }
 0xe18   : > { %v1949_v54 = vadd.f32 0.00028619796, %v1948_v10  ;;  %v1960_v40 = vadd.f32 0.001143296, %v1959_v34  ;;  %v3174_v59 = vmul.f32 0.70710677, %v3171_v35 }
 0xe1a   : > { %v1950_v55 = vmul.f32 %v1949_v54, %v3167_v42  ;;  %v1961_v17 = vmul.f32 %v1960_v40, %v3167_v42  ;;  %v1986_v0 = vmul.f32 %v3174_v59, %v3174_v59 }
 0xe1c   : > { %v1951_v56 = vadd.f32 0.0036580483, %v1950_v55  ;;  %v1962_v41 = vadd.f32 0.014752088, %v1961_v17  ;;  %v3186_v60 = vmin.f32 %v1986_v0, 16.0 }
 0xe1d   : > { %v1937_v61 = vpop.f32.mrf.mxu3 }
 0xe1e   : > { %v1963_v20 = vmul.f32 %v1962_v41, %v3167_v42  ;;  %v3192_v63 = vadd.f32 %v2376_v52, %v1937_v61  ;;  %v1988_v23 = vmul.f32 2.1237322e-06, %v3186_v60  ;;  %v1999_v30 = vmul.f32 3.8918573e-05, %v3186_v60 }
 0xe1f   : > { %v1952_v2 = vmul.f32 %v1951_v56, %v3167_v42 }
 0xe20   : > { %v1964_v16 = vadd.f32 0.112945676, %v1963_v20  ;;  %v1989_v1 = vadd.f32 0.00028619796, %v1988_v23  ;;  %v2000_v24 = vadd.f32 0.001143296, %v1999_v30 }
 0xe21   : > { %v3201_v3 = vmul.f32 0.70710677, %v3192_v63  ;;  %v1953_v9 = vadd.f32 0.05243302, %v1952_v2 }
 0xe22   : > { %v1965_v4 = vmul.f32 %v1964_v16, %v3167_v42  ;;  %v1990_v29 = vmul.f32 %v1989_v1, %v3186_v60  ;;  %v2001_v6 = vmul.f32 %v2000_v24, %v3186_v60 }
 0xe23   : > { %v2026_v7 = vmul.f32 %v3201_v3, %v3201_v3  ;;  %v1954_v15 = vmul.f32 %v1953_v9, %v3167_v42 }
 0xe24   : > { %v1966_v11 = vadd.f32 0.4994258, %v1965_v4  ;;  %v2002_v8 = vadd.f32 0.014752088, %v2001_v6  ;;  %v1991_v28 = vadd.f32 0.0036580483, %v1990_v29 }
 0xe25   : > { %v3214_v12 = vmin.f32 %v2026_v7, 16.0  ;;  %v1955_v44 = vadd.f32 0.18741608, %v1954_v15 }
 0xe26   : > { %v1967_v36 = vmul.f32 %v1966_v11, %v3167_v42  ;;  %v2003_v14 = vmul.f32 %v2002_v8, %v3186_v60  ;;  %v1992_v45 = vmul.f32 %v1991_v28, %v3186_v60 }
 0xe27   : > { %v2028_v25 = vmul.f32 2.1237322e-06, %v3214_v12  ;;  %v2039_v33 = vmul.f32 3.8918573e-05, %v3214_v12  ;;  %v1956_v53 = vmul.f32 %v1955_v44, %v3167_v42 }
 0xe28   : > { %v1968_v19 = vadd.f32 1.0, %v1967_v36  ;;  %v2004_v39 = vadd.f32 0.112945676, %v2003_v14  ;;  %v1993_v58 = vadd.f32 0.05243302, %v1992_v45  ;;  %v1940_v14 = vmul.f32 0.5, %v3160_v62 }
 0xe29   : > { %v2029_v50 = vadd.f32 0.00028619796, %v2028_v25  ;;  %v2040_v47 = vadd.f32 0.001143296, %v2039_v33  ;;  %v1957_v0 = vadd.f32 1.1283791, %v1956_v53 }
 0xe2a   : > { %2410 = vrcp.f32 %v1968_v19  ;;  %v2005_v43 = vmul.f32 %v2004_v39, %v3186_v60  ;;  %v1994_v46 = vmul.f32 %v1993_v58, %v3186_v60  ;;  %v1980_v5 = vand.u32 2147483648, %v1968_v19 }
 0xe2b   : > { %v2030_v51 = vmul.f32 %v2029_v50, %v3214_v12  ;;  %v2041_v52 = vmul.f32 %v2040_v47, %v3214_v12  ;;  %v1978_v61 = vand.u32 2147483647, %v1968_v19  ;;  %vm1974_vm2 = vweird.f32 %v1968_v19 }
 0xe2c   : > { %v2006_v49 = vadd.f32 0.4994258, %v2005_v43  ;;  %v1995_v20 = vadd.f32 0.18741608, %v1994_v46  ;;  %v1981_v30 = vor.u32 1.1754944e-38, %v1980_v5  ;;  %v1958_v16 = vmul.f32 %v1957_v0, %v3163_v22 }
 0xe2d   : > { %v2042_v10 = vadd.f32 0.014752088, %v2041_v52  ;;  %v2031_v40 = vadd.f32 0.0036580483, %v2030_v51  ;;  %vm1979_vm11 = vcmp.eq.f32.partialorder %v1978_v61, 8.507059e+37 }
 0xe2e   : > { %v2007_v48 = vmul.f32 %v2006_v49, %v3186_v60  ;;  %v1996_v13 = vmul.f32 %v1995_v20, %v3186_v60  ;;  %v1941_v49 = vmul.f32 0.5, %v3171_v35  ;;  %v2377_v5 = vld [vmem:[%s3278_s11] ss:$0 sm:$0xff] }
 0xe2f   : > { %v2043_v55 = vmul.f32 %v2042_v10, %v3214_v12  ;;  %v2032_v21 = vmul.f32 %v2031_v40, %v3214_v12 }
 0xe30   : > { %v2411_v38 = vpop.eup %2410  ;;  %v2008_v54 = vadd.f32 1.0, %v2007_v48  ;;  %v1997_v36 = vadd.f32 1.1283791, %v1996_v13 }
 0xe31   : > { %v1970_v34 = vmul.f32 %v2411_v38, %v1968_v19  ;;  %v2044_v56 = vadd.f32 0.112945676, %v2043_v55  ;;  %vm1975_vm15 = vweird.f32 %v2411_v38  ;;  %v2033_v24 = vadd.f32 0.05243302, %v2032_v21 }
 0xe32   : > { %2412 = vrcp.f32 %v2008_v54  ;;  %vm1976_vm8 = vmor %vm1974_vm2, %vm1975_vm15  ;;  %v2020_v11 = vand.u32 2147483648, %v2008_v54  ;;  %v2018_v22 = vand.u32 2147483647, %v2008_v54  ;;  %vm2014_vm7 = vweird.f32 %v2008_v54 }
 0xe33   : > { %v1971_v17 = vsub.f32 1.0, %v1970_v34  ;;  %v2045_v42 = vmul.f32 %v2044_v56, %v3214_v12  ;;  %v2034_v8 = vmul.f32 %v2033_v24, %v3214_v12  ;;  %v1998_v33 = vmul.f32 %v1997_v36, %v3174_v59 }
 0xe34   : > { %v2021_v15 = vor.u32 1.1754944e-38, %v2020_v11  ;;  %vm2019_vm10 = vcmp.eq.f32.partialorder %v2018_v22, 8.507059e+37  ;;  %v1942_v55 = vmul.f32 0.5, %v3192_v63 }
 0xe35   : > { %v1972_v41 = vmul.f32 %v2411_v38, %v1971_v17  ;;  %v2046_v37 = vadd.f32 0.4994258, %v2045_v42  ;;  %v2035_v19 = vadd.f32 0.18741608, %v2034_v8 }
 0xe37   : > { %v1973_v23 = vadd.f32 %v2411_v38, %v1972_v41  ;;  %v2047_v7 = vmul.f32 %v2046_v37, %v3214_v12  ;;  %v2036_v62 = vmul.f32 %v2035_v19, %v3214_v12 }
 0xe38   : > { %v2413_v2 = vpop.eup %2412 }
 0xe39   : > { %v1977_v1 = vsel %vm1976_vm8, %v2411_v38, %v1973_v23  ;;  %v2010_v29 = vmul.f32 %v2413_v2, %v2008_v54  ;;  %v2048_v57 = vadd.f32 1.0, %v2047_v7  ;;  %vm2015_vm12 = vweird.f32 %v2413_v2 }
 0xe3a   : > { %v1982_v4 = vsel %vm1979_vm11, %v1981_v30, %v1977_v1  ;;  %vm2016_vm13 = vmor %vm2014_vm7, %vm2015_vm12  ;;  %v2037_v52 = vadd.f32 1.1283791, %v2036_v62 }
 0xe3b   : > { %v1983_v6 = vmul.f32 %v1982_v4, %v1958_v16  ;;  %v2011_v26 = vsub.f32 1.0, %v2010_v29  ;;  %2414 = vrcp.f32 %v2048_v57  ;;  %v2060_v48 = vand.u32 2147483648, %v2048_v57 }
 0xe3c   : > { %v2058_v59 = vand.u32 2147483647, %v2048_v57  ;;  %vm2054_vm0 = vweird.f32 %v2048_v57  ;;  %v2038_v12 = vmul.f32 %v2037_v52, %v3201_v3 }
 0xe3d   : > { %v2349_v9 = vclamps-f32 %v1983_v6, 1.0  ;;  %v2012_v28 = vmul.f32 %v2413_v2, %v2011_v26  ;;  %v2061_v34 = vor.u32 1.1754944e-38, %v2060_v48 }
 0xe3e   : > { %vm2059_vm3 = vcmp.eq.f32.partialorder %v2058_v59, 8.507059e+37 }
 0xe3f   : > { %v2066_v25 = vadd.f32 1.0, %v2349_v9  ;;  %v2013_v27 = vadd.f32 %v2413_v2, %v2012_v28 }
 0xe41   : > { %v2069_v60 = vmul.f32 %v2066_v25, %v1940_v14  ;;  %v2017_v39 = vsel %vm2016_vm13, %v2413_v2, %v2013_v27  ;;  %v2415_v43 = vpop.eup %2414 }
 0xe42   : > { %v2022_v50 = vsel %vm2019_vm10, %v2021_v15, %v2017_v39  ;;  %v2050_v44 = vmul.f32 %v2415_v43, %v2048_v57  ;;  %vm2055_vm9 = vweird.f32 %v2415_v43 }
 0xe43   : > { %2352 = vmatmul.msk.f32.vlgmr.msrb.gmra.mxu0 %vm2084_vm5, %v2069_v60  ;;  %v2023_v45 = vmul.f32 %v2022_v50, %v1998_v33  ;;  %vm2056_vm1 = vmor %vm2054_vm0, %vm2055_vm9 }
 0xe44   : > { %v2051_v51 = vsub.f32 1.0, %v2050_v44 }
 0xe45   : > { %v2350_v47 = vclamps-f32 %v2023_v45, 1.0 }
 0xe46   : > { %v2052_v38 = vmul.f32 %v2415_v43, %v2051_v51 }
 0xe47   : > { %v2067_v58 = vadd.f32 1.0, %v2350_v47 }
 0xe48   : > { %v2053_v10 = vadd.f32 %v2415_v43, %v2052_v38 }
 0xe49   : > { %v2070_v53 = vmul.f32 %v2067_v58, %v1941_v49 }
 0xe4a   : > { %v2057_v54 = vsel %vm2056_vm1, %v2415_v43, %v2053_v10 }
 0xe4b   : > { %2353 = vmatmul.msk.f32.gmra.mxu0 %vm2084_vm5, %v2070_v53  ;;  %v2062_v35 = vsel %vm2059_vm3, %v2061_v34, %v2057_v54 }
 0xe4c   : > { %v2063_v40 = vmul.f32 %v2062_v35, %v2038_v12 }
 0xe4e   : > { %v2351_v46 = vclamps-f32 %v2063_v40, 1.0 }
 0xe50   : > { %v2068_v17 = vadd.f32 1.0, %v2351_v46 }
 0xe52   : > { %v2071_v0 = vmul.f32 %v2068_v17, %v1942_v55 }
 0xe54   : > { %2354 = vmatmul.msk.f32.gmra.mxu0 %vm2084_vm5, %v2071_v0 }
 0xec0   : > { %v2111_v56 = vpop.f32.mrf.mxu0 }
 0xec1   : > { %v2112_v41 = vadd.f32 %v2377_v5, %v2111_v56 }
 0xec3   : > { %v2120_v3 = vadd.f32 %v2112_v41, %v3109_v32 }
 0xec5   : > { %2123 = vst.msk [vmem:[%s413_s24] sm:$0xff] %vm3364_vm6, %v2120_v3 }
 0xec8   : > { %v2114_v63 = vpop.f32.mrf.mxu0 }
 0xec9   : > { %v2115_v61 = vadd.f32 %v2377_v5, %v2114_v63 }
 0xecb   : > { %v2121_v21 = vadd.f32 %v2115_v61, %v3115_v18 }
 0xecd   : > { %2124 = vst.msk [vmem:[%s413_s24 + $0x8] sm:$0xff] %vm3363_vm4, %v2121_v21 }
 0xed1   : > { %v2117_v20 = vpop.f32.mrf.mxu0 }
 0xed2   : > { %v2118_v42 = vadd.f32 %v2377_v5, %v2117_v20 }
 0xed4   : > { %v2122_v23 = vadd.f32 %v2118_v42, %v3121_v31 }
 0xed6   : > { %2125 = vst.msk [vmem:[%s413_s24 + $0x10] sm:$0x1] %vm1815_vm14, %v2122_v23 }
 0xed7 PF: > { %s22_s21 = sadd.s32 1, %s2425_s21  }
 0xed8   : > { %p19_p4 = scmp.ge.s32.totalorder %s22_s21, 4  }
 0xeda   :  { %21 = sbr.rel (!%p19_p4) target bundleno = 1 (0x1), region = 99 }

</bundles_post_ra>
